<compile_context>
chip_gen: v5e
topology: v5e:2x2
jax: 0.10.0
libtpu: 0.0.40
codegen_flags: <defaults>
</compile_context>

<pallas_src>
import functools

import jax
import jax.numpy as jnp
from jax.experimental import pallas as pl
from jax.experimental.pallas import tpu as pltpu


def _leaky(v):
    # LeakyReLU(negative_slope=0.2)
    return jnp.where(v >= 0, v, 0.2 * v)


def _gat_kernel(x_ref, tagrow_ref, gmax_ref, w_ref, atag_ref, asrce2_ref,
                bsum_ref, ed_ref, hsum_ref, rrep_ref, bias_ref, o_ref, *,
                num_heads, compute_dtype):
    # x_ref:      (B*L, D)    node features, rows = (batch, node)
    # tagrow_ref: (B, L*H)    wrapper-precomputed tag scores, lanes = (j, h)
    # gmax_ref:   (1, L*H)    per-head global tag max, tiled over j (stability)
    # w_ref:      (D, H*D)    projection weight (transposed), compute_dtype
    # atag_ref:   (H*D, H)    block-diagonal tag scoring vectors (f32)
    # asrce2_ref: (H*D, L*H)  fused src scoring + (i,h)->(j,h) lane expansion
    # bsum_ref:   (L*H, H)    block-sum over the key index j (0/1)
    # ed_ref:     (H, H*D)    head scalar -> per-head dim block (0/1)
    # hsum_ref:   (H*D, D)    sum over heads, pre-scaled by 1/H, compute_dtype
    # rrep_ref:   (B*L, B)    replicate each batch row L times (0/1, MXU)
    # bias_ref:   (1, D)
    # o_ref:      (B*L, D)
    H = num_heads
    f32 = jnp.float32
    cast = lambda v: v.astype(compute_dtype)

    x = x_ref[...]                                                  # (B*L, D)

    # 1) linear projection: one MXU matmul with M = B*L = 256 rows.
    #    compute_dtype operands (bf16 on v6e/v7x), f32 accumulation.
    p = jnp.dot(cast(x), w_ref[...], preferred_element_type=f32)    # (B*L, H*D)

    # 2) fused src scoring + lane expansion:
    #    src_exp[(b,i), j*H+h] = <p[(b,i)], a_src[h]>   (constant over j)
    src_exp = jnp.dot(p, asrce2_ref[...], preferred_element_type=f32)  # (B*L, L*H)
    s_src = src_exp[:, :H]                       # j = 0 block == per-head src score

    # 3) narrow tag score (only its diagonal is consumed downstream)
    s_tag = jnp.dot(p, atag_ref[...], preferred_element_type=f32)   # (B*L, H)

    # 4) lane-dense tag scores, replicated for every query row i (MXU broadcast)
    tag_full = jnp.dot(rrep_ref[...], tagrow_ref[...],
                       preferred_element_type=f32)                  # (B*L, L*H)

    # Stability shift: per-head global tag-max upper bound (wrapper-computed).
    # It is constant over j, so the softmax ratio is unchanged; only stability
    # is needed.  NOTE: it is intentionally NOT the textbook per-row max.
    gmax_dense = gmax_ref[...]                                      # (1, L*H)
    gmax = gmax_dense[:, :H]                                        # (1, H)

    scores = _leaky(src_exp + tag_full)                             # (B*L, L*H)
    shift = _leaky(src_exp + gmax_dense)                            # (B*L, L*H)
    escore = jnp.exp(scores - shift)                                # <= ~1

    # 5) softmax denominator per (b, i, h): block-sum over j on the MXU
    denom = jnp.dot(escore, bsum_ref[...], preferred_element_type=f32)  # (B*L, H)

    # Only the DIAGONAL attention coefficient is consumed (torch 'nhll' einsum).
    m_rows = _leaky(s_src + gmax)                                   # same shift as above
    diag_raw = _leaky(s_src + s_tag)                                # (B*L, H)
    diag = jnp.exp(diag_raw - m_rows) * pl.reciprocal(denom, approx=True)

    # 6)/7) broadcast head scalar over its dim block, weight, mean over heads
    # (1/H is folded into hsum_ref).
    diag_exp = jnp.dot(diag, ed_ref[...], preferred_element_type=f32)   # (B*L, H*D)
    weighted = p * diag_exp                                             # (B*L, H*D)
    head_sum = jnp.dot(cast(weighted), hsum_ref[...],
                       preferred_element_type=f32)                      # (B*L, D)

    # skip connection + bias (narrow-layout adds; small)
    out = head_sum + x + bias_ref[0]
    o_ref[...] = out.astype(o_ref.dtype)


@functools.partial(jax.jit,
                   static_argnames=("num_heads", "block_b", "compute_dtype"))
def gat_forward(feats, w_t, a_src, a_tag, bias, *, num_heads, block_b=16,
                compute_dtype=jnp.float32):
    """feats: (N, L, dim) f32; w_t: (dim, H*dim); a_*: (H, dim); bias: (dim,)."""
    n, seq_len, dim = feats.shape
    H, L = num_heads, seq_len
    hd = H * dim
    lh = L * H
    bl = block_b * L
    f32 = jnp.float32
    cd = compute_dtype

    # pad the batch to a multiple of block_b (zero rows are numerically benign;
    # they are sliced off before returning).
    n_pad = ((n + block_b - 1) // block_b) * block_b
    feats_p = feats if n_pad == n else jnp.pad(
        feats, ((0, n_pad - n), (0, 0), (0, 0)))

    # ---- constant helper matrices (built once under jit) ---------------------
    eye_h = jnp.eye(H, dtype=f32)
    a_src_bd = (a_src[:, :, None] * eye_h[:, None, :]).reshape(hd, H)     # (H*D, H)
    a_tag_bd = (a_tag[:, :, None] * eye_h[:, None, :]).reshape(hd, H)     # (H*D, H)
    e2 = jnp.tile(eye_h, (1, L))                                          # (H, L*H)
    asrc_e2 = a_src_bd.astype(f32) @ e2                                   # (H*D, L*H)
    bsum = jnp.tile(eye_h, (L, 1))                                        # (L*H, H)
    ed = jnp.kron(eye_h, jnp.ones((1, dim), f32))                         # (H, H*D)
    hsum = jnp.tile(jnp.eye(dim, dtype=f32), (H, 1)) * (1.0 / H)          # (H*D, D), /H folded
    rrep = jnp.kron(jnp.eye(block_b, dtype=f32), jnp.ones((L, 1), f32))   # (B*L, B)
    bias_2d = bias.reshape(1, dim).astype(f32)

    # ---- wrapper-side tag-score path (replaces the old bigg matmul) ----------
    # s_tag[b, j, h] = feats[b, j, :] @ (W^T @ a_tag_bd)[:, h]   (linear in feats)
    g_tag = w_t.astype(f32) @ a_tag_bd                                    # (D, H)
    x_rows = feats_p.reshape(n_pad * L, dim)                              # rows = (batch, node)
    s_tag_flat = x_rows @ g_tag                                           # (N*L, H)
    tag_row = s_tag_flat.reshape(n_pad, lh)                               # lanes = (j, h)
    # per-head global max (includes the zero pad rows -> still an upper bound)
    tag_gmax = jnp.max(s_tag_flat, axis=0, keepdims=True)                 # (1, H)
    gmax_dense = jnp.tile(tag_gmax, (1, L))                               # (1, L*H)

    kernel = functools.partial(_gat_kernel, num_heads=H, compute_dtype=cd)

    out_rows = pl.pallas_call(
        kernel,
        out_shape=jax.ShapeDtypeStruct((n_pad * L, dim), feats.dtype),
        grid=(n_pad // block_b,),
        in_specs=[
            pl.BlockSpec((bl, dim), lambda b: (b, 0)),            # x rows
            pl.BlockSpec((block_b, lh), lambda b: (b, 0)),        # tag_row (lane-dense)
            pl.BlockSpec((1, lh), lambda b: (0, 0)),              # global tag max
            pl.BlockSpec((dim, hd), lambda b: (0, 0)),            # W^T
            pl.BlockSpec((hd, H), lambda b: (0, 0)),              # a_tag block-diag
            pl.BlockSpec((hd, lh), lambda b: (0, 0)),             # fused src score+expand
            pl.BlockSpec((lh, H), lambda b: (0, 0)),              # block-sum over j
            pl.BlockSpec((H, hd), lambda b: (0, 0)),              # head -> dim expand
            pl.BlockSpec((hd, dim), lambda b: (0, 0)),            # sum over heads (/H)
            pl.BlockSpec((bl, block_b), lambda b: (0, 0)),        # row replicate
            pl.BlockSpec((1, dim), lambda b: (0, 0)),             # bias
        ],
        out_specs=pl.BlockSpec((bl, dim), lambda b: (b, 0)),
        compiler_params=pltpu.CompilerParams(
            dimension_semantics=("parallel",)),                   # grid>=2 -> 2 TCs on v7x
    )(x_rows, tag_row, gmax_dense, w_t.astype(cd), a_tag_bd, asrc_e2,
      bsum, ed, hsum.astype(cd), rrep, bias_2d)

    return out_rows.reshape(n_pad, L, dim)[:n]


def gat_reference(feats, w_t, a_src, a_tag, bias, *, num_heads):
    """Pure-JAX reference reproducing the PyTorch forward (mask=None)."""
    n, seq_len, dim = feats.shape
    p = feats @ w_t                                          # (N, L, H*dim)
    p = p.reshape(n, seq_len, num_heads, dim)                # (N, L, H, D)
    s_src = jnp.einsum('nlhd,hd->nlh', p, a_src)
    s_tag = jnp.einsum('nlhd,hd->nlh', p, a_tag)
    scores = s_src[:, :, None, :] + s_tag[:, None, :, :]     # (N, i, j, H)
    scores = jnp.transpose(scores, (0, 3, 1, 2))             # (N, H, i, j)
    scores = jnp.where(scores >= 0, scores, 0.2 * scores)
    att = jax.nn.softmax(scores, axis=-1)
    diag = jnp.diagonal(att, axis1=2, axis2=3)               # (N, H, L)
    out = diag[:, :, :, None] * jnp.transpose(p, (0, 2, 1, 3))   # (N, H, L, D)
    out = jnp.transpose(out, (0, 2, 1, 3))                   # (N, L, H, D)
    out = out + feats[:, :, None, :]
    out = out.mean(axis=2) + bias
    return out


def _xavier_uniform(key, shape, fan_in, fan_out):
    bound = (6.0 / (fan_in + fan_out)) ** 0.5
    return jax.random.uniform(key, shape, jnp.float32, -bound, bound)


if __name__ == "__main__":
    # Small deterministic setup: dim=16, num_heads=8, batch=32, seq=16
    dim, num_heads = 16, 8
    batch, seq_len = 32, 16

    root = jax.random.PRNGKey(0)
    k_x, k_w, k_src, k_tag = jax.random.split(root, 4)

    feats = jax.random.normal(k_x, (batch, seq_len, dim), jnp.float32)

    # linear_proj.weight in torch is (dim*H, dim); we pass its transpose.
    w = _xavier_uniform(k_w, (dim * num_heads, dim),
                        fan_in=dim, fan_out=dim * num_heads)
    w_t = w.T                                               # (dim, dim*H)
    # scoring_fn_* in torch are (1, H, dim); keep (H, dim) here.
    a_src = _xavier_uniform(k_src, (num_heads, dim),
                            fan_in=num_heads * dim, fan_out=dim)
    a_tag = _xavier_uniform(k_tag, (num_heads, dim),
                            fan_in=num_heads * dim, fan_out=dim)
    bias = jnp.zeros((dim,), jnp.float32)                   # torch zeros_ init

    ref = gat_reference(feats, w_t, a_src, a_tag, bias, num_heads=num_heads)

    # f32 MXU path (default; recommended on v5e — every cast is a no-op)
    out = gat_forward(feats, w_t, a_src, a_tag, bias, num_heads=num_heads)
    out = jax.block_until_ready(out)
    assert out.shape == (batch, seq_len, dim)
    assert jnp.allclose(out, ref, atol=2e-3, rtol=2e-3), (
        float(jnp.max(jnp.abs(out - ref))))

    # bf16 MXU-operand path (v6e/v7x): only projection + head-sum use bf16,
    # softmax math stays f32.
    out_bf16 = gat_forward(feats, w_t, a_src, a_tag, bias,
                           num_heads=num_heads, compute_dtype=jnp.bfloat16)
    out_bf16 = jax.block_until_ready(out_bf16)
    assert jnp.allclose(out_bf16, ref, atol=5e-2, rtol=5e-2), (
        float(jnp.max(jnp.abs(out_bf16 - ref))))

    print("KERNEL_OK")
</pallas_src>

<mosaic_0001>
module attributes {stable_mosaic.version = 11 : i64} {
  func.func @_gat_kernel(%arg0: i32, %arg1: memref<256x16xf32, #tpu.memory_space<vmem>>, %arg2: memref<16x128xf32, #tpu.memory_space<vmem>>, %arg3: memref<1x128xf32, #tpu.memory_space<vmem>>, %arg4: memref<16x128xf32, #tpu.memory_space<vmem>>, %arg5: memref<128x8xf32, #tpu.memory_space<vmem>>, %arg6: memref<128x128xf32, #tpu.memory_space<vmem>>, %arg7: memref<128x8xf32, #tpu.memory_space<vmem>>, %arg8: memref<8x128xf32, #tpu.memory_space<vmem>>, %arg9: memref<128x16xf32, #tpu.memory_space<vmem>>, %arg10: memref<256x16xf32, #tpu.memory_space<vmem>>, %arg11: memref<1x16xf32, #tpu.memory_space<vmem>>, %arg12: memref<256x16xf32, #tpu.memory_space<vmem>>) attributes {dimension_semantics = [#tpu.dimension_semantics<parallel>], iteration_bounds = array<i64: 2>, scalar_prefetch = 0 : i64, scratch_operands = 0 : i64, tpu.core_type = #tpu.core_type<tc>, window_params = [{transform_indices = @transform_0, window_bounds = array<i64: 256, 16>}, {transform_indices = @transform_1, window_bounds = array<i64: 16, 128>}, {pipeline_mode = #tpu.pipeline_mode<synchronous>, transform_indices = @transform_2, window_bounds = array<i64: 1, 128>}, {pipeline_mode = #tpu.pipeline_mode<synchronous>, transform_indices = @transform_3, window_bounds = array<i64: 16, 128>}, {pipeline_mode = #tpu.pipeline_mode<synchronous>, transform_indices = @transform_4, window_bounds = array<i64: 128, 8>}, {pipeline_mode = #tpu.pipeline_mode<synchronous>, transform_indices = @transform_5, window_bounds = array<i64: 128, 128>}, {pipeline_mode = #tpu.pipeline_mode<synchronous>, transform_indices = @transform_6, window_bounds = array<i64: 128, 8>}, {pipeline_mode = #tpu.pipeline_mode<synchronous>, transform_indices = @transform_7, window_bounds = array<i64: 8, 128>}, {pipeline_mode = #tpu.pipeline_mode<synchronous>, transform_indices = @transform_8, window_bounds = array<i64: 128, 16>}, {pipeline_mode = #tpu.pipeline_mode<synchronous>, transform_indices = @transform_9, window_bounds = array<i64: 256, 16>}, {pipeline_mode = #tpu.pipeline_mode<synchronous>, transform_indices = @transform_10, window_bounds = array<i64: 1, 16>}, {transform_indices = @transform_11, window_bounds = array<i64: 256, 16>}]} {
    %c0 = arith.constant 0 : index
    %c0_0 = arith.constant 0 : index
    %0 = vector.load %arg1[%c0, %c0_0] : memref<256x16xf32, #tpu.memory_space<vmem>>, vector<256x16xf32>
    %c0_1 = arith.constant 0 : index
    %c0_2 = arith.constant 0 : index
    %1 = vector.load %arg4[%c0_1, %c0_2] : memref<16x128xf32, #tpu.memory_space<vmem>>, vector<16x128xf32>
    %cst = arith.constant dense<0.000000e+00> : vector<256x128xf32>
    %2 = tpu.matmul %0, %1, %cst {dimension_numbers = #tpu.dot_dimension_numbers<[1], [0], [0], [1], [0, 0, 1, 1], [], []>} : vector<256x16xf32>, vector<16x128xf32>, vector<256x128xf32> -> vector<256x128xf32>
    %c0_3 = arith.constant 0 : index
    %c0_4 = arith.constant 0 : index
    %3 = vector.load %arg6[%c0_3, %c0_4] : memref<128x128xf32, #tpu.memory_space<vmem>>, vector<128x128xf32>
    %cst_5 = arith.constant dense<0.000000e+00> : vector<256x128xf32>
    %4 = tpu.matmul %2, %3, %cst_5 {dimension_numbers = #tpu.dot_dimension_numbers<[1], [0], [0], [1], [0, 0, 1, 1], [], []>} : vector<256x128xf32>, vector<128x128xf32>, vector<256x128xf32> -> vector<256x128xf32>
    %5 = vector.extract_strided_slice %4 {offsets = [0, 0], sizes = [256, 8], strides = [1, 1]} : vector<256x128xf32> to vector<256x8xf32>
    %c0_6 = arith.constant 0 : index
    %c0_7 = arith.constant 0 : index
    %6 = vector.load %arg5[%c0_6, %c0_7] : memref<128x8xf32, #tpu.memory_space<vmem>>, vector<128x8xf32>
    %cst_8 = arith.constant dense<0.000000e+00> : vector<256x8xf32>
    %7 = tpu.matmul %2, %6, %cst_8 {dimension_numbers = #tpu.dot_dimension_numbers<[1], [0], [0], [1], [0, 0, 1, 1], [], []>} : vector<256x128xf32>, vector<128x8xf32>, vector<256x8xf32> -> vector<256x8xf32>
    %c0_9 = arith.constant 0 : index
    %c0_10 = arith.constant 0 : index
    %8 = vector.load %arg10[%c0_9, %c0_10] : memref<256x16xf32, #tpu.memory_space<vmem>>, vector<256x16xf32>
    %c0_11 = arith.constant 0 : index
    %c0_12 = arith.constant 0 : index
    %9 = vector.load %arg2[%c0_11, %c0_12] : memref<16x128xf32, #tpu.memory_space<vmem>>, vector<16x128xf32>
    %cst_13 = arith.constant dense<0.000000e+00> : vector<256x128xf32>
    %10 = tpu.matmul %8, %9, %cst_13 {dimension_numbers = #tpu.dot_dimension_numbers<[1], [0], [0], [1], [0, 0, 1, 1], [], []>} : vector<256x16xf32>, vector<16x128xf32>, vector<256x128xf32> -> vector<256x128xf32>
    %c0_14 = arith.constant 0 : index
    %c0_15 = arith.constant 0 : index
    %11 = vector.load %arg3[%c0_14, %c0_15] : memref<1x128xf32, #tpu.memory_space<vmem>>, vector<1x128xf32>
    %12 = vector.extract_strided_slice %11 {offsets = [0, 0], sizes = [1, 8], strides = [1, 1]} : vector<1x128xf32> to vector<1x8xf32>
    %13 = arith.addf %4, %10 : vector<256x128xf32>
    %cst_16 = arith.constant 0.000000e+00 : f32
    %14 = vector.broadcast %cst_16 : f32 to vector<256x128xf32>
    %15 = arith.cmpf oge, %13, %14 : vector<256x128xf32>
    %cst_17 = arith.constant 2.000000e-01 : f32
    %16 = vector.broadcast %cst_17 : f32 to vector<256x128xf32>
    %17 = arith.mulf %16, %13 : vector<256x128xf32>
    %18 = arith.select %15, %13, %17 : vector<256x128xi1>, vector<256x128xf32>
    %19 = vector.broadcast %11 : vector<1x128xf32> to vector<256x128xf32>
    %20 = arith.addf %4, %19 : vector<256x128xf32>
    %cst_18 = arith.constant 0.000000e+00 : f32
    %21 = vector.broadcast %cst_18 : f32 to vector<256x128xf32>
    %22 = arith.cmpf oge, %20, %21 : vector<256x128xf32>
    %cst_19 = arith.constant 2.000000e-01 : f32
    %23 = vector.broadcast %cst_19 : f32 to vector<256x128xf32>
    %24 = arith.mulf %23, %20 : vector<256x128xf32>
    %25 = arith.select %22, %20, %24 : vector<256x128xi1>, vector<256x128xf32>
    %26 = arith.subf %18, %25 : vector<256x128xf32>
    %27 = math.exp %26 : vector<256x128xf32>
    %c0_20 = arith.constant 0 : index
    %c0_21 = arith.constant 0 : index
    %28 = vector.load %arg7[%c0_20, %c0_21] : memref<128x8xf32, #tpu.memory_space<vmem>>, vector<128x8xf32>
    %cst_22 = arith.constant dense<0.000000e+00> : vector<256x8xf32>
    %29 = tpu.matmul %27, %28, %cst_22 {dimension_numbers = #tpu.dot_dimension_numbers<[1], [0], [0], [1], [0, 0, 1, 1], [], []>} : vector<256x128xf32>, vector<128x8xf32>, vector<256x8xf32> -> vector<256x8xf32>
    %30 = vector.broadcast %12 : vector<1x8xf32> to vector<256x8xf32>
    %31 = arith.addf %5, %30 : vector<256x8xf32>
    %cst_23 = arith.constant 0.000000e+00 : f32
    %32 = vector.broadcast %cst_23 : f32 to vector<256x8xf32>
    %33 = arith.cmpf oge, %31, %32 : vector<256x8xf32>
    %cst_24 = arith.constant 2.000000e-01 : f32
    %34 = vector.broadcast %cst_24 : f32 to vector<256x8xf32>
    %35 = arith.mulf %34, %31 : vector<256x8xf32>
    %36 = arith.select %33, %31, %35 : vector<256x8xi1>, vector<256x8xf32>
    %37 = arith.addf %5, %7 : vector<256x8xf32>
    %cst_25 = arith.constant 0.000000e+00 : f32
    %38 = vector.broadcast %cst_25 : f32 to vector<256x8xf32>
    %39 = arith.cmpf oge, %37, %38 : vector<256x8xf32>
    %cst_26 = arith.constant 2.000000e-01 : f32
    %40 = vector.broadcast %cst_26 : f32 to vector<256x8xf32>
    %41 = arith.mulf %40, %37 : vector<256x8xf32>
    %42 = arith.select %39, %37, %41 : vector<256x8xi1>, vector<256x8xf32>
    %43 = arith.subf %42, %36 : vector<256x8xf32>
    %44 = math.exp %43 : vector<256x8xf32>
    %45 = tpu.reciprocal %29 {approx = true} : vector<256x8xf32> -> vector<256x8xf32>
    %46 = arith.mulf %44, %45 : vector<256x8xf32>
    %c0_27 = arith.constant 0 : index
    %c0_28 = arith.constant 0 : index
    %47 = vector.load %arg8[%c0_27, %c0_28] : memref<8x128xf32, #tpu.memory_space<vmem>>, vector<8x128xf32>
    %cst_29 = arith.constant dense<0.000000e+00> : vector<256x128xf32>
    %48 = tpu.matmul %46, %47, %cst_29 {dimension_numbers = #tpu.dot_dimension_numbers<[1], [0], [0], [1], [0, 0, 1, 1], [], []>} : vector<256x8xf32>, vector<8x128xf32>, vector<256x128xf32> -> vector<256x128xf32>
    %49 = arith.mulf %2, %48 : vector<256x128xf32>
    %c0_30 = arith.constant 0 : index
    %c0_31 = arith.constant 0 : index
    %50 = vector.load %arg9[%c0_30, %c0_31] : memref<128x16xf32, #tpu.memory_space<vmem>>, vector<128x16xf32>
    %cst_32 = arith.constant dense<0.000000e+00> : vector<256x16xf32>
    %51 = tpu.matmul %49, %50, %cst_32 {dimension_numbers = #tpu.dot_dimension_numbers<[1], [0], [0], [1], [0, 0, 1, 1], [], []>} : vector<256x128xf32>, vector<128x16xf32>, vector<256x16xf32> -> vector<256x16xf32>
    %52 = arith.addf %51, %0 : vector<256x16xf32>
    %c0_33 = arith.constant 0 : index
    %c0_34 = arith.constant 0 : index
    %53 = vector.load %arg11[%c0_33, %c0_34] : memref<1x16xf32, #tpu.memory_space<vmem>>, vector<1x16xf32>
    %54 = vector.shape_cast %53 : vector<1x16xf32> to vector<16xf32>
    %55 = vector.shape_cast %54 : vector<16xf32> to vector<1x16xf32>
    %56 = vector.broadcast %55 : vector<1x16xf32> to vector<256x16xf32>
    %57 = arith.addf %52, %56 : vector<256x16xf32>
    %c0_35 = arith.constant 0 : index
    %c0_36 = arith.constant 0 : index
    %58 = vector.load %arg12[%c0_35, %c0_36] : memref<256x16xf32, #tpu.memory_space<vmem>>, vector<256x16xf32>
    tpu.vector_store %arg12[%c0_35, %c0_36], %57 {strides = array<i32>} : memref<256x16xf32, #tpu.memory_space<vmem>>, vector<256x16xf32>,
    return
  }
  func.func @transform_0(%arg0: i32) -> (i32, i32) {
    %c0_i32 = arith.constant 0 : i32
    %c0_i32_0 = arith.constant 0 : i32
    return %arg0, %c0_i32 : i32, i32
  }
  func.func @transform_1(%arg0: i32) -> (i32, i32) {
    %c0_i32 = arith.constant 0 : i32
    %c0_i32_0 = arith.constant 0 : i32
    return %arg0, %c0_i32 : i32, i32
  }
  func.func @transform_2(%arg0: i32) -> (i32, i32) {
    %c0_i32 = arith.constant 0 : i32
    %c0_i32_0 = arith.constant 0 : i32
    %c0_i32_1 = arith.constant 0 : i32
    return %c0_i32, %c0_i32_0 : i32, i32
  }
  func.func @transform_3(%arg0: i32) -> (i32, i32) {
    %c0_i32 = arith.constant 0 : i32
    %c0_i32_0 = arith.constant 0 : i32
    %c0_i32_1 = arith.constant 0 : i32
    return %c0_i32, %c0_i32_0 : i32, i32
  }
  func.func @transform_4(%arg0: i32) -> (i32, i32) {
    %c0_i32 = arith.constant 0 : i32
    %c0_i32_0 = arith.constant 0 : i32
    %c0_i32_1 = arith.constant 0 : i32
    return %c0_i32, %c0_i32_0 : i32, i32
  }
  func.func @transform_5(%arg0: i32) -> (i32, i32) {
    %c0_i32 = arith.constant 0 : i32
    %c0_i32_0 = arith.constant 0 : i32
    %c0_i32_1 = arith.constant 0 : i32
    return %c0_i32, %c0_i32_0 : i32, i32
  }
  func.func @transform_6(%arg0: i32) -> (i32, i32) {
    %c0_i32 = arith.constant 0 : i32
    %c0_i32_0 = arith.constant 0 : i32
    %c0_i32_1 = arith.constant 0 : i32
    return %c0_i32, %c0_i32_0 : i32, i32
  }
  func.func @transform_7(%arg0: i32) -> (i32, i32) {
    %c0_i32 = arith.constant 0 : i32
    %c0_i32_0 = arith.constant 0 : i32
    %c0_i32_1 = arith.constant 0 : i32
    return %c0_i32, %c0_i32_0 : i32, i32
  }
  func.func @transform_8(%arg0: i32) -> (i32, i32) {
    %c0_i32 = arith.constant 0 : i32
    %c0_i32_0 = arith.constant 0 : i32
    %c0_i32_1 = arith.constant 0 : i32
    return %c0_i32, %c0_i32_0 : i32, i32
  }
  func.func @transform_9(%arg0: i32) -> (i32, i32) {
    %c0_i32 = arith.constant 0 : i32
    %c0_i32_0 = arith.constant 0 : i32
    %c0_i32_1 = arith.constant 0 : i32
    return %c0_i32, %c0_i32_0 : i32, i32
  }
  func.func @transform_10(%arg0: i32) -> (i32, i32) {
    %c0_i32 = arith.constant 0 : i32
    %c0_i32_0 = arith.constant 0 : i32
    %c0_i32_1 = arith.constant 0 : i32
    return %c0_i32, %c0_i32_0 : i32, i32
  }
  func.func @transform_11(%arg0: i32) -> (i32, i32) {
    %c0_i32 = arith.constant 0 : i32
    %c0_i32_0 = arith.constant 0 : i32
    return %arg0, %c0_i32 : i32, i32
  }
}

</mosaic_0001>

<bundles_post_ra>
// kernel: tile.23
= control target key start
LH: loop header
LB: loop body
LE: loop exit
PB: predicated region body
PF: predicated region fallthrough
CT: control target
= control target key end

     0   :  { %vm6_vm0 = vcmask 1043458   ;;  %vm10_vm1 = vcmask 1045508   ;;  %vm14_vm2 = vcmask 1047558   ;;  %s19_s6 = smov 3  ;;  %s22_s7 = smov 12  ;;  %vm16_vm3 = vcmask 64512   ;;  %s698_s0 = inlined_call_operand.vmem [shape: f32[8,16,8], index: 0, kind: input, shape index: {}]   ;;  %s699_s1 = inlined_call_operand.vmem [shape: bf16[8,128], index: 1, kind: output, shape index: {}]  }
   0x1   :  { %v355_v0 = vld [vmem:[%s698_s0 + $0xf] ss:$16 sm:%s19_s6]   ;;  %s27_s12 = smov 48  ;;  %s32_s13 = smov 192  ;;  %vm38_vm4 = vcmask 1048512   ;;  %vm60_vm5 = vcmask 982912  }
   0x2   :  { %v356_v1 = vld [vmem:[%s698_s0 + $0xf] ss:$16 sm:%s22_s7]   ;;  %s63_s18 = smov 3  ;;  %s66_s21 = smov 12  ;;  %vm82_vm6 = vcmask 917312   ;;  %vm104_vm7 = vcmask 851712  }
   0x3   :  { %v25_v2 = vsel %vm6_vm0, %v356_v1, %v355_v0  ;;  %v357_v3 = vld [vmem:[%s698_s0 + $0xf] ss:$16 sm:%s27_s12]   ;;  %v363_v6 = vld [vmem:[%s698_s0 + $0xd] ss:$16 sm:%s63_s18]   ;;  %s71_s22 = smov 48  ;;  %s76_s27 = smov 192 }
   0x4   :  { %v358_v4 = vld [vmem:[%s698_s0 + $0xf] ss:$16 sm:%s32_s13]   ;;  %v30_v5 = vsel %vm10_vm1, %v357_v3, %v25_v2  ;;  %v364_v8 = vld [vmem:[%s698_s0 + $0xd] ss:$16 sm:%s66_s21]   ;;  %s430_s28 = smov 120   ;;  %s41_s2 = smov 3 }
   0x5   :  { %v35_v7 = vsel %vm14_vm2, %v358_v4, %v30_v5  ;;  %v365_v9 = vld [vmem:[%s698_s0 + $0xd] ss:$16 sm:%s71_s22]   ;;  %v69_v10 = vsel %vm6_vm0, %v364_v8, %v363_v6  ;;  %s44_s3 = smov 12  ;;  %v359_v13 = vld [vmem:[%s698_s0 + $0xe] ss:$16 sm:%s41_s2]   ;;  %s49_s8 = smov 48 }
   0x6   :  { %36 = vrot.lane.b32.xlu0 %v35_v7, %s430_s28  ;;  %v366_v11 = vld [vmem:[%s698_s0 + $0xd] ss:$16 sm:%s76_s27]   ;;  %v74_v12 = vsel %vm10_vm1, %v365_v9, %v69_v10  ;;  %s54_s9 = smov 192  ;;  %s85_s14 = smov 3  ;;  %vm126_vm8 = vcmask 786112   ;;  %vm148_vm9 = vcmask 720512  }
   0x7   :  { %v360_v14 = vld [vmem:[%s698_s0 + $0xe] ss:$16 sm:%s44_s3]   ;;  %v79_v15 = vsel %vm14_vm2, %v366_v11, %v74_v12  ;;  %s431_s15 = smov 104   ;;  %v367_v20 = vld [vmem:[%s698_s0 + $0xc] ss:$16 sm:%s85_s14]   ;;  %s88_s18 = smov 12 }
   0x8   :  { %v47_v16 = vsel %vm6_vm0, %v360_v14, %v359_v13  ;;  %v361_v17 = vld [vmem:[%s698_s0 + $0xe] ss:$16 sm:%s49_s8]   ;;  %80 = vrot.lane.b32.xlu1 %v79_v15, %s431_s15  ;;  %s93_s19 = smov 48  ;;  %s98_s24 = smov 192  ;;  %vm170_vm10 = vcmask 654912   ;;  %vm192_vm11 = vcmask 589312  }
   0x9   :  { %v362_v18 = vld [vmem:[%s698_s0 + $0xe] ss:$16 sm:%s54_s9]   ;;  %v52_v19 = vsel %vm10_vm1, %v361_v17, %v47_v16  ;;  %v368_v21 = vld [vmem:[%s698_s0 + $0xc] ss:$16 sm:%s88_s18]   ;;  %s151_s27 = smov 3  ;;  %s154_s28 = smov 12 }
   0xa   :  { %v369_v22 = vld [vmem:[%s698_s0 + $0xc] ss:$16 sm:%s93_s19]   ;;  %v57_v23 = vsel %vm14_vm2, %v362_v18, %v52_v19  ;;  %v91_v24 = vsel %vm6_vm0, %v368_v21, %v367_v20  ;;  %v379_v27 = vld [vmem:[%s698_s0 + $0x9] ss:$16 sm:%s151_s27]   ;;  %s159_s4 = smov 48  ;;  %s164_s7 = smov 192 }
   0xb   :  { %v370_v25 = vld [vmem:[%s698_s0 + $0xc] ss:$16 sm:%s98_s24]   ;;  %v96_v26 = vsel %vm10_vm1, %v369_v22, %v91_v24  ;;  %v380_v28 = vld [vmem:[%s698_s0 + $0x9] ss:$16 sm:%s154_s28]   ;;  %s173_s8 = smov 3  ;;  %s432_s9 = smov 112  }
   0xc   :  { %v157_v29 = vsel %vm6_vm0, %v380_v28, %v379_v27  ;;  %v381_v30 = vld [vmem:[%s698_s0 + $0x9] ss:$16 sm:%s159_s4]   ;;  %v101_v31 = vsel %vm14_vm2, %v370_v25, %v96_v26  ;;  %v383_v32 = vld [vmem:[%s698_s0 + $0x8] ss:$16 sm:%s173_s8]   ;;  %s176_s12 = smov 12  ;;  %s181_s13 = smov 48 }
   0xd   :  { %v384_v33 = vld [vmem:[%s698_s0 + $0x8] ss:$16 sm:%s176_s12]   ;;  %s186_s16 = smov 192  ;;  %v162_v34 = vsel %vm10_vm1, %v381_v30, %v157_v29  ;;  %v382_v35 = vld [vmem:[%s698_s0 + $0x9] ss:$16 sm:%s164_s7]   ;;  %s217_s21 = smov 3 }
   0xe   :  { %58 = vrot.lane.b32.xlu0 %v57_v23, %s432_s9  ;;  %v179_v36 = vsel %vm6_vm0, %v384_v33, %v383_v32  ;;  %v385_v37 = vld [vmem:[%s698_s0 + $0x8] ss:$16 sm:%s181_s13]   ;;  %s220_s22 = smov 12  ;;  %s433_s23 = smov 96   ;;  %v167_v40 = vsel %vm14_vm2, %v382_v35, %v162_v34  ;;  %vm214_vm12 = vcmask 523712   ;;  %vm236_vm13 = vcmask 458112  }
   0xf   :  { %s225_s24 = smov 48  ;;  %v391_v38 = vld [vmem:[%s698_s0 + $0x6] ss:$16 sm:%s217_s21]   ;;  %s239_s29 = smov 3  ;;  %v184_v41 = vsel %vm10_vm1, %v385_v37, %v179_v36  ;;  %v386_v42 = vld [vmem:[%s698_s0 + $0x8] ss:$16 sm:%s186_s16]  }
  0x10   :  { %102 = vrot.lane.b32.xlu1 %v101_v31, %s433_s23  ;;  %v392_v39 = vld [vmem:[%s698_s0 + $0x6] ss:$16 sm:%s220_s22]   ;;  %s230_s3 = smov 192  ;;  %s242_s4 = smov 12  ;;  %v189_v47 = vsel %vm14_vm2, %v386_v42, %v184_v41  ;;  %vm258_vm14 = vcmask 392512   ;;  %vm280_vm15 = vcmask 326912  }
  0x11   :  { %v393_v43 = vld [vmem:[%s698_s0 + $0x6] ss:$16 sm:%s225_s24]   ;;  %s247_s7 = smov 48  ;;  %v223_v44 = vsel %vm6_vm0, %v392_v39, %v391_v38  ;;  %v395_v45 = vld [vmem:[%s698_s0 + $0x5] ss:$16 sm:%s239_s29]   ;;  %s107_s12 = smov 3 }
  0x12   :  { %v396_v46 = vld [vmem:[%s698_s0 + $0x5] ss:$16 sm:%s242_s4]   ;;  %s110_s13 = smov 12  ;;  %s434_s14 = smov 72   ;;  %v394_v48 = vld [vmem:[%s698_s0 + $0x6] ss:$16 sm:%s230_s3]   ;;  %v228_v52 = vsel %vm10_vm1, %v393_v43, %v223_v44 }
  0x13   :  { %v371_v49 = vld [vmem:[%s698_s0 + $0xb] ss:$16 sm:%s107_s12]   ;;  %s115_s19 = smov 48  ;;  %s120_s20 = smov 192  ;;  %v245_v53 = vsel %vm6_vm0, %v396_v46, %v395_v45  ;;  %v397_v54 = vld [vmem:[%s698_s0 + $0x5] ss:$16 sm:%s247_s7]   ;;  %v233_v61 = vsel %vm14_vm2, %v394_v48, %v228_v52 }
  0x14   :  { %s252_s21 = smov 192  ;;  %v372_v50 = vld [vmem:[%s698_s0 + $0xb] ss:$16 sm:%s110_s13]   ;;  %s283_s26 = smov 3  ;;  %v250_v62 = vsel %vm10_vm1, %v397_v54, %v245_v53 }
  0x15   :  { %v373_v51 = vld [vmem:[%s698_s0 + $0xb] ss:$16 sm:%s115_s19]   ;;  %v113_v55 = vsel %vm6_vm0, %v372_v50, %v371_v49  ;;  %s286_s2 = smov 12  ;;  %s435_s3 = smov 64   ;;  %v403_v59 = vld [vmem:[%s698_s0 + $0x3] ss:$16 sm:%s283_s26]  }
  0x16   :  { %168 = vrot.lane.b32.xlu0 %v167_v40, %s434_s14  ;;  %v374_v56 = vld [vmem:[%s698_s0 + $0xb] ss:$16 sm:%s120_s20]   ;;  %v118_v57 = vsel %vm10_vm1, %v373_v51, %v113_v55  ;;  %s291_s4 = smov 48  ;;  %s305_s9 = smov 3 }
  0x17   :  { %v123_v58 = vsel %vm14_vm2, %v374_v56, %v118_v57  ;;  %v404_v60 = vld [vmem:[%s698_s0 + $0x3] ss:$16 sm:%s286_s2]   ;;  %s308_s10 = smov 12  ;;  %v398_v63 = vld [vmem:[%s698_s0 + $0x5] ss:$16 sm:%s252_s21]   ;;  %s436_s13 = smov 88  }
  0x18   :  { %190 = vrot.lane.b32.xlu1 %v189_v47, %s435_s3  ;;  %124 = vrot.lane.b32.xlu2 %v123_v58, %s436_s13  ;;  %s296_s14 = smov 192  ;;  %s313_s15 = smov 48  ;;  %v405_v0 = vld [vmem:[%s698_s0 + $0x3] ss:$16 sm:%s291_s4]   ;;  %v289_v2 = vsel %vm6_vm0, %v404_v60, %v403_v59  ;;  %v255_v5 = vsel %vm14_vm2, %v398_v63, %v250_v62 }
  0x19   :  { %v407_v1 = vld [vmem:[%s698_s0 + $0x2] ss:$16 sm:%s305_s9]   ;;  %s129_s20 = smov 3  ;;  %s132_s25 = smov 12  ;;  %v406_v6 = vld [vmem:[%s698_s0 + $0x3] ss:$16 sm:%s296_s14]   ;;  %v294_v12 = vsel %vm10_vm1, %v405_v0, %v289_v2 }
  0x1a   :  { %v408_v3 = vld [vmem:[%s698_s0 + $0x2] ss:$16 sm:%s308_s10]   ;;  %v375_v4 = vld [vmem:[%s698_s0 + $0xa] ss:$16 sm:%s129_s20]   ;;  %s137_s26 = smov 48  ;;  %s437_s27 = smov 48   ;;  %v299_v20 = vsel %vm14_vm2, %v406_v6, %v294_v12 }
  0x1b   :  { %v409_v7 = vld [vmem:[%s698_s0 + $0x2] ss:$16 sm:%s313_s15]   ;;  %s318_s3 = smov 192  ;;  %v376_v8 = vld [vmem:[%s698_s0 + $0xa] ss:$16 sm:%s132_s25]   ;;  %s142_s6 = smov 192  ;;  %v311_v13 = vsel %vm6_vm0, %v408_v3, %v407_v1 }
  0x1c   :  { %v135_v9 = vsel %vm6_vm0, %v376_v8, %v375_v4  ;;  %v377_v10 = vld [vmem:[%s698_s0 + $0xa] ss:$16 sm:%s137_s26]   ;;  %s195_s11 = smov 3  ;;  %s198_s12 = smov 12  ;;  %v316_v21 = vsel %vm10_vm1, %v409_v7, %v311_v13  ;;  %v410_v22 = vld [vmem:[%s698_s0 + $0x2] ss:$16 sm:%s318_s3]  }
  0x1d   :  { %v378_v11 = vld [vmem:[%s698_s0 + $0xa] ss:$16 sm:%s142_s6]   ;;  %v140_v14 = vsel %vm10_vm1, %v377_v10, %v135_v9  ;;  %v387_v15 = vld [vmem:[%s698_s0 + $0x7] ss:$16 sm:%s195_s11]   ;;  %s203_s17 = smov 48  ;;  %s438_s18 = smov 40   ;;  %v321_v25 = vsel %vm14_vm2, %v410_v22, %v316_v21 }
  0x1e   :  { %234 = vrot.lane.b32.xlu0 %v233_v61, %s437_s27  ;;  %v388_v16 = vld [vmem:[%s698_s0 + $0x7] ss:$16 sm:%s198_s12]   ;;  %v145_v17 = vsel %vm14_vm2, %v378_v11, %v140_v14  ;;  %s208_s21 = smov 192  ;;  %s439_s24 = smov 80  }
  0x1f   :  { %v201_v18 = vsel %vm6_vm0, %v388_v16, %v387_v15  ;;  %v389_v19 = vld [vmem:[%s698_s0 + $0x7] ss:$16 sm:%s203_s17]   ;;  %s261_s25 = smov 3  ;;  %s264_s26 = smov 12 }
  0x20   :  { %256 = vrot.lane.b32.xlu1 %v255_v5, %s438_s18  ;;  %146 = vrot.lane.b32.xlu2 %v145_v17, %s439_s24  ;;  %v206_v23 = vsel %vm10_vm1, %v389_v19, %v201_v18  ;;  %v390_v24 = vld [vmem:[%s698_s0 + $0x7] ss:$16 sm:%s208_s21]   ;;  %s440_s29 = smov 24   ;;  %s269_s5 = smov 48 }
  0x21   :  { %v399_v26 = vld [vmem:[%s698_s0 + $0x4] ss:$16 sm:%s261_s25]   ;;  %v211_v28 = vsel %vm14_vm2, %v390_v24, %v206_v23  ;;  %s441_s6 = smov 16   ;;  %s274_s9 = smov 192 }
  0x22   :  { %v400_v27 = vld [vmem:[%s698_s0 + $0x4] ss:$16 sm:%s264_s26]   ;;  %s442_s10 = smov 56   ;;  %s327_s11 = smov 3 }
  0x23   :  { %v267_v29 = vsel %vm6_vm0, %v400_v27, %v399_v26  ;;  %v401_v30 = vld [vmem:[%s698_s0 + $0x4] ss:$16 sm:%s269_s5]   ;;  %s330_s12 = smov 12  ;;  %v411_v33 = vld [vmem:[%s698_s0 + $0x1] ss:$16 sm:%s327_s11]   ;;  %s335_s19 = smov 48 }
  0x24   :  { %v272_v31 = vsel %vm10_vm1, %v401_v30, %v267_v29  ;;  %v402_v32 = vld [vmem:[%s698_s0 + $0x4] ss:$16 sm:%s274_s9]   ;;  %v412_v34 = vld [vmem:[%s698_s0 + $0x1] ss:$16 sm:%s330_s12]   ;;  %s340_s22 = smov 192  ;;  %s443_s23 = smov 32  }
  0x25   :  { %v277_v35 = vsel %vm14_vm2, %v402_v32, %v272_v31  ;;  %v333_v36 = vsel %vm6_vm0, %v412_v34, %v411_v33  ;;  %v413_v37 = vld [vmem:[%s698_s0 + $0x1] ss:$16 sm:%s335_s19]   ;;  %s444_s26 = smov 8   ;;  %s8_s27 = smov 48 }
  0x26   :  { %300 = vrot.lane.b32.xlu0 %v299_v20, %s440_s29  ;;  %v338_v38 = vsel %vm10_vm1, %v413_v37, %v333_v36  ;;  %v414_v39 = vld [vmem:[%s698_s0 + $0x1] ss:$16 sm:%s340_s22]   ;;  %s12_s28 = smov 192  ;;  %s2_s29 = smov 3 }
  0x27   :  { %v343_v40 = vsel %vm14_vm2, %v414_v39, %v338_v38  ;;  %s4_s30 = smov 12  ;;  %v9_v41 = vld [vmem:[%s698_s0] ss:$16 sm:%s8_s27]  }
  0x28   :  { %322 = vrot.lane.b32.xlu1 %v321_v25, %s441_s6  ;;  %212 = vrot.lane.b32.xlu2 %v211_v28, %s442_s10  ;;  %v13_v42 = vld [vmem:[%s698_s0] ss:$16 sm:%s12_s28]  }
  0x29   :  { %v3_v43 = vld [vmem:[%s698_s0] ss:$16 sm:%s2_s29]  }
  0x2a   :  { %v5_v44 = vld [vmem:[%s698_s0] ss:$16 sm:%s4_s30]  }
  0x2b   :  { %v7_v45 = vsel %vm6_vm0, %v5_v44, %v3_v43  ;;  %vm302_vm0 = vcmask 261312  }
  0x2c   :  { %v11_v46 = vsel %vm10_vm1, %v9_v41, %v7_v45  ;;  %vm324_vm1 = vcmask 195712  }
  0x2d   :  { %v15_v47 = vsel %vm14_vm2, %v13_v42, %v11_v46  ;;  %vm346_vm2 = vcmask 130112  }
  0x2e   :  { %17 = vst.msk [vmem:[#allocation0] sm:$0xff] %vm16_vm3, %v15_v47  }
  0x30   :  { %278 = vrot.lane.b32.xlu2 %v277_v35, %s443_s23 }
  0x38   :  { %344 = vrot.lane.b32.xlu2 %v343_v40, %s444_s26 }
  0x72   :  { %v125_v48 = vpop.permute.xlu2 %124  }
  0x78   :  { %v37_v49 = vpop.permute.xlu0 %36  }
  0x79   :  { %39 = vst.msk [vmem:[#allocation0] sm:$0xff] %vm38_vm4, %v37_v49  }
  0x7a   :  { %v81_v50 = vpop.permute.xlu1 %80   ;;  %v147_v51 = vpop.permute.xlu2 %146  }
  0x80   :  { %v59_v52 = vpop.permute.xlu0 %58  }
  0x81   :  { %61 = vst.msk [vmem:[#allocation0] sm:$0xff] %vm60_vm5, %v59_v52  }
  0x82   :  { %83 = vst.msk [vmem:[#allocation0] sm:$0xff] %vm82_vm6, %v81_v50   ;;  %v103_v53 = vpop.permute.xlu1 %102   ;;  %v213_v54 = vpop.permute.xlu2 %212  }
  0x83   :  { %105 = vst.msk [vmem:[#allocation0] sm:$0xff] %vm104_vm7, %v103_v53  }
  0x84   :  { %127 = vst.msk [vmem:[#allocation0] sm:$0xff] %vm126_vm8, %v125_v48  }
  0x85   :  { %149 = vst.msk [vmem:[#allocation0] sm:$0xff] %vm148_vm9, %v147_v51  }
  0x88   :  { %v169_v55 = vpop.permute.xlu0 %168  }
  0x89   :  { %171 = vst.msk [vmem:[#allocation0] sm:$0xff] %vm170_vm10, %v169_v55  }
  0x8a   :  { %v191_v56 = vpop.permute.xlu1 %190   ;;  %v279_v57 = vpop.permute.xlu2 %278  }
  0x8b   :  { %193 = vst.msk [vmem:[#allocation0] sm:$0xff] %vm192_vm11, %v191_v56  }
  0x8c   :  { %215 = vst.msk [vmem:[#allocation0] sm:$0xff] %vm214_vm12, %v213_v54  }
  0x90   :  { %v235_v58 = vpop.permute.xlu0 %234  }
  0x91   :  { %237 = vst.msk [vmem:[#allocation0] sm:$0xff] %vm236_vm13, %v235_v58  }
  0x92   :  { %v257_v59 = vpop.permute.xlu1 %256   ;;  %v345_v60 = vpop.permute.xlu2 %344  }
  0x93   :  { %259 = vst.msk [vmem:[#allocation0] sm:$0xff] %vm258_vm14, %v257_v59  }
  0x94   :  { %281 = vst.msk [vmem:[#allocation0] sm:$0xff] %vm280_vm15, %v279_v57  }
  0x98   :  { %v301_v61 = vpop.permute.xlu0 %300  }
  0x99   :  { %303 = vst.msk [vmem:[#allocation0] sm:$0xff] %vm302_vm0, %v301_v61  }
  0x9a   :  { %v323_v62 = vpop.permute.xlu1 %322  }
  0x9b   :  { %325 = vst.msk [vmem:[#allocation0] sm:$0xff] %vm324_vm1, %v323_v62  }
  0x9c   :  { %347 = vst.msk [vmem:[#allocation0] sm:$0xff] %vm346_vm2, %v345_v60  }
  0xa3   :  { %v350_v63 = vld [vmem:[#allocation0] sm:$0xff] }
  0xa4   :  { %v351_v0 = vpack.c.bf16 0.0, %v350_v63 }
  0xa6   :  { %354 = vst [vmem:[%s699_s1] sm:$0xf] %v351_v0 }

// kernel: gat_forward.1
= control target key start
LH: loop header
LB: loop body
LE: loop exit
PB: predicated region body
PF: predicated region fallthrough
CT: control target
= control target key end

     0   :  { %s2886_s17 = smov 0   ;;  %s4109_s0 = inlined_call_operand.vmem [shape: f32[512,16], index: 0, kind: input, shape index: {}]   ;;  %s4110_s1 = inlined_call_operand.vmem [shape: f32[32,128], index: 1, kind: input, shape index: {}]   ;;  %s4111_s2 = inlined_call_operand.vmem [shape: f32[1,128], index: 2, kind: input, shape index: {}]   ;;  %s4112_s3 = inlined_call_operand.vmem [shape: f32[16,128], index: 3, kind: input, shape index: {}]   ;;  %s4113_s4 = inlined_call_operand.vmem [shape: f32[128,8], index: 4, kind: input, shape index: {}]   ;;  %s4114_s5 = inlined_call_operand.vmem [shape: f32[128,128], index: 5, kind: input, shape index: {}]   ;;  %s4115_s6 = inlined_call_operand.vmem [shape: f32[128,8], index: 6, kind: input, shape index: {}]   ;;  %s4116_s7 = inlined_call_operand.vmem [shape: f32[8,128], index: 7, kind: input, shape index: {}]   ;;  %s4117_s8 = inlined_call_operand.vmem [shape: f32[128,16], index: 8, kind: input, shape index: {}]   ;;  %s4118_s9 = inlined_call_operand.vmem [shape: f32[256,16], index: 9, kind: input, shape index: {}]   ;;  %s4119_s10 = inlined_call_operand.vmem [shape: f32[1,16], index: 10, kind: input, shape index: {}]   ;;  %s4120_s11 = inlined_call_operand.vmem [shape: f32[512,16], index: 11, kind: output, shape index: {}]  }
   0x1 LB: > { %s2438_s18 = sadd.s32 4294967295, %s2824_s17   ;;  %p2442_p0 = scmp.ge.s32.totalorder %s2824_s17, 1  ;;  %s2824_s17 = sphi %s2886_s17, %s21_s17  }
   0x2   : > { %p349_p1 = scmp.lt.s32.totalorder %s2824_s17, 3 }
   0x4   : > { %p350_p2 = pnand %p2442_p0, %p349_p1 }
   0x6   : > { %353 = sbr.rel (%p350_p2) target bundleno = 1458 (0x5b2), region = 64 }
   0xb   : > { %v445_v0 = vld [vmem:[%s4112_s3 + $0x8] sm:$0xff]  ;;  %v444_v1 = vld [vmem:[%s4112_s3] sm:$0xff]  ;;  %s2443_s23 = sshll.u32 %s2438_s18, 5  ;;  %vm446_vm0 = vcmask 130048   ;;  %v671_v10 = vld [vmem:[%s4114_s5 + $0x78] sm:$0xff]  ;;  %s2445_s13 = sshll.u32 %s2438_s18, 1 }
   0xc   : > { %557 = vmatpush.msra.mxu0 %v445_v0  ;;  %p395_p3 = scmp.lt.s32.totalorder %s2443_s23, 63  ;;  %2547 = vmatpush.msra.mxu2 %v445_v0  ;;  %v670_v12 = vld [vmem:[%s4114_s5 + $0x70] sm:$0xff]  ;;  %v669_v13 = vld [vmem:[%s4114_s5 + $0x68] sm:$0xff]  ;;  %v668_v14 = vld [vmem:[%s4114_s5 + $0x60] sm:$0xff]  ;;  %p401_p4 = scmp.lt.s32.totalorder %s2445_s13, 3 }
   0xd   : > { %672 = vmatpush.msra.mxu1 %v671_v10  ;;  %v667_v15 = vld [vmem:[%s4114_s5 + $0x58] sm:$0xff]  ;;  %v666_v17 = vld [vmem:[%s4114_s5 + $0x50] sm:$0xff]  ;;  %v665_v18 = vld [vmem:[%s4114_s5 + $0x48] sm:$0xff] }
   0xe   : > { %558 = vmatpush.msra.mxu0 %v444_v1  ;;  %s4297_s23 = smov (!%p395_p3, %s2443_s23), 63  ;;  %2548 = vmatpush.msra.mxu2 %v444_v1  ;;  %v664_v19 = vld [vmem:[%s4114_s5 + $0x40] sm:$0xff]  ;;  %v663_v20 = vld [vmem:[%s4114_s5 + $0x38] sm:$0xff]  ;;  %v662_v22 = vld [vmem:[%s4114_s5 + $0x30] sm:$0xff]  ;;  %s4299_s13 = smov (!%p401_p4, %s2445_s13), 3 }
   0xf   : > { %s2444_s24 = sshll.u32 %s4297_s23, 3  ;;  %673 = vmatpush.msra.mxu1 %v670_v12  ;;  %v661_v23 = vld [vmem:[%s4114_s5 + $0x28] sm:$0xff]  ;;  %v660_v24 = vld [vmem:[%s4114_s5 + $0x20] sm:$0xff]  ;;  %v659_v25 = vld [vmem:[%s4114_s5 + $0x18] sm:$0xff]  ;;  %s2446_s14 = sshll.u32 %s4299_s13, 3 }
  0x10   : > { %s2910_s27 = scalar_lea.vmem %s4109_s0, %s2444_s24  ;;  %2549 = vmatpush.msrb.mxu2 %v671_v10  ;;  %v658_v27 = vld [vmem:[%s4114_s5 + $0x10] sm:$0xff]  ;;  %v657_v28 = vld [vmem:[%s4114_s5 + $0x8] sm:$0xff]  ;;  %v656_v29 = vld [vmem:[%s4114_s5] sm:$0xff]  ;;  %s404_s16 = scalar_lea.vmem %s4110_s1, %s2446_s14 }
  0x11   : > { %v412_v2 = vld [vmem:[%s2910_s27] sm:$0xff]  ;;  %v413_v3 = vld [vmem:[%s2910_s27 + $0x8] sm:$0xff]  ;;  %v414_v4 = vld [vmem:[%s2910_s27 + $0x10] sm:$0xff]  ;;  %674 = vmatpush.msra.mxu1 %v669_v13  ;;  %s3962_s26 = scalar_lea.vmem %s4120_s11, %s2444_s24 }
  0x12   : > { %2449 = vmatmul.msk.f32.vlgmr.msra.gmra.mxu0 %vm446_vm0, %v412_v2  ;;  %v415_v5 = vld [vmem:[%s2910_s27 + $0x18] sm:$0xff]  ;;  %v416_v6 = vld [vmem:[%s2910_s27 + $0x20] sm:$0xff]  ;;  %v417_v7 = vld [vmem:[%s2910_s27 + $0x28] sm:$0xff]  ;;  %2550 = vmatpush.msrb.mxu2 %v670_v12 }
  0x13   : > { %v418_v8 = vld [vmem:[%s2910_s27 + $0x30] sm:$0xff]  ;;  %v419_v9 = vld [vmem:[%s2910_s27 + $0x38] sm:$0xff]  ;;  %v420_v11 = vld [vmem:[%s2910_s27 + $0x40] sm:$0xff]  ;;  %675 = vmatpush.msra.mxu1 %v668_v14 }
  0x14   : > { %2551 = vmatpush.msrb.mxu2 %v669_v13  ;;  %v421_v16 = vld [vmem:[%s2910_s27 + $0x48] sm:$0xff]  ;;  %v422_v21 = vld [vmem:[%s2910_s27 + $0x50] sm:$0xff]  ;;  %v423_v26 = vld [vmem:[%s2910_s27 + $0x58] sm:$0xff] }
  0x15   : > { %676 = vmatpush.msra.mxu1 %v667_v15  ;;  %v424_v30 = vld [vmem:[%s2910_s27 + $0x60] sm:$0xff]  ;;  %v425_v31 = vld [vmem:[%s2910_s27 + $0x68] sm:$0xff]  ;;  %v426_v32 = vld [vmem:[%s2910_s27 + $0x70] sm:$0xff] }
  0x16   : > { %2552 = vmatpush.msrb.mxu2 %v668_v14  ;;  %v427_v33 = vld [vmem:[%s2910_s27 + $0x78] sm:$0xff]  ;;  %v428_v35 = vld [vmem:[%s2910_s27 + $0x80] sm:$0xff]  ;;  %v429_v37 = vld [vmem:[%s2910_s27 + $0x88] sm:$0xff] }
  0x17   : > { %677 = vmatpush.msra.mxu1 %v666_v17  ;;  %v3007_v38 = vld [vmem:[%s404_s16 + $0x8] sm:$0xff]  ;;  %v430_v40 = vld [vmem:[%s2910_s27 + $0x90] sm:$0xff]  ;;  %v3014_v41 = vld [vmem:[%s404_s16] sm:$0xff] }
  0x18   : > { %2553 = vmatpush.msrb.mxu2 %v667_v15  ;;  %2565 = vmatpush.msra.mxu3 %v3007_v38  ;;  %v921_v42 = vld [vmem:[%s4118_s9 + $0x38] sm:$0xff]  ;;  %v922_v45 = vld [vmem:[%s4118_s9 + $0x40] sm:$0xff]  ;;  %v923_v48 = vld [vmem:[%s4118_s9 + $0x48] sm:$0xff] }
  0x19   : > { %678 = vmatpush.msra.mxu1 %v665_v18  ;;  %v431_v44 = vld [vmem:[%s2910_s27 + $0x98] sm:$0xff]  ;;  %v432_v47 = vld [vmem:[%s2910_s27 + $0xa0] sm:$0xff]  ;;  %v437_v49 = vld [vmem:[%s2910_s27 + $0xc8] sm:$0xff] }
  0x1a   : > { %2450 = vmatmul.msk.f32.gmra.mxu0 %vm446_vm0, %v413_v3  ;;  %2554 = vmatpush.msrb.mxu2 %v666_v17  ;;  %v433_v51 = vld [vmem:[%s2910_s27 + $0xa8] sm:$0xff]  ;;  %v924_v52 = vld [vmem:[%s4118_s9 + $0x50] sm:$0xff]  ;;  %v925_v56 = vld [vmem:[%s4118_s9 + $0x58] sm:$0xff] }
  0x1b   : > { %679 = vmatpush.msra.mxu1 %v664_v19  ;;  %2566 = vmatpush.msra.mxu3 %v3014_v41  ;;  %v438_v53 = vld [vmem:[%s2910_s27 + $0xd0] sm:$0xff]  ;;  %v439_v57 = vld [vmem:[%s2910_s27 + $0xd8] sm:$0xff]  ;;  %v926_v60 = vld [vmem:[%s4118_s9 + $0x60] sm:$0xff] }
  0x1c   : > { %2555 = vmatpush.msrb.mxu2 %v665_v18  ;;  %2488 = vmatmul.msk.f32.vlgmr.msra.gmra.mxu3 %vm446_vm0, %v921_v42  ;;  %v434_v55 = vld [vmem:[%s2910_s27 + $0xb0] sm:$0xff]  ;;  %v435_v59 = vld [vmem:[%s2910_s27 + $0xb8] sm:$0xff]  ;;  %v440_v61 = vld [vmem:[%s2910_s27 + $0xe0] sm:$0xff] }
  0x1d   : > { %680 = vmatpush.msra.mxu1 %v663_v20  ;;  %2474 = vmatmul.msk.f32.vlgmr.msra.gmra.mxu2 %vm446_vm0, %v437_v49  ;;  %v436_v63 = vld [vmem:[%s2910_s27 + $0xc0] sm:$0xff]  ;;  %v927_v0 = vld [vmem:[%s4118_s9 + $0x68] sm:$0xff]  ;;  %v928_v3 = vld [vmem:[%s4118_s9 + $0x70] sm:$0xff] }
  0x1e   : > { %2556 = vmatpush.msrb.mxu2 %v664_v19  ;;  %v441_v1 = vld [vmem:[%s2910_s27 + $0xe8] sm:$0xff]  ;;  %v932_v13 = vld [vmem:[%s4118_s9 + $0x90] sm:$0xff]  ;;  %v933_v15 = vld [vmem:[%s4118_s9 + $0x98] sm:$0xff] }
  0x1f   : > { %681 = vmatpush.msra.mxu1 %v662_v22  ;;  %v934_v17 = vld [vmem:[%s4118_s9 + $0xa0] sm:$0xff]  ;;  %v935_v19 = vld [vmem:[%s4118_s9 + $0xa8] sm:$0xff]  ;;  %v795_v42 = vld [vmem:[%s4113_s4 + $0x50] sm:$0xff] }
  0x20   : > { %2557 = vmatpush.msrb.mxu2 %v663_v20  ;;  %v793_v49 = vld [vmem:[%s4113_s4 + $0x40] sm:$0xff] }
  0x21   : > { %682 = vmatpush.msra.mxu1 %v661_v23 }
  0x22   : > { %2451 = vmatmul.msk.f32.gmra.mxu0 %vm446_vm0, %v414_v4  ;;  %2558 = vmatpush.msrb.mxu2 %v662_v22  ;;  %v442_v4 = vld [vmem:[%s2910_s27 + $0xf0] sm:$0xff] }
  0x23   : > { %683 = vmatpush.msra.mxu1 %v660_v24 }
  0x24   : > { %2559 = vmatpush.msrb.mxu2 %v661_v23  ;;  %2489 = vmatmul.msk.f32.gmra.mxu3 %vm446_vm0, %v922_v45  ;;  %v794_v45 = vld [vmem:[%s4113_s4 + $0x48] sm:$0xff] }
  0x25   : > { %684 = vmatpush.msra.mxu1 %v659_v25  ;;  %2475 = vmatmul.msk.f32.gmra.mxu2 %vm446_vm0, %v438_v53 }
  0x26   : > { %2560 = vmatpush.msrb.mxu2 %v660_v24  ;;  %v937_v24 = vld [vmem:[%s4118_s9 + $0xb8] sm:$0xff] }
  0x27   : > { %685 = vmatpush.msra.mxu1 %v658_v27 }
  0x28   : > { %2561 = vmatpush.msrb.mxu2 %v659_v25 }
  0x29   : > { %686 = vmatpush.msra.mxu1 %v657_v28 }
  0x2a   : > { %2452 = vmatmul.msk.f32.gmra.mxu0 %vm446_vm0, %v415_v5  ;;  %2562 = vmatpush.msrb.mxu2 %v658_v27  ;;  %v938_v27 = vld [vmem:[%s4118_s9 + $0xc0] sm:$0xff] }
  0x2b   : > { %687 = vmatpush.msra.mxu1 %v656_v29 }
  0x2c   : > { %2563 = vmatpush.msrb.mxu2 %v657_v28  ;;  %2490 = vmatmul.msk.f32.gmra.mxu3 %vm446_vm0, %v923_v48  ;;  %v799_v28 = vld [vmem:[%s4113_s4 + $0x70] sm:$0xff] }
  0x2d   : > { %2476 = vmatmul.msk.f32.gmra.mxu2 %vm446_vm0, %v439_v57  ;;  %v790_v57 = vld [vmem:[%s4113_s4 + $0x28] sm:$0xff] }
  0x2e   : > { %2564 = vmatpush.msrb.mxu2 %v656_v29 }
  0x32   : > { %2453 = vmatmul.msk.f32.gmra.mxu0 %vm446_vm0, %v416_v6  ;;  %v929_v6 = vld [vmem:[%s4118_s9 + $0x78] sm:$0xff] }
  0x34   : > { %2491 = vmatmul.msk.f32.gmra.mxu3 %vm446_vm0, %v924_v52  ;;  %v792_v52 = vld [vmem:[%s4113_s4 + $0x38] sm:$0xff] }
  0x35   : > { %2477 = vmatmul.msk.f32.gmra.mxu2 %vm446_vm0, %v440_v61  ;;  %v944_v61 = vld [vmem:[%s4118_s9 + $0xf0] sm:$0xff] }
  0x3a   : > { %2454 = vmatmul.msk.f32.gmra.mxu0 %vm446_vm0, %v417_v7  ;;  %v443_v7 = vld [vmem:[%s2910_s27 + $0xf8] sm:$0xff] }
  0x3c   : > { %2492 = vmatmul.msk.f32.gmra.mxu3 %vm446_vm0, %v925_v56  ;;  %v943_v56 = vld [vmem:[%s4118_s9 + $0xe8] sm:$0xff] }
  0x3d   : > { %2478 = vmatmul.msk.f32.gmra.mxu2 %vm446_vm0, %v441_v1  ;;  %v945_v1 = vld [vmem:[%s4118_s9 + $0xf8] sm:$0xff] }
  0x42   : > { %2455 = vmatmul.msk.f32.gmra.mxu0 %vm446_vm0, %v418_v8 }
  0x44   : > { %2493 = vmatmul.msk.f32.gmra.mxu3 %vm446_vm0, %v926_v60  ;;  %v789_v60 = vld [vmem:[%s4113_s4 + $0x20] sm:$0xff] }
  0x45   : > { %2479 = vmatmul.msk.f32.gmra.mxu2 %vm446_vm0, %v442_v4 }
  0x4a   : > { %2456 = vmatmul.msk.f32.gmra.mxu0 %vm446_vm0, %v419_v9  ;;  %v930_v9 = vld [vmem:[%s4118_s9 + $0x80] sm:$0xff] }
  0x4c   : > { %2494 = vmatmul.msk.f32.gmra.mxu3 %vm446_vm0, %v927_v0  ;;  %v788_v0 = vld [vmem:[%s4113_s4 + $0x18] sm:$0xff] }
  0x4d   : > { %2480 = vmatmul.msk.f32.gmra.mxu2 %vm446_vm0, %v443_v7  ;;  %v785_v7 = vld [vmem:[%s4113_s4] sm:$0xff] }
  0x52   : > { %2457 = vmatmul.msk.f32.gmra.mxu0 %vm446_vm0, %v420_v11  ;;  %v931_v11 = vld [vmem:[%s4118_s9 + $0x88] sm:$0xff] }
  0x54   : > { %2495 = vmatmul.msk.f32.gmra.mxu3 %vm446_vm0, %v928_v3  ;;  %v787_v3 = vld [vmem:[%s4113_s4 + $0x10] sm:$0xff] }
  0x5a   : > { %2458 = vmatmul.msk.f32.gmra.mxu0 %vm446_vm0, %v421_v16 }
  0x5c   : > { %2496 = vmatmul.msk.f32.gmra.mxu3 %vm446_vm0, %v929_v6  ;;  %v786_v6 = vld [vmem:[%s4113_s4 + $0x8] sm:$0xff] }
  0x62   : > { %2459 = vmatmul.msk.f32.gmra.mxu0 %vm446_vm0, %v422_v21  ;;  %v936_v21 = vld [vmem:[%s4118_s9 + $0xb0] sm:$0xff] }
  0x64   : > { %2497 = vmatmul.msk.f32.gmra.mxu3 %vm446_vm0, %v930_v9 }
  0x6a   : > { %2460 = vmatmul.msk.f32.gmra.mxu0 %vm446_vm0, %v423_v26  ;;  %v800_v26 = vld [vmem:[%s4113_s4 + $0x78] sm:$0xff] }
  0x6b   : > { %801 = vmatpush.msra.mxu2 %v800_v26 }
  0x6c   : > { %2498 = vmatmul.msk.f32.gmra.mxu3 %vm446_vm0, %v931_v11 }
  0x6d   : > { %802 = vmatpush.msra.mxu2 %v799_v28 }
  0x72   : > { %2461 = vmatmul.msk.f32.gmra.mxu0 %vm446_vm0, %v424_v30  ;;  %v798_v30 = vld [vmem:[%s4113_s4 + $0x68] sm:$0xff] }
  0x73   : > { %803 = vmatpush.msra.mxu2 %v798_v30 }
  0x74   : > { %2499 = vmatmul.msk.f32.gmra.mxu3 %vm446_vm0, %v932_v13 }
  0x7a   : > { %2462 = vmatmul.msk.f32.gmra.mxu0 %vm446_vm0, %v425_v31  ;;  %v939_v31 = vld [vmem:[%s4118_s9 + $0xc8] sm:$0xff] }
  0x7c   : > { %2500 = vmatmul.msk.f32.gmra.mxu3 %vm446_vm0, %v933_v15 }
  0x82   : > { %2463 = vmatmul.msk.f32.gmra.mxu0 %vm446_vm0, %v426_v32 }
  0x84   : > { %2501 = vmatmul.msk.f32.gmra.mxu3 %vm446_vm0, %v934_v17 }
  0x8a   : > { %2464 = vmatmul.msk.f32.gmra.mxu0 %vm446_vm0, %v427_v33  ;;  %v797_v33 = vld [vmem:[%s4113_s4 + $0x60] sm:$0xff] }
  0x8b   : > { %804 = vmatpush.msra.mxu2 %v797_v33 }
  0x8c   : > { %2502 = vmatmul.msk.f32.gmra.mxu3 %vm446_vm0, %v935_v19 }
  0x8f   : > { %v2994_v34 = vpop.f32.mrf.mxu0 }
  0x90   : > { %4166 = vst [vmem:[#allocation2_spill] sm:$0xff] %v2994_v34  ;;  %688 = vmatmul.f32.vlgmr.msra.gmra.mxu1 %v2994_v34 }
  0x92   : > { %2465 = vmatmul.msk.f32.gmra.mxu0 %vm446_vm0, %v428_v35  ;;  %v796_v35 = vld [vmem:[%s4113_s4 + $0x58] sm:$0xff] }
  0x93   : > { %805 = vmatpush.msra.mxu2 %v796_v35 }
  0x94   : > { %2503 = vmatmul.msk.f32.gmra.mxu3 %vm446_vm0, %v936_v21 }
  0x95   : > { %806 = vmatpush.msra.mxu2 %v795_v42 }
  0x97   : > { %v2999_v36 = vpop.f32.mrf.mxu0  ;;  %807 = vmatpush.msra.mxu2 %v794_v45 }
  0x98   : > { %4167 = vst [vmem:[#allocation3_spill] sm:$0xff] %v2999_v36  ;;  %691 = vmatmul.f32.gmra.mxu1 %v2999_v36 }
  0x99   : > { %808 = vmatpush.msra.mxu2 %v793_v49  ;;  %v1527_v49 = vld [vmem:[%s4115_s6 + $0x70] sm:$0xff] }
  0x9a   : > { %2466 = vmatmul.msk.f32.gmra.mxu0 %vm446_vm0, %v429_v37  ;;  %v940_v37 = vld [vmem:[%s4118_s9 + $0xd0] sm:$0xff] }
  0x9b   : > { %809 = vmatpush.msra.mxu2 %v792_v52 }
  0x9c   : > { %2504 = vmatmul.msk.f32.gmra.mxu3 %vm446_vm0, %v937_v24 }
  0x9f   : > { %v3009_v39 = vpop.f32.mrf.mxu0  ;;  %v3262_v4 = vpop.f32.mrf.mxu3 }
  0xa0   : > { %4168 = vst [vmem:[#allocation4_spill] sm:$0xff] %v3009_v39  ;;  %694 = vmatmul.f32.gmra.mxu1 %v3009_v39 }
  0xa2   : > { %2467 = vmatmul.msk.f32.gmra.mxu0 %vm446_vm0, %v430_v40 }
  0xa4   : > { %2505 = vmatmul.msk.f32.gmra.mxu3 %vm446_vm0, %v938_v27 }
  0xa7   : > { %v3022_v43 = vpop.f32.mrf.mxu0 }
  0xa8   : > { %4169 = vst [vmem:[#allocation5_spill] sm:$0xff] %v3022_v43  ;;  %697 = vmatmul.f32.gmra.mxu1 %v3022_v43 }
  0xaa   : > { %2468 = vmatmul.msk.f32.gmra.mxu0 %vm446_vm0, %v431_v44  ;;  %v941_v44 = vld [vmem:[%s4118_s9 + $0xd8] sm:$0xff] }
  0xac   : > { %2506 = vmatmul.msk.f32.gmra.mxu3 %vm446_vm0, %v939_v31 }
  0xaf   : > { %v3031_v46 = vpop.f32.mrf.mxu0 }
  0xb0   : > { %4170 = vst [vmem:[#allocation6_spill] sm:$0xff] %v3031_v46  ;;  %700 = vmatmul.f32.gmra.mxu1 %v3031_v46 }
  0xb2   : > { %2469 = vmatmul.msk.f32.gmra.mxu0 %vm446_vm0, %v432_v47  ;;  %v3211_v47 = vpop.f32.mrf.mxu2 }
  0xb3   : > { %4190 = vst [vmem:[#allocation26_spill] sm:$0xff] %v3211_v47 }
  0xb4   : > { %2507 = vmatmul.msk.f32.gmra.mxu3 %vm446_vm0, %v940_v37 }
  0xb7   : > { %v3042_v50 = vpop.f32.mrf.mxu0 }
  0xb8   : > { %4171 = vst [vmem:[#allocation7_spill] sm:$0xff] %v3042_v50  ;;  %703 = vmatmul.f32.gmra.mxu1 %v3042_v50 }
  0xba   : > { %2470 = vmatmul.msk.f32.gmra.mxu0 %vm446_vm0, %v433_v51  ;;  %v942_v51 = vld [vmem:[%s4118_s9 + $0xe0] sm:$0xff]  ;;  %v3227_v53 = vpop.f32.mrf.mxu2 }
  0xbb   : > { %4192 = vst [vmem:[#allocation28_spill] sm:$0xff] %v3227_v53 }
  0xbc   : > { %2508 = vmatmul.msk.f32.gmra.mxu3 %vm446_vm0, %v941_v44  ;;  %v1528_v44 = vld [vmem:[%s4115_s6 + $0x78] sm:$0xff] }
  0xbd   : > { %1529 = vmatpush.msrb.mxu0 %v1528_v44  ;;  %v914_v44 = vld [vmem:[%s4118_s9] sm:$0xff] }
  0xbf   : > { %v3053_v54 = vpop.f32.mrf.mxu0  ;;  %1530 = vmatpush.msrb.mxu0 %v1527_v49  ;;  %v1522_v49 = vld [vmem:[%s4115_s6 + $0x48] sm:$0xff] }
  0xc0   : > { %4172 = vst [vmem:[#allocation8_spill] sm:$0xff] %v3053_v54  ;;  %706 = vmatmul.f32.gmra.mxu1 %v3053_v54 }
  0xc2   : > { %2471 = vmatmul.msk.f32.gmra.mxu0 %vm446_vm0, %v434_v55  ;;  %v791_v55 = vld [vmem:[%s4113_s4 + $0x30] sm:$0xff] }
  0xc3   : > { %810 = vmatpush.msra.mxu2 %v791_v55  ;;  %v1526_v55 = vld [vmem:[%s4115_s6 + $0x68] sm:$0xff] }
  0xc4   : > { %2509 = vmatmul.msk.f32.gmra.mxu3 %vm446_vm0, %v942_v51  ;;  %1531 = vmatpush.msrb.mxu0 %v1526_v55 }
  0xc5   : > { %811 = vmatpush.msra.mxu2 %v790_v57  ;;  %v1525_v57 = vld [vmem:[%s4115_s6 + $0x60] sm:$0xff] }
  0xc6   : > { %1532 = vmatpush.msrb.mxu0 %v1525_v57  ;;  %v915_v57 = vld [vmem:[%s4118_s9 + $0x8] sm:$0xff] }
  0xc7   : > { %v3064_v58 = vpop.f32.mrf.mxu0  ;;  %812 = vmatpush.msra.mxu2 %v789_v60 }
  0xc8   : > { %4173 = vst [vmem:[#allocation9_spill] sm:$0xff] %v3064_v58  ;;  %709 = vmatmul.f32.gmra.mxu1 %v3064_v58 }
  0xc9   : > { %813 = vmatpush.msra.mxu2 %v788_v0  ;;  %v1524_v0 = vld [vmem:[%s4115_s6 + $0x58] sm:$0xff] }
  0xca   : > { %2472 = vmatmul.msk.f32.gmra.mxu0 %vm446_vm0, %v435_v59  ;;  %v3240_v59 = vpop.f32.mrf.mxu2 }
  0xcb   : > { %4193 = vst [vmem:[#allocation29_spill] sm:$0xff] %v3240_v59  ;;  %814 = vmatpush.msra.mxu2 %v787_v3  ;;  %1533 = vmatpush.msrb.mxu0 %v1524_v0 }
  0xcc   : > { %2510 = vmatmul.msk.f32.gmra.mxu3 %vm446_vm0, %v943_v56 }
  0xcd   : > { %815 = vmatpush.msra.mxu2 %v786_v6  ;;  %v1523_v6 = vld [vmem:[%s4115_s6 + $0x50] sm:$0xff] }
  0xce   : > { %1534 = vmatpush.msrb.mxu0 %v1523_v6  ;;  %v916_v6 = vld [vmem:[%s4118_s9 + $0x10] sm:$0xff] }
  0xcf   : > { %v3075_v62 = vpop.f32.mrf.mxu0  ;;  %816 = vmatpush.msra.mxu2 %v785_v7 }
  0xd0   : > { %4174 = vst [vmem:[#allocation10_spill] sm:$0xff] %v3075_v62  ;;  %712 = vmatmul.f32.gmra.mxu1 %v3075_v62  ;;  %1535 = vmatpush.msrb.mxu0 %v1522_v49  ;;  %v1521_v49 = vld [vmem:[%s4115_s6 + $0x40] sm:$0xff] }
  0xd2   : > { %2473 = vmatmul.msk.f32.gmra.mxu0 %vm446_vm0, %v436_v63  ;;  %v3250_v63 = vpop.f32.mrf.mxu2 }
  0xd3   : > { %4194 = vst [vmem:[#allocation30_spill] sm:$0xff] %v3250_v63  ;;  %1536 = vmatpush.msrb.mxu0 %v1521_v49  ;;  %v918_v49 = vld [vmem:[%s4118_s9 + $0x20] sm:$0xff] }
  0xd4   : > { %2511 = vmatmul.msk.f32.gmra.mxu3 %vm446_vm0, %v944_v61 }
  0xd7   : > { %v3086_v2 = vpop.f32.mrf.mxu0 }
  0xd8   : > { %4175 = vst [vmem:[#allocation11_spill] sm:$0xff] %v3086_v2  ;;  %715 = vmatmul.f32.gmra.mxu1 %v3086_v2 }
  0xda   : > { %v3272_v9 = vpop.f32.mrf.mxu2 }
  0xdb   : > { %4195 = vst [vmem:[#allocation31_spill] sm:$0xff] %v3272_v9 }
  0xdc   : > { %2512 = vmatmul.msk.f32.gmra.mxu3 %vm446_vm0, %v945_v1 }
  0xdf   : > { %v3095_v5 = vpop.f32.mrf.mxu0 }
  0xe0   : > { %4176 = vst [vmem:[#allocation12_spill] sm:$0xff] %v3095_v5  ;;  %718 = vmatmul.f32.gmra.mxu1 %v3095_v5 }
  0xe2   : > { %v3277_v11 = vpop.f32.mrf.mxu2 }
  0xe3   : > { %4196 = vst [vmem:[#allocation32_spill] sm:$0xff] %v3277_v11 }
  0xe7   : > { %v3104_v8 = vpop.f32.mrf.mxu0 }
  0xe8   : > { %4177 = vst [vmem:[#allocation13_spill] sm:$0xff] %v3104_v8  ;;  %721 = vmatmul.f32.gmra.mxu1 %v3104_v8 }
  0xea   : > { %v3280_v13 = vpop.f32.mrf.mxu2 }
  0xeb   : > { %4197 = vst [vmem:[#allocation33_spill] sm:$0xff] %v3280_v13 }
  0xef   : > { %v3111_v10 = vpop.f32.mrf.mxu0 }
  0xf0   : > { %4178 = vst [vmem:[#allocation14_spill] sm:$0xff] %v3111_v10  ;;  %724 = vmatmul.f32.gmra.mxu1 %v3111_v10 }
  0xf7   : > { %v3118_v12 = vpop.f32.mrf.mxu0 }
  0xf8   : > { %4179 = vst [vmem:[#allocation15_spill] sm:$0xff] %v3118_v12  ;;  %727 = vmatmul.f32.gmra.mxu1 %v3118_v12 }
  0xff   : > { %v3125_v14 = vpop.f32.mrf.mxu0 }
 0x100   : > { %4180 = vst [vmem:[#allocation16_spill] sm:$0xff] %v3125_v14  ;;  %730 = vmatmul.f32.gmra.mxu1 %v3125_v14 }
 0x107   : > { %v3132_v16 = vpop.f32.mrf.mxu0 }
 0x108   : > { %4181 = vst [vmem:[#allocation17_spill] sm:$0xff] %v3132_v16  ;;  %733 = vmatmul.f32.gmra.mxu1 %v3132_v16 }
 0x10f   : > { %v3139_v18 = vpop.f32.mrf.mxu0 }
 0x110   : > { %4182 = vst [vmem:[#allocation18_spill] sm:$0xff] %v3139_v18  ;;  %736 = vmatmul.f32.gmra.mxu1 %v3139_v18 }
 0x117   : > { %v3146_v20 = vpop.f32.mrf.mxu0 }
 0x118   : > { %4183 = vst [vmem:[#allocation19_spill] sm:$0xff] %v3146_v20  ;;  %739 = vmatmul.f32.gmra.mxu1 %v3146_v20 }
 0x11f   : > { %v3153_v22 = vpop.f32.mrf.mxu0 }
 0x120   : > { %4184 = vst [vmem:[#allocation20_spill] sm:$0xff] %v3153_v22  ;;  %742 = vmatmul.f32.gmra.mxu1 %v3153_v22 }
 0x127   : > { %v3156_v23 = vpop.f32.mrf.mxu0 }
 0x128   : > { %4185 = vst [vmem:[#allocation21_spill] sm:$0xff] %v3156_v23  ;;  %745 = vmatmul.f32.gmra.mxu1 %v3156_v23 }
 0x12f   : > { %v3163_v25 = vpop.f32.mrf.mxu0 }
 0x130   : > { %4186 = vst [vmem:[#allocation22_spill] sm:$0xff] %v3163_v25  ;;  %748 = vmatmul.f32.gmra.mxu1 %v3163_v25 }
 0x137   : > { %v3176_v29 = vpop.f32.mrf.mxu0 }
 0x138   : > { %4187 = vst [vmem:[#allocation23_spill] sm:$0xff] %v3176_v29  ;;  %751 = vmatmul.f32.gmra.mxu1 %v3176_v29 }
 0x13f   : > { %v3186_v32 = vpop.f32.mrf.mxu0 }
 0x140   : > { %4188 = vst [vmem:[#allocation24_spill] sm:$0xff] %v3186_v32  ;;  %754 = vmatmul.f32.gmra.mxu1 %v3186_v32 }
 0x147   : > { %v3199_v40 = vpop.f32.mrf.mxu0 }
 0x148   : > { %4189 = vst [vmem:[#allocation25_spill] sm:$0xff] %v3199_v40  ;;  %757 = vmatmul.f32.vlgmr.msrb.gmra.mxu2 %v3199_v40 }
 0x149   : > { %1058 = vmatpush.msrb.mxu2 %v3007_v38 }
 0x14b   : > { %1059 = vmatpush.msrb.mxu2 %v3014_v41 }
 0x14f   : > { %v3214_v48 = vpop.f32.mrf.mxu0 }
 0x150   : > { %4191 = vst [vmem:[#allocation27_spill] sm:$0xff] %v3214_v48  ;;  %760 = vmatmul.f32.gmra.mxu2 %v3214_v48 }
 0x158   : > { %763 = vmatmul.f32.gmra.mxu2 %v3211_v47 }
 0x160   : > { %766 = vmatmul.f32.gmra.mxu2 %v3227_v53 }
 0x168   : > { %769 = vmatmul.f32.gmra.mxu2 %v3240_v59 }
 0x170   : > { %772 = vmatmul.f32.gmra.mxu2 %v3250_v63 }
 0x178   : > { %775 = vmatmul.f32.gmra.mxu2 %v3272_v9 }
 0x180   : > { %778 = vmatmul.f32.gmra.mxu2 %v3277_v11 }
 0x188   : > { %781 = vmatmul.f32.gmra.mxu2 %v3280_v13 }
 0x190   : > { %817 = vmatmul.f32.vlgmr.msra.gmra.mxu2 %v2994_v34 }
 0x198   : > { %820 = vmatmul.f32.gmra.mxu2 %v2999_v36 }
 0x1a0   : > { %823 = vmatmul.f32.gmra.mxu2 %v3009_v39 }
 0x1a8   : > { %826 = vmatmul.f32.gmra.mxu2 %v3022_v43 }
 0x1b0   : > { %829 = vmatmul.f32.gmra.mxu2 %v3031_v46 }
 0x1b8   : > { %832 = vmatmul.f32.gmra.mxu2 %v3042_v50 }
 0x1c0   : > { %835 = vmatmul.f32.gmra.mxu2 %v3053_v54 }
 0x1c8   : > { %838 = vmatmul.f32.gmra.mxu2 %v3064_v58 }
 0x1cb   : > { %v3291_v38 = vpop.f32.mrf.mxu2 }
 0x1d0   : > { %841 = vmatmul.f32.gmra.mxu2 %v3075_v62 }
 0x1d3   : > { %v3294_v41 = vpop.f32.mrf.mxu2 }
 0x1d8   : > { %844 = vmatmul.f32.gmra.mxu2 %v3086_v2 }
 0x1db   : > { %v3297_v15 = vpop.f32.mrf.mxu2 }
 0x1e0   : > { %847 = vmatmul.f32.gmra.mxu2 %v3095_v5 }
 0x1e3   : > { %v3300_v17 = vpop.f32.mrf.mxu2 }
 0x1e8   : > { %850 = vmatmul.f32.gmra.mxu2 %v3104_v8 }
 0x1eb   : > { %v3303_v19 = vpop.f32.mrf.mxu2 }
 0x1f0   : > { %853 = vmatmul.f32.gmra.mxu2 %v3111_v10 }
 0x1f3   : > { %v3306_v21 = vpop.f32.mrf.mxu2 }
 0x1f8   : > { %856 = vmatmul.f32.gmra.mxu2 %v3118_v12 }
 0x1fb   : > { %v3309_v24 = vpop.f32.mrf.mxu2 }
 0x1fc   : > { %4198 = vst [vmem:[#allocation34_spill] sm:$0xff] %v3309_v24 }
 0x200   : > { %859 = vmatmul.f32.gmra.mxu2 %v3125_v14 }
 0x203   : > { %v3312_v26 = vpop.f32.mrf.mxu2 }
 0x204   : > { %4199 = vst [vmem:[#allocation35_spill] sm:$0xff] %v3312_v26 }
 0x208   : > { %862 = vmatmul.f32.gmra.mxu2 %v3132_v16 }
 0x20b   : > { %v3315_v27 = vpop.f32.mrf.mxu2 }
 0x20c   : > { %4200 = vst [vmem:[#allocation36_spill] sm:$0xff] %v3315_v27 }
 0x210   : > { %865 = vmatmul.f32.gmra.mxu2 %v3139_v18 }
 0x213   : > { %v3318_v28 = vpop.f32.mrf.mxu2 }
 0x218   : > { %868 = vmatmul.f32.gmra.mxu2 %v3146_v20  ;;  %v1513_v20 = vld [vmem:[%s4115_s6] sm:$0xff] }
 0x21b   : > { %v3321_v30 = vpop.f32.mrf.mxu2 }
 0x220   : > { %871 = vmatmul.f32.gmra.mxu2 %v3153_v22 }
 0x223   : > { %v3324_v31 = vpop.f32.mrf.mxu2 }
 0x228   : > { %874 = vmatmul.f32.gmra.mxu2 %v3156_v23 }
 0x22b   : > { %v3327_v33 = vpop.f32.mrf.mxu2 }
 0x230   : > { %877 = vmatmul.f32.gmra.mxu2 %v3163_v25 }
 0x233   : > { %v3330_v35 = vpop.f32.mrf.mxu2 }
 0x238   : > { %880 = vmatmul.f32.gmra.mxu2 %v3176_v29 }
 0x23b   : > { %v3333_v37 = vpop.f32.mrf.mxu2 }
 0x240   : > { %883 = vmatmul.f32.gmra.mxu2 %v3186_v32 }
 0x243   : > { %v3336_v42 = vpop.f32.mrf.mxu2 }
 0x248   : > { %886 = vmatmul.f32.gmra.mxu2 %v3199_v40 }
 0x24b   : > { %v3342_v45 = vpop.f32.mrf.mxu2 }
 0x250   : > { %889 = vmatmul.f32.gmra.mxu2 %v3214_v48 }
 0x253   : > { %v3348_v51 = vpop.f32.mrf.mxu2 }
 0x258   : > { %892 = vmatmul.f32.gmra.mxu2 %v3211_v47 }
 0x25b   : > { %v3351_v52 = vpop.f32.mrf.mxu2 }
 0x260   : > { %895 = vmatmul.f32.gmra.mxu2 %v3227_v53 }
 0x263   : > { %v3357_v56 = vpop.f32.mrf.mxu2 }
 0x268   : > { %898 = vmatmul.f32.gmra.mxu2 %v3240_v59 }
 0x26b   : > { %v3363_v60 = vpop.f32.mrf.mxu2 }
 0x270   : > { %901 = vmatmul.f32.gmra.mxu2 %v3250_v63  ;;  %v920_v63 = vld [vmem:[%s4118_s9 + $0x30] sm:$0xff] }
 0x273   : > { %v3366_v61 = vpop.f32.mrf.mxu2 }
 0x274   : > { %4201 = vst [vmem:[#allocation37_spill] sm:$0xff] %v3366_v61 }
 0x278   : > { %904 = vmatmul.f32.gmra.mxu2 %v3272_v9  ;;  %v919_v9 = vld [vmem:[%s4118_s9 + $0x28] sm:$0xff] }
 0x27b   : > { %v3372_v1 = vpop.f32.mrf.mxu2 }
 0x27c   : > { %4202 = vst [vmem:[#allocation38_spill] sm:$0xff] %v3372_v1 }
 0x280   : > { %907 = vmatmul.f32.gmra.mxu2 %v3277_v11 }
 0x283   : > { %v3375_v3 = vpop.f32.mrf.mxu2 }
 0x284   : > { %4203 = vst [vmem:[#allocation39_spill] sm:$0xff] %v3375_v3 }
 0x288   : > { %910 = vmatmul.f32.gmra.mxu2 %v3280_v13  ;;  %v917_v13 = vld [vmem:[%s4118_s9 + $0x18] sm:$0xff] }
 0x28b   : > { %v3381_v7 = vpop.f32.mrf.mxu2 }
 0x28c   : > { %4204 = vst [vmem:[#allocation40_spill] sm:$0xff] %v3381_v7 }
 0x290   : > { %2481 = vmatmul.msk.f32.vlgmr.msrb.gmra.mxu2 %vm446_vm0, %v914_v44 }
 0x293   : > { %v3390_v55 = vpop.f32.mrf.mxu2 }
 0x294   : > { %4205 = vst [vmem:[#allocation41_spill] sm:$0xff] %v3390_v55 }
 0x298   : > { %2482 = vmatmul.msk.f32.gmra.mxu2 %vm446_vm0, %v915_v57  ;;  %v1520_v57 = vld [vmem:[%s4115_s6 + $0x38] sm:$0xff] }
 0x299   : > { %1537 = vmatpush.msrb.mxu0 %v1520_v57  ;;  %v1519_v57 = vld [vmem:[%s4115_s6 + $0x30] sm:$0xff] }
 0x29b   : > { %v3396_v0 = vpop.f32.mrf.mxu2  ;;  %1538 = vmatpush.msrb.mxu0 %v1519_v57  ;;  %v1517_v57 = vld [vmem:[%s4115_s6 + $0x20] sm:$0xff] }
 0x29c   : > { %4206 = vst [vmem:[#allocation42_spill] sm:$0xff] %v3396_v0 }
 0x2a0   : > { %2483 = vmatmul.msk.f32.gmra.mxu2 %vm446_vm0, %v916_v6 }
 0x2a3   : > { %v3405_v44 = vpop.f32.mrf.mxu2 }
 0x2a4   : > { %4207 = vst [vmem:[#allocation43_spill] sm:$0xff] %v3405_v44 }
 0x2a8   : > { %2484 = vmatmul.msk.f32.gmra.mxu2 %vm446_vm0, %v917_v13 }
 0x2ab   : > { %v3414_v11 = vpop.f32.mrf.mxu2 }
 0x2ac   : > { %4208 = vst [vmem:[#allocation44_spill] sm:$0xff] %v3414_v11 }
 0x2b0   : > { %2485 = vmatmul.msk.f32.gmra.mxu2 %vm446_vm0, %v918_v49  ;;  %v1518_v49 = vld [vmem:[%s4115_s6 + $0x28] sm:$0xff] }
 0x2b1   : > { %1539 = vmatpush.msrb.mxu0 %v1518_v49  ;;  %v3453_v49 = vpop.f32.mrf.mxu1 }
 0x2b3   : > { %v3420_v6 = vpop.f32.mrf.mxu2  ;;  %1540 = vmatpush.msrb.mxu0 %v1517_v57 }
 0x2b4   : > { %4209 = vst [vmem:[#allocation45_spill] sm:$0xff] %v3420_v6 }
 0x2b8   : > { %2486 = vmatmul.msk.f32.gmra.mxu2 %vm446_vm0, %v919_v9  ;;  %v1930_v9 = vld [vmem:[%s4116_s7] sm:$0xff] }
 0x2b9   : > { %2043 = vmatpush.msrb.mxu3 %v1930_v9  ;;  %v3457_v40 = vpop.f32.mrf.mxu1  ;;  %v1515_v9 = vld [vmem:[%s4115_s6 + $0x10] sm:$0xff] }
 0x2bb   : > { %v3429_v13 = vpop.f32.mrf.mxu2 }
 0x2bc   : > { %4210 = vst [vmem:[#allocation46_spill] sm:$0xff] %v3429_v13 }
 0x2c0   : > { %2487 = vmatmul.msk.f32.gmra.mxu2 %vm446_vm0, %v920_v63  ;;  %v1516_v63 = vld [vmem:[%s4115_s6 + $0x18] sm:$0xff] }
 0x2c1   : > { %1541 = vmatpush.msrb.mxu0 %v1516_v63  ;;  %v3466_v29 = vpop.f32.mrf.mxu1  ;;  %v1514_v63 = vld [vmem:[%s4115_s6 + $0x8] sm:$0xff] }
 0x2c3   : > { %v3438_v59 = vpop.f32.mrf.mxu2  ;;  %1542 = vmatpush.msrb.mxu0 %v1515_v9 }
 0x2c4   : > { %4211 = vst [vmem:[#allocation47_spill] sm:$0xff] %v3438_v59 }
 0x2c5   : > { %1543 = vmatpush.msrb.mxu0 %v1514_v63  ;;  %v3491_v63 = vld [vmem:[%s4111_s2] ss:$0 sm:$0xff] }
 0x2c6   : > { %v1289_v12 = vadd.f32 %v3491_v63, %v3453_v49 }
 0x2c7   : > { %1544 = vmatpush.msrb.mxu0 %v1513_v20 }
 0x2c8   : > { %v1353_v8 = vmul.f32 0.2, %v1289_v12  ;;  %vm1321_vm1 = vcmp.ge.f32.partialorder %v1289_v12, 0.0 }
 0x2c9   : > { %v3473_v23 = vpop.f32.mrf.mxu1 }
 0x2cb   : > { %v3440_v53 = vpop.f32.mrf.mxu2 }
 0x2cc   : > { %4212 = vst [vmem:[#allocation48_spill] sm:$0xff] %v3440_v53 }
 0x2d1   : > { %v3480_v9 = vpop.f32.mrf.mxu1 }
 0x2d3   : > { %v3448_v47 = vpop.f32.mrf.mxu2 }
 0x2d4   : > { %4213 = vst [vmem:[#allocation49_spill] sm:$0xff] %v3448_v47 }
 0x2d9   : > { %v3484_v16 = vpop.f32.mrf.mxu1 }
 0x2db   : > { %v3455_v48 = vpop.f32.mrf.mxu2 }
 0x2dc   : > { %4214 = vst [vmem:[#allocation50_spill] sm:$0xff] %v3455_v48 }
 0x2e1   : > { %v3496_v5 = vpop.f32.mrf.mxu1 }
 0x2e3   : > { %v3459_v32 = vpop.f32.mrf.mxu2 }
 0x2e4   : > { %4215 = vst [vmem:[#allocation51_spill] sm:$0xff] %v3459_v32 }
 0x2e9   : > { %v3506_v50 = vpop.f32.mrf.mxu1 }
 0x2eb   : > { %v3464_v57 = vpop.f32.mrf.mxu2 }
 0x2ec   : > { %4216 = vst [vmem:[#allocation52_spill] sm:$0xff] %v3464_v57 }
 0x2f3   : > { %v3468_v25 = vpop.f32.mrf.mxu2 }
 0x2f4   : > { %4217 = vst [vmem:[#allocation53_spill] sm:$0xff] %v3468_v25  ;;  %v3503_v25 = vpop.f32.mrf.mxu3 }
 0x2fb   : > { %v3475_v22 = vpop.f32.mrf.mxu2 }
 0x2fc   : > { %4218 = vst [vmem:[#allocation54_spill] sm:$0xff] %v3475_v22  ;;  %v3500_v22 = vsel %vm1321_vm1, %v1289_v12, %v1353_v8 }
 0x303   : > { %v3482_v18 = vpop.f32.mrf.mxu2 }
 0x304   : > { %4219 = vst [vmem:[#allocation55_spill] sm:$0xff] %v3482_v18 }
 0x30b   : > { %v3486_v14 = vpop.f32.mrf.mxu2 }
 0x30c   : > { %4220 = vst [vmem:[#allocation56_spill] sm:$0xff] %v3486_v14  ;;  %v1290_v14 = vadd.f32 %v3491_v63, %v3457_v40 }
 0x30e   : > { %v1354_v54 = vmul.f32 0.2, %v1290_v14  ;;  %vm1322_vm3 = vcmp.ge.f32.partialorder %v1290_v14, 0.0 }
 0x310   : > { %v3510_v12 = vsel %vm1322_vm3, %v1290_v14, %v1354_v54 }
 0x313   : > { %v1061_v10 = vpop.f32.mrf.mxu2 }
 0x314   : > { %v1158_v20 = vadd.f32 %v1061_v10, %v3453_v49 }
 0x316   : > { %vm1190_vm2 = vcmp.ge.f32.partialorder %v1158_v20, 0.0  ;;  %v1222_v18 = vmul.f32 0.2, %v1158_v20 }
 0x318   : > { %v1254_v2 = vsel %vm1190_vm2, %v1158_v20, %v1222_v18  ;;  %v1291_v18 = vadd.f32 %v3491_v63, %v3466_v29 }
 0x319   : > { %v1417_v62 = vsub.f32 %v1254_v2, %v3500_v22 }
 0x31a   : > { %v1355_v46 = vmul.f32 0.2, %v1291_v18  ;;  %vm1323_vm5 = vcmp.ge.f32.partialorder %v1291_v18, 0.0 }
 0x31b   : > { %v1449_v58 = vmul.f32 1.442695, %v1417_v62  ;;  %v1064_v57 = vpop.f32.mrf.mxu2 }
 0x31c   : > { %v1159_v10 = vadd.f32 %v1064_v57, %v3457_v40  ;;  %v3518_v14 = vsel %vm1323_vm5, %v1291_v18, %v1355_v46  ;;  %v1293_v46 = vadd.f32 %v3491_v63, %v3480_v9 }
 0x31d   : > { %2593 = vpow2.f32 %v1449_v58  ;;  %v3514_v58 = vpop.f32.mrf.mxu3 }
 0x31e   : > { %vm1191_vm4 = vcmp.ge.f32.partialorder %v1159_v10, 0.0  ;;  %v1223_v32 = vmul.f32 0.2, %v1159_v10  ;;  %vm1325_vm9 = vcmp.ge.f32.partialorder %v1293_v46, 0.0 }
 0x320   : > { %v1255_v8 = vsel %vm1191_vm4, %v1159_v10, %v1223_v32  ;;  %v1292_v32 = vadd.f32 %v3491_v63, %v3473_v23  ;;  %v3520_v10 = vpop.f32.mrf.mxu1 }
 0x321   : > { %v1418_v2 = vsub.f32 %v1255_v8, %v3510_v12 }
 0x322   : > { %vm1324_vm7 = vcmp.ge.f32.partialorder %v1292_v32, 0.0 }
 0x323   : > { %v2594_v20 = vpop.eup %2593  ;;  %v1451_v62 = vmul.f32 1.442695, %v1418_v2  ;;  %v1067_v48 = vpop.f32.mrf.mxu2 }
 0x324   : > { %v1160_v57 = vadd.f32 %v1067_v48, %v3466_v29  ;;  %1545 = vmatmul.f32.vlgmr.msrb.gmra.mxu0 %v2594_v20  ;;  %v1356_v20 = vmul.f32 0.2, %v1292_v32 }
 0x325   : > { %2595 = vpow2.f32 %v1451_v62  ;;  %v3524_v39 = vpop.f32.mrf.mxu3 }
 0x326   : > { %vm1192_vm6 = vcmp.ge.f32.partialorder %v1160_v57, 0.0  ;;  %v1224_v47 = vmul.f32 0.2, %v1160_v57  ;;  %v3528_v18 = vsel %vm1324_vm7, %v1292_v32, %v1356_v20 }
 0x328   : > { %v1256_v54 = vsel %vm1192_vm6, %v1160_v57, %v1224_v47 }
 0x329   : > { %v1419_v8 = vsub.f32 %v1256_v54, %v3518_v14 }
 0x32b   : > { %v2596_v2 = vpop.eup %2595  ;;  %v1453_v43 = vmul.f32 1.442695, %v1419_v8  ;;  %v1070_v48 = vpop.f32.mrf.mxu2 }
 0x32c   : > { %v1161_v53 = vadd.f32 %v1070_v48, %v3473_v23  ;;  %1548 = vmatmul.f32.gmra.mxu0 %v2596_v2  ;;  %v3531_v8 = vpop.f32.mrf.mxu1  ;;  %v1357_v2 = vmul.f32 0.2, %v1293_v46 }
 0x32d   : > { %2597 = vpow2.f32 %v1453_v43 }
 0x32e   : > { %vm1193_vm8 = vcmp.ge.f32.partialorder %v1161_v53, 0.0  ;;  %v1225_v62 = vmul.f32 0.2, %v1161_v53  ;;  %v3536_v20 = vsel %vm1325_vm9, %v1293_v46, %v1357_v2 }
 0x330   : > { %v1257_v47 = vsel %vm1193_vm8, %v1161_v53, %v1225_v62  ;;  %v1294_v53 = vadd.f32 %v3491_v63, %v3484_v16  ;;  %v3538_v62 = vpop.f32.mrf.mxu3 }
 0x331   : > { %v1420_v57 = vsub.f32 %v1257_v47, %v3528_v18 }
 0x332   : > { %v1358_v6 = vmul.f32 0.2, %v1294_v53  ;;  %vm1326_vm11 = vcmp.ge.f32.partialorder %v1294_v53, 0.0 }
 0x333   : > { %v2598_v54 = vpop.eup %2597  ;;  %v1455_v59 = vmul.f32 1.442695, %v1420_v57  ;;  %v1073_v48 = vpop.f32.mrf.mxu2 }
 0x334   : > { %v1162_v43 = vadd.f32 %v1073_v48, %v3480_v9  ;;  %1551 = vmatmul.f32.gmra.mxu0 %v2598_v54  ;;  %v3546_v2 = vsel %vm1326_vm11, %v1294_v53, %v1358_v6 }
 0x335   : > { %2599 = vpow2.f32 %v1455_v59  ;;  %v3542_v59 = vpop.f32.mrf.mxu1 }
 0x336   : > { %vm1194_vm10 = vcmp.ge.f32.partialorder %v1162_v43, 0.0  ;;  %v1226_v36 = vmul.f32 0.2, %v1162_v43 }
 0x338   : > { %v1258_v32 = vsel %vm1194_vm10, %v1162_v43, %v1226_v36  ;;  %v1295_v36 = vadd.f32 %v3491_v63, %v3496_v5  ;;  %v1296_v43 = vadd.f32 %v3491_v63, %v3506_v50 }
 0x339   : > { %v1421_v47 = vsub.f32 %v1258_v32, %v3536_v20 }
 0x33a   : > { %v1359_v44 = vmul.f32 0.2, %v1295_v36  ;;  %vm1327_vm13 = vcmp.ge.f32.partialorder %v1295_v36, 0.0  ;;  %vm1328_vm15 = vcmp.ge.f32.partialorder %v1296_v43, 0.0 }
 0x33b   : > { %v2600_v57 = vpop.eup %2599  ;;  %v1457_v13 = vmul.f32 1.442695, %v1421_v47  ;;  %v1076_v34 = vpop.f32.mrf.mxu2 }
 0x33c   : > { %v1163_v54 = vadd.f32 %v1076_v34, %v3484_v16  ;;  %1554 = vmatmul.f32.gmra.mxu0 %v2600_v57  ;;  %v1165_v34 = vadd.f32 %v3262_v4, %v3506_v50  ;;  %v3553_v57 = vpop.f32.mrf.mxu3 }
 0x33d   : > { %2601 = vpow2.f32 %v1457_v13 }
 0x33e   : > { %vm1195_vm12 = vcmp.ge.f32.partialorder %v1163_v54, 0.0  ;;  %v1227_v48 = vmul.f32 0.2, %v1163_v54  ;;  %v1229_v6 = vmul.f32 0.2, %v1165_v34  ;;  %vm1197_vm1 = vcmp.ge.f32.partialorder %v1165_v34, 0.0 }
 0x340   : > { %v1259_v46 = vsel %vm1195_vm12, %v1163_v54, %v1227_v48  ;;  %v1360_v54 = vmul.f32 0.2, %v1296_v43  ;;  %v3556_v48 = vpop.f32.mrf.mxu1  ;;  %v1261_v55 = vsel %vm1197_vm1, %v1165_v34, %v1229_v6  ;;  %v1167_v6 = vadd.f32 %v3514_v58, %v3531_v8 }
 0x341   : > { %v1422_v32 = vsub.f32 %v1259_v46, %v3546_v2  ;;  %v3558_v46 = vsel %vm1327_vm13, %v1295_v36, %v1359_v44  ;;  %v1168_v58 = vadd.f32 %v3524_v39, %v3542_v59  ;;  %v1300_v39 = vadd.f32 %v3491_v63, %v3556_v48 }
 0x342   : > { %v3561_v7 = vsel %vm1328_vm15, %v1296_v43, %v1360_v54  ;;  %vm1199_vm5 = vcmp.ge.f32.partialorder %v1167_v6, 0.0 }
 0x343   : > { %v2602_v47 = vpop.eup %2601  ;;  %v1459_v13 = vmul.f32 1.442695, %v1422_v32  ;;  %v1079_v11 = vpop.f32.mrf.mxu2  ;;  %v1424_v3 = vsub.f32 %v1261_v55, %v3561_v7  ;;  %vm1200_vm7 = vcmp.ge.f32.partialorder %v1168_v58, 0.0  ;;  %vm1332_vm8 = vcmp.ge.f32.partialorder %v1300_v39, 0.0 }
 0x344   : > { %v1164_v0 = vadd.f32 %v1079_v11, %v3496_v5  ;;  %1557 = vmatmul.f32.gmra.mxu0 %v2602_v47  ;;  %v1297_v11 = vadd.f32 %v3491_v63, %v3520_v10  ;;  %v1166_v47 = vadd.f32 %v3503_v25, %v3520_v10  ;;  %v3568_v26 = vpop.f32.mrf.mxu3  ;;  %v1298_v25 = vadd.f32 %v3491_v63, %v3531_v8 }
 0x345   : > { %2603 = vpow2.f32 %v1459_v13  ;;  %v1463_v36 = vmul.f32 1.442695, %v1424_v3 }
 0x346   : > { %vm1196_vm14 = vcmp.ge.f32.partialorder %v1164_v0, 0.0  ;;  %v1228_v53 = vmul.f32 0.2, %v1164_v0  ;;  %v1230_v44 = vmul.f32 0.2, %v1166_v47  ;;  %vm1329_vm2 = vcmp.ge.f32.partialorder %v1297_v11, 0.0 }
 0x347   : > { %vm1198_vm3 = vcmp.ge.f32.partialorder %v1166_v47, 0.0  ;;  %vm1330_vm4 = vcmp.ge.f32.partialorder %v1298_v25, 0.0 }
 0x348   : > { %v1260_v4 = vsel %vm1196_vm14, %v1164_v0, %v1228_v53  ;;  %v1361_v0 = vmul.f32 0.2, %v1297_v11  ;;  %v3570_v43 = vpop.f32.mrf.mxu1  ;;  %v1262_v34 = vsel %vm1198_vm3, %v1166_v47, %v1230_v44  ;;  %v1362_v53 = vmul.f32 0.2, %v1298_v25 }
 0x349   : > { %v1423_v32 = vsub.f32 %v1260_v4, %v3558_v46  ;;  %4221 = vst [vmem:[#allocation57_spill] sm:$0xff] %v3570_v43  ;;  %v1231_v4 = vmul.f32 0.2, %v1167_v6 }
 0x34a   : > { %v3572_v54 = vsel %vm1329_vm2, %v1297_v11, %v1361_v0  ;;  %v3581_v47 = vsel %vm1330_vm4, %v1298_v25, %v1362_v53 }
 0x34b   : > { %v2604_v13 = vpop.eup %2603  ;;  %v1461_v27 = vmul.f32 1.442695, %v1423_v32  ;;  %v1263_v11 = vsel %vm1199_vm5, %v1167_v6, %v1231_v4  ;;  %v1169_v4 = vadd.f32 %v3538_v62, %v3556_v48 }
 0x34c   : > { %1560 = vmatmul.f32.gmra.mxu0 %v2604_v13  ;;  %v3579_v3 = vpop.f32.mrf.mxu3  ;;  %v1299_v13 = vadd.f32 %v3491_v63, %v3542_v59 }
 0x34d   : > { %2605 = vpow2.f32 %v1461_v27  ;;  %v1425_v27 = vsub.f32 %v1262_v34, %v3572_v54  ;;  %vm1201_vm9 = vcmp.ge.f32.partialorder %v1169_v4, 0.0 }
 0x34e   : > { %2607 = vpow2.f32 %v1463_v36  ;;  %v1426_v36 = vsub.f32 %v1263_v11, %v3581_v47  ;;  %v1363_v34 = vmul.f32 0.2, %v1299_v13  ;;  %vm1331_vm6 = vcmp.ge.f32.partialorder %v1299_v13, 0.0 }
 0x34f   : > { %v1465_v32 = vmul.f32 1.442695, %v1425_v27 }
 0x350   : > { %v3587_v44 = vpop.f32.mrf.mxu1  ;;  %v1467_v6 = vmul.f32 1.442695, %v1426_v36  ;;  %v3592_v53 = vsel %vm1331_vm6, %v1299_v13, %v1363_v34  ;;  %v1364_v13 = vmul.f32 0.2, %v1300_v39 }
 0x351   : > { %2609 = vpow2.f32 %v1465_v32  ;;  %v2188_v32 = vld [vmem:[%s4117_s8 + $0x78] sm:$0xff] }
 0x352   : > { %2611 = vpow2.f32 %v1467_v6  ;;  %2189 = vmatpush.msrb.mxu1 %v2188_v32  ;;  %2567 = vmatpush.msra.mxu2 %v2188_v32  ;;  %v3604_v62 = vsel %vm1332_vm8, %v1300_v39, %v1364_v13  ;;  %v1170_v6 = vadd.f32 %v3553_v57, %v3570_v43  ;;  %v2187_v32 = vld [vmem:[%s4117_s8 + $0x70] sm:$0xff] }
 0x353   : > { %v2606_v55 = vpop.eup %2605  ;;  %4223 = vst [vmem:[#allocation59_spill] sm:$0xff] %v3604_v62 }
 0x354   : > { %1563 = vmatmul.f32.gmra.mxu0 %v2606_v55  ;;  %v2608_v0 = vpop.eup %2607  ;;  %v1232_v55 = vmul.f32 0.2, %v1168_v58  ;;  %v3590_v25 = vpop.f32.mrf.mxu3  ;;  %2190 = vmatpush.msrb.mxu1 %v2187_v32  ;;  %vm1202_vm11 = vcmp.ge.f32.partialorder %v1170_v6, 0.0 }
 0x355   : > { %2568 = vmatpush.msra.mxu2 %v2187_v32 }
 0x356   : > { %v1264_v27 = vsel %vm1200_vm7, %v1168_v58, %v1232_v55  ;;  %v1233_v58 = vmul.f32 0.2, %v1169_v4 }
 0x357   : > { %v1427_v11 = vsub.f32 %v1264_v27, %v3592_v53 }
 0x358   : > { %v3602_v36 = vpop.f32.mrf.mxu1  ;;  %v1265_v55 = vsel %vm1201_vm9, %v1169_v4, %v1233_v58  ;;  %v1234_v4 = vmul.f32 0.2, %v1170_v6 }
 0x359   : > { %4222 = vst [vmem:[#allocation58_spill] sm:$0xff] %v3602_v36  ;;  %v1469_v34 = vmul.f32 1.442695, %v1427_v11  ;;  %v1428_v24 = vsub.f32 %v1265_v55, %v3604_v62 }
 0x35a   : > { %v1266_v57 = vsel %vm1202_vm11, %v1170_v6, %v1234_v4  ;;  %v1303_v4 = vadd.f32 %v3491_v63, %v3602_v36 }
 0x35b   : > { %2613 = vpow2.f32 %v1469_v34  ;;  %v1471_v13 = vmul.f32 1.442695, %v1428_v24  ;;  %v1171_v34 = vadd.f32 %v3568_v26, %v3587_v44  ;;  %v1172_v26 = vadd.f32 %v3579_v3, %v3602_v36 }
 0x35c   : > { %1566 = vmatmul.f32.gmra.mxu0 %v2608_v0  ;;  %v2610_v0 = vpop.eup %2609  ;;  %v1109_v27 = vpop.f32.mrf.mxu3  ;;  %vm1335_vm14 = vcmp.ge.f32.partialorder %v1303_v4, 0.0 }
 0x35d   : > { %v2612_v1 = vpop.eup %2611  ;;  %2615 = vpow2.f32 %v1471_v13  ;;  %vm1203_vm13 = vcmp.ge.f32.partialorder %v1171_v34, 0.0  ;;  %v2186_v13 = vld [vmem:[%s4117_s8 + $0x68] sm:$0xff]  ;;  %vm1204_vm15 = vcmp.ge.f32.partialorder %v1172_v26, 0.0 }
 0x35e   : > { %2191 = vmatpush.msrb.mxu1 %v2186_v13  ;;  %2569 = vmatpush.msra.mxu2 %v2186_v13 }
 0x360   : > { %v3614_v11 = vpop.f32.mrf.mxu1 }
 0x361   : > { %4224 = vst [vmem:[#allocation60_spill] sm:$0xff] %v3614_v11  ;;  %v2614_v61 = vpop.eup %2613  ;;  %v1304_v3 = vadd.f32 %v3491_v63, %v3614_v11 }
 0x363   : > { %v1368_v13 = vmul.f32 0.2, %v1304_v3  ;;  %vm1336_vm1 = vcmp.ge.f32.partialorder %v1304_v3, 0.0 }
 0x364   : > { %1569 = vmatmul.f32.gmra.mxu0 %v2610_v0  ;;  %v1301_v0 = vadd.f32 %v3491_v63, %v3570_v43  ;;  %v1112_v32 = vpop.f32.mrf.mxu3  ;;  %v1235_v43 = vmul.f32 0.2, %v1171_v34 }
 0x366   : > { %v1365_v39 = vmul.f32 0.2, %v1301_v0  ;;  %vm1333_vm10 = vcmp.ge.f32.partialorder %v1301_v0, 0.0 }
 0x368   : > { %v3616_v58 = vsel %vm1333_vm10, %v1301_v0, %v1365_v39  ;;  %v3623_v6 = vpop.f32.mrf.mxu1  ;;  %v1267_v0 = vsel %vm1203_vm13, %v1171_v34, %v1235_v43  ;;  %v1367_v43 = vmul.f32 0.2, %v1303_v4 }
 0x369   : > { %4225 = vst [vmem:[#allocation61_spill] sm:$0xff] %v3616_v58  ;;  %v1429_v55 = vsub.f32 %v1266_v57, %v3616_v58 }
 0x36a   : > { %v3635_v58 = vsel %vm1335_vm14, %v1303_v4, %v1367_v43  ;;  %v1305_v4 = vadd.f32 %v3491_v63, %v3623_v6  ;;  %vm1931_vm14 = vcmask 64512  }
 0x36b   : > { %v1473_v24 = vmul.f32 1.442695, %v1429_v55  ;;  %4227 = vst [vmem:[#allocation63_spill] sm:$0xff] %v3635_v58 }
 0x36c   : > { %1572 = vmatmul.f32.gmra.mxu0 %v2612_v1  ;;  %v1302_v1 = vadd.f32 %v3491_v63, %v3587_v44  ;;  %vm1337_vm4 = vcmp.ge.f32.partialorder %v1305_v4, 0.0 }
 0x36d   : > { %2617 = vpow2.f32 %v1473_v24 }
 0x36e   : > { %v1366_v62 = vmul.f32 0.2, %v1302_v1  ;;  %vm1334_vm12 = vcmp.ge.f32.partialorder %v1302_v1, 0.0 }
 0x370   : > { %v3625_v39 = vsel %vm1334_vm12, %v1302_v1, %v1366_v62  ;;  %v1236_v62 = vmul.f32 0.2, %v1172_v26  ;;  %v1115_v1 = vpop.f32.mrf.mxu3  ;;  %v3641_v36 = vpop.f32.mrf.mxu1 }
 0x371   : > { %4226 = vst [vmem:[#allocation62_spill] sm:$0xff] %v3625_v39  ;;  %v1430_v57 = vsub.f32 %v1267_v0, %v3625_v39 }
 0x372   : > { %v1268_v55 = vsel %vm1204_vm15, %v1172_v26, %v1236_v62  ;;  %4228 = vst [vmem:[#allocation64_spill] sm:$0xff] %v3641_v36 }
 0x373   : > { %v1475_v34 = vmul.f32 1.442695, %v1430_v57  ;;  %v1431_v0 = vsub.f32 %v1268_v55, %v3635_v58  ;;  %v1174_v57 = vadd.f32 %v1109_v27, %v3623_v6  ;;  %v1642_v27 = vadd.f32 %v3318_v28, %v3453_v49  ;;  %v2184_v28 = vld [vmem:[%s4117_s8 + $0x58] sm:$0xff] }
 0x374   : > { %1575 = vmatmul.f32.gmra.mxu0 %v2614_v61  ;;  %v2616_v61 = vpop.eup %2615 }
 0x375   : > { %v2618_v24 = vpop.eup %2617  ;;  %2619 = vpow2.f32 %v1475_v34  ;;  %v1477_v26 = vmul.f32 1.442695, %v1431_v0  ;;  %v2185_v34 = vld [vmem:[%s4117_s8 + $0x60] sm:$0xff]  ;;  %v1369_v0 = vmul.f32 0.2, %v1305_v4  ;;  %vm1206_vm3 = vcmp.ge.f32.partialorder %v1174_v57, 0.0 }
 0x376   : > { %2192 = vmatpush.msrb.mxu1 %v2185_v34  ;;  %2570 = vmatpush.msra.mxu2 %v2185_v34  ;;  %v1238_v58 = vmul.f32 0.2, %v1174_v57  ;;  %v1706_v34 = vmul.f32 0.2, %v1642_v27  ;;  %vm1674_vm5 = vcmp.ge.f32.partialorder %v1642_v27, 0.0 }
 0x377   : > { %2621 = vpow2.f32 %v1477_v26  ;;  %v1175_v26 = vadd.f32 %v1112_v32, %v3641_v36  ;;  %v1643_v32 = vadd.f32 %v3321_v30, %v3457_v40 }
 0x378   : > { %v1118_v43 = vpop.f32.mrf.mxu3  ;;  %2193 = vmatpush.msrb.mxu1 %v2184_v28  ;;  %2571 = vmatpush.msra.mxu2 %v2184_v28 }
 0x379   : > { %vm1207_vm6 = vcmp.ge.f32.partialorder %v1175_v26, 0.0  ;;  %v1707_v28 = vmul.f32 0.2, %v1643_v32  ;;  %vm1675_vm8 = vcmp.ge.f32.partialorder %v1643_v32, 0.0 }
 0x37c   : > { %1578 = vmatmul.f32.gmra.mxu0 %v2616_v61  ;;  %v1173_v61 = vadd.f32 %v3590_v25, %v3614_v11  ;;  %v3647_v25 = vsel %vm1336_vm1, %v1304_v3, %v1368_v13  ;;  %v3653_v11 = vpop.f32.mrf.mxu1  ;;  %v1270_v3 = vsel %vm1206_vm3, %v1174_v57, %v1238_v58  ;;  %v1306_v13 = vadd.f32 %v3491_v63, %v3641_v36 }
 0x37d   : > { %4229 = vst [vmem:[#allocation65_spill] sm:$0xff] %v3647_v25  ;;  %v1239_v58 = vmul.f32 0.2, %v1175_v26 }
 0x37e   : > { %v1237_v39 = vmul.f32 0.2, %v1173_v61  ;;  %vm1205_vm2 = vcmp.ge.f32.partialorder %v1173_v61, 0.0  ;;  %v1370_v49 = vmul.f32 0.2, %v1306_v13  ;;  %vm1338_vm7 = vcmp.ge.f32.partialorder %v1306_v13, 0.0 }
 0x380   : > { %v1269_v62 = vsel %vm1205_vm2, %v1173_v61, %v1237_v39  ;;  %v3657_v61 = vsel %vm1337_vm4, %v1305_v4, %v1369_v0  ;;  %v1738_v4 = vsel %vm1674_vm5, %v1642_v27, %v1706_v34  ;;  %v1176_v0 = vadd.f32 %v1115_v1, %v3653_v11 }
 0x381   : > { %v1432_v55 = vsub.f32 %v1269_v62, %v3647_v25  ;;  %4230 = vst [vmem:[#allocation66_spill] sm:$0xff] %v3657_v61  ;;  %v1433_v25 = vsub.f32 %v1270_v3, %v3657_v61  ;;  %v3676_v61 = vsel %vm1338_vm7, %v1306_v13, %v1370_v49 }
 0x382   : > { %v1240_v40 = vmul.f32 0.2, %v1176_v0  ;;  %vm1208_vm9 = vcmp.ge.f32.partialorder %v1176_v0, 0.0 }
 0x383   : > { %v1479_v39 = vmul.f32 1.442695, %v1432_v55  ;;  %v1307_v55 = vadd.f32 %v3491_v63, %v3653_v11  ;;  %v1481_v3 = vmul.f32 1.442695, %v1433_v25  ;;  %v1739_v25 = vsel %vm1675_vm8, %v1643_v32, %v1707_v28 }
 0x384   : > { %1581 = vmatmul.f32.gmra.mxu0 %v2618_v24  ;;  %v2620_v24 = vpop.eup %2619  ;;  %v3670_v57 = vpop.f32.mrf.mxu1 }
 0x385   : > { %v2622_v62 = vpop.eup %2621  ;;  %2623 = vpow2.f32 %v1479_v39  ;;  %v1770_v39 = vsub.f32 %v1738_v4, %v3500_v22  ;;  %v1371_v34 = vmul.f32 0.2, %v1307_v55  ;;  %vm1339_vm10 = vcmp.ge.f32.partialorder %v1307_v55, 0.0 }
 0x386   : > { %2625 = vpow2.f32 %v1481_v3  ;;  %v1644_v22 = vadd.f32 %v3324_v31, %v3466_v29  ;;  %v1308_v13 = vadd.f32 %v3491_v63, %v3670_v57  ;;  %v1177_v49 = vadd.f32 %v1118_v43, %v3670_v57  ;;  %v2183_v29 = vld [vmem:[%s4117_s8 + $0x50] sm:$0xff] }
 0x387   : > { %v1802_v1 = vmul.f32 1.442695, %v1770_v39  ;;  %2194 = vmatpush.msrb.mxu1 %v2183_v29  ;;  %2572 = vmatpush.msra.mxu2 %v2183_v29 }
 0x388   : > { %v1708_v32 = vmul.f32 0.2, %v1644_v22  ;;  %vm1676_vm11 = vcmp.ge.f32.partialorder %v1644_v22, 0.0  ;;  %v1372_v43 = vmul.f32 0.2, %v1308_v13  ;;  %vm1209_vm12 = vcmp.ge.f32.partialorder %v1177_v49, 0.0 }
 0x389   : > { %2627 = vpow2.f32 %v1802_v1  ;;  %vm1340_vm13 = vcmp.ge.f32.partialorder %v1308_v13, 0.0 }
 0x38b   : > { %v2624_v27 = vpop.eup %2623 }
 0x38c   : > { %1584 = vmatmul.f32.gmra.mxu0 %v2620_v24  ;;  %v3662_v24 = vpop.f32.mrf.mxu3  ;;  %v3688_v4 = vpop.f32.mrf.mxu1 }
 0x38d   : > { %v2626_v39 = vpop.eup %2625 }
 0x38f   : > { %v2628_v28 = vpop.eup %2627 }
 0x394   : > { %1587 = vmatmul.f32.gmra.mxu0 %v2622_v62  ;;  %v1271_v62 = vsel %vm1207_vm6, %v1175_v26, %v1239_v58  ;;  %v3678_v30 = vpop.f32.mrf.mxu3  ;;  %v1272_v26 = vsel %vm1208_vm9, %v1176_v0, %v1240_v40  ;;  %v3686_v58 = vsel %vm1339_vm10, %v1307_v55, %v1371_v34  ;;  %v1241_v55 = vmul.f32 0.2, %v1177_v49 }
 0x395   : > { %v1434_v36 = vsub.f32 %v1271_v62, %v3676_v61  ;;  %v1771_v62 = vsub.f32 %v1739_v25, %v3510_v12  ;;  %v1435_v31 = vsub.f32 %v1272_v26, %v3686_v58  ;;  %v1645_v0 = vadd.f32 %v3327_v33, %v3473_v23 }
 0x396   : > { %v1273_v25 = vsel %vm1209_vm12, %v1177_v49, %v1241_v55  ;;  %v1178_v26 = vadd.f32 %v3662_v24, %v3688_v4  ;;  %v2182_v49 = vld [vmem:[%s4117_s8 + $0x48] sm:$0xff] }
 0x397   : > { %v1483_v3 = vmul.f32 1.442695, %v1434_v36  ;;  %v1804_v12 = vmul.f32 1.442695, %v1771_v62  ;;  %v1740_v36 = vsel %vm1676_vm11, %v1644_v22, %v1708_v32  ;;  %v1485_v40 = vmul.f32 1.442695, %v1435_v31  ;;  %v3706_v32 = vpop.f32.mrf.mxu1  ;;  %2195 = vmatpush.msrb.mxu1 %v2182_v49  ;;  %2573 = vmatpush.msra.mxu2 %v2182_v49 }
 0x398   : > { %v1772_v22 = vsub.f32 %v1740_v36, %v3518_v14  ;;  %v1709_v33 = vmul.f32 0.2, %v1645_v0  ;;  %vm1677_vm15 = vcmp.ge.f32.partialorder %v1645_v0, 0.0  ;;  %v1242_v24 = vmul.f32 0.2, %v1178_v26 }
 0x399   : > { %vm1210_vm1 = vcmp.ge.f32.partialorder %v1178_v26, 0.0 }
 0x39a   : > { %v1806_v14 = vmul.f32 1.442695, %v1772_v22  ;;  %v1741_v31 = vsel %vm1677_vm15, %v1645_v0, %v1709_v33 }
 0x39b   : > { %v1773_v0 = vsub.f32 %v1741_v31, %v3528_v18 }
 0x39c   : > { %1590 = vmatmul.f32.gmra.mxu0 %v2624_v27  ;;  %v3697_v34 = vpop.f32.mrf.mxu3 }
 0x39d   : > { %v1808_v18 = vmul.f32 1.442695, %v1773_v0 }
 0x3a1   : > { %v1546_v27 = vpop.f32.mrf.mxu0 }
 0x3a2   : > { %2629 = vrcp.f32 %v1546_v27  ;;  %v3701_v27 = vsel %vm1340_vm13, %v1308_v13, %v1372_v43  ;;  %v1646_v43 = vadd.f32 %v3330_v35, %v3480_v9 }
 0x3a3   : > { %2631 = vpow2.f32 %v1483_v3  ;;  %v1309_v3 = vadd.f32 %v3491_v63, %v3688_v4  ;;  %v1436_v13 = vsub.f32 %v1273_v25, %v3701_v27  ;;  %v1179_v25 = vadd.f32 %v3678_v30, %v3706_v32  ;;  %v2181_v30 = vld [vmem:[%s4117_s8 + $0x40] sm:$0xff] }
 0x3a4   : > { %1593 = vmatmul.f32.gmra.mxu0 %v2626_v39  ;;  %2633 = vpow2.f32 %v1804_v12  ;;  %v1130_v12 = vpop.f32.mrf.mxu3  ;;  %v1710_v35 = vmul.f32 0.2, %v1646_v43  ;;  %vm1678_vm3 = vcmp.ge.f32.partialorder %v1646_v43, 0.0  ;;  %2196 = vmatpush.msrb.mxu1 %v2181_v30 }
 0x3a5   : > { %v1373_v29 = vmul.f32 0.2, %v1309_v3  ;;  %vm1341_vm2 = vcmp.ge.f32.partialorder %v1309_v3, 0.0  ;;  %v1243_v33 = vmul.f32 0.2, %v1179_v25  ;;  %vm1211_vm4 = vcmp.ge.f32.partialorder %v1179_v25, 0.0  ;;  %2574 = vmatpush.msra.mxu2 %v2181_v30 }
 0x3a6   : > { %v1181_v30 = vadd.f32 %v1130_v12, %v3291_v38 }
 0x3a8   : > { %v2630_v1 = vpop.eup %2629  ;;  %vm1213_vm10 = vcmp.ge.f32.partialorder %v1181_v30, 0.0 }
 0x3a9   : > { %v1898_v62 = vmul.f32 %v2630_v1, %v2628_v28  ;;  %v1549_v23 = vpop.f32.mrf.mxu0  ;;  %v2632_v39 = vpop.eup %2631  ;;  %v1274_v28 = vsel %vm1210_vm1, %v1178_v26, %v1242_v24  ;;  %v1310_v1 = vadd.f32 %v3491_v63, %v3706_v32  ;;  %v1742_v24 = vsel %vm1678_vm3, %v1646_v43, %v1710_v35 }
 0x3aa   : > { %2635 = vrcp.f32 %v1549_v23  ;;  %v2634_v55 = vpop.eup %2633  ;;  %v1774_v0 = vsub.f32 %v1742_v24, %v3536_v20  ;;  %v1648_v20 = vadd.f32 %v3336_v42, %v3496_v5 }
 0x3ab   : > { %2513 = vmatmul.msk.f32.vlgmr.msrb.gmra.mxu3 %vm1931_vm14, %v1898_v62  ;;  %2637 = vpow2.f32 %v1485_v40  ;;  %v1487_v62 = vmul.f32 1.442695, %v1436_v13  ;;  %v3719_v40 = vsel %vm1341_vm2, %v1309_v3, %v1373_v29  ;;  %v1374_v26 = vmul.f32 0.2, %v1310_v1  ;;  %v3727_v3 = vpop.f32.mrf.mxu1 }
 0x3ac   : > { %1596 = vmatmul.f32.gmra.mxu0 %v2632_v39  ;;  %2639 = vpow2.f32 %v1806_v14  ;;  %v1437_v39 = vsub.f32 %v1274_v28, %v3719_v40  ;;  %vm1342_vm5 = vcmp.ge.f32.partialorder %v1310_v1, 0.0  ;;  %v1647_v13 = vadd.f32 %v3333_v37, %v3484_v16 }
 0x3ad   : > { %v1275_v14 = vsel %vm1211_vm4, %v1179_v25, %v1243_v33  ;;  %v1180_v31 = vadd.f32 %v3697_v34, %v3727_v3  ;;  %v1311_v28 = vadd.f32 %v3491_v63, %v3727_v3  ;;  %v1810_v25 = vmul.f32 1.442695, %v1774_v0 }
 0x3ae   : > { %vm1679_vm6 = vcmp.ge.f32.partialorder %v1647_v13, 0.0  ;;  %vm1680_vm9 = vcmp.ge.f32.partialorder %v1648_v20, 0.0 }
 0x3af   : > { %v1244_v37 = vmul.f32 0.2, %v1180_v31  ;;  %vm1212_vm7 = vcmp.ge.f32.partialorder %v1180_v31, 0.0  ;;  %vm1343_vm8 = vcmp.ge.f32.partialorder %v1311_v28, 0.0 }
 0x3b0   : > { %v2636_v36 = vpop.eup %2635 }
 0x3b1   : > { %v1552_v22 = vpop.f32.mrf.mxu0  ;;  %v1899_v23 = vmul.f32 %v2636_v36, %v2634_v55  ;;  %v2638_v9 = vpop.eup %2637  ;;  %v1489_v55 = vmul.f32 1.442695, %v1437_v39  ;;  %v3733_v36 = vsel %vm1342_vm5, %v1310_v1, %v1374_v26  ;;  %v1375_v1 = vmul.f32 0.2, %v1311_v28 }
 0x3b2   : > { %2641 = vrcp.f32 %v1552_v22  ;;  %v2640_v49 = vpop.eup %2639  ;;  %v1438_v34 = vsub.f32 %v1275_v14, %v3733_v36  ;;  %v1276_v33 = vsel %vm1212_vm7, %v1180_v31, %v1244_v37  ;;  %v1312_v39 = vadd.f32 %v3491_v63, %v3291_v38  ;;  %v2180_v31 = vld [vmem:[%s4117_s8 + $0x38] sm:$0xff] }
 0x3b3   : > { %2514 = vmatmul.msk.f32.gmra.mxu3 %vm1931_vm14, %v1899_v23  ;;  %2643 = vpow2.f32 %v1487_v62  ;;  %v1133_v62 = vpop.f32.mrf.mxu3  ;;  %v1711_v23 = vmul.f32 0.2, %v1647_v13  ;;  %v3745_v24 = vsel %vm1343_vm8, %v1311_v28, %v1375_v1  ;;  %v1712_v14 = vmul.f32 0.2, %v1648_v20  ;;  %2197 = vmatpush.msrb.mxu1 %v2180_v31 }
 0x3b4   : > { %1599 = vmatmul.f32.gmra.mxu0 %v2638_v9  ;;  %2645 = vpow2.f32 %v1808_v18  ;;  %v1491_v18 = vmul.f32 1.442695, %v1438_v34  ;;  %v1376_v12 = vmul.f32 0.2, %v1312_v39  ;;  %v1439_v28 = vsub.f32 %v1276_v33, %v3745_v24  ;;  %2575 = vmatpush.msra.mxu2 %v2180_v31 }
 0x3b5   : > { %v1743_v35 = vsel %vm1679_vm6, %v1647_v13, %v1711_v23  ;;  %vm1344_vm11 = vcmp.ge.f32.partialorder %v1312_v39, 0.0  ;;  %v1744_v0 = vsel %vm1680_vm9, %v1648_v20, %v1712_v14  ;;  %v1182_v37 = vadd.f32 %v1133_v62, %v3294_v41  ;;  %v2179_v62 = vld [vmem:[%s4117_s8 + $0x30] sm:$0xff] }
 0x3b6   : > { %v1493_v34 = vmul.f32 1.442695, %v1439_v28  ;;  %v3756_v1 = vsel %vm1344_vm11, %v1312_v39, %v1376_v12  ;;  %2198 = vmatpush.msrb.mxu1 %v2179_v62  ;;  %2576 = vmatpush.msra.mxu2 %v2179_v62 }
 0x3b7   : > { %vm1214_vm13 = vcmp.ge.f32.partialorder %v1182_v37, 0.0 }
 0x3b8   : > { %v2642_v29 = vpop.eup %2641 }
 0x3b9   : > { %v1555_v43 = vpop.f32.mrf.mxu0  ;;  %v1900_v22 = vmul.f32 %v2642_v29, %v2640_v49  ;;  %v2644_v16 = vpop.eup %2643  ;;  %v1775_v49 = vsub.f32 %v1743_v35, %v3546_v2  ;;  %v1776_v35 = vsub.f32 %v1744_v0, %v3558_v46 }
 0x3ba   : > { %2647 = vrcp.f32 %v1555_v43  ;;  %v2646_v9 = vpop.eup %2645  ;;  %v1649_v43 = vadd.f32 %v3342_v45, %v3506_v50  ;;  %v1246_v50 = vmul.f32 0.2, %v1182_v37 }
 0x3bb   : > { %2515 = vmatmul.msk.f32.gmra.mxu3 %vm1931_vm14, %v1900_v22  ;;  %2649 = vpow2.f32 %v1489_v55  ;;  %v1136_v42 = vpop.f32.mrf.mxu3  ;;  %v1245_v55 = vmul.f32 0.2, %v1181_v30  ;;  %v1812_v2 = vmul.f32 1.442695, %v1775_v49  ;;  %v1814_v46 = vmul.f32 1.442695, %v1776_v35 }
 0x3bc   : > { %1602 = vmatmul.f32.gmra.mxu0 %v2644_v16  ;;  %2651 = vpow2.f32 %v1810_v25  ;;  %v1313_v25 = vadd.f32 %v3491_v63, %v3294_v41  ;;  %v1713_v20 = vmul.f32 0.2, %v1649_v43  ;;  %vm1681_vm12 = vcmp.ge.f32.partialorder %v1649_v43, 0.0 }
 0x3bd   : > { %v1277_v16 = vsel %vm1213_vm10, %v1181_v30, %v1245_v55  ;;  %v1650_v49 = vadd.f32 %v3348_v51, %v3520_v10  ;;  %v1278_v14 = vsel %vm1214_vm13, %v1182_v37, %v1246_v50  ;;  %v1183_v31 = vadd.f32 %v1136_v42, %v3297_v15 }
 0x3be   : > { %v1440_v45 = vsub.f32 %v1277_v16, %v3756_v1  ;;  %v1377_v39 = vmul.f32 0.2, %v1313_v25  ;;  %vm1345_vm15 = vcmp.ge.f32.partialorder %v1313_v25, 0.0  ;;  %v1651_v16 = vadd.f32 %v3351_v52, %v3531_v8  ;;  %v2178_v52 = vld [vmem:[%s4117_s8 + $0x28] sm:$0xff] }
 0x3bf   : > { %vm1682_vm1 = vcmp.ge.f32.partialorder %v1650_v49, 0.0  ;;  %vm1215_vm2 = vcmp.ge.f32.partialorder %v1183_v31, 0.0  ;;  %2199 = vmatpush.msrb.mxu1 %v2178_v52  ;;  %2577 = vmatpush.msra.mxu2 %v2178_v52 }
 0x3c0   : > { %v2648_v26 = vpop.eup %2647  ;;  %v1495_v12 = vmul.f32 1.442695, %v1440_v45  ;;  %v3772_v28 = vsel %vm1345_vm15, %v1313_v25, %v1377_v39  ;;  %v1715_v39 = vmul.f32 0.2, %v1651_v16  ;;  %vm1683_vm4 = vcmp.ge.f32.partialorder %v1651_v16, 0.0 }
 0x3c1   : > { %v1558_v29 = vpop.f32.mrf.mxu0  ;;  %v1901_v13 = vmul.f32 %v2648_v26, %v2646_v9  ;;  %v2650_v5 = vpop.eup %2649 }
 0x3c2   : > { %2653 = vrcp.f32 %v1558_v29  ;;  %v2652_v22 = vpop.eup %2651 }
 0x3c3   : > { %2516 = vmatmul.msk.f32.gmra.mxu3 %vm1931_vm14, %v1901_v13  ;;  %2655 = vpow2.f32 %v1491_v18  ;;  %v1139_v30 = vpop.f32.mrf.mxu3  ;;  %v1745_v18 = vsel %vm1681_vm12, %v1649_v43, %v1713_v20  ;;  %v1714_v43 = vmul.f32 0.2, %v1650_v49 }
 0x3c4   : > { %1605 = vmatmul.f32.gmra.mxu0 %v2650_v5  ;;  %2657 = vpow2.f32 %v1812_v2  ;;  %v1314_v5 = vadd.f32 %v3491_v63, %v3297_v15  ;;  %v1777_v55 = vsub.f32 %v1745_v18, %v3561_v7  ;;  %v1747_v18 = vsel %vm1683_vm4, %v1651_v16, %v1715_v39 }
 0x3c5   : > { %v1746_v7 = vsel %vm1682_vm1, %v1650_v49, %v1714_v43  ;;  %v1652_v49 = vadd.f32 %v3357_v56, %v3542_v59 }
 0x3c6   : > { %v1378_v10 = vmul.f32 0.2, %v1314_v5  ;;  %v1816_v42 = vmul.f32 1.442695, %v1777_v55  ;;  %vm1346_vm3 = vcmp.ge.f32.partialorder %v1314_v5, 0.0  ;;  %v1778_v50 = vsub.f32 %v1746_v7, %v3572_v54  ;;  %v2177_v7 = vld [vmem:[%s4117_s8 + $0x20] sm:$0xff] }
 0x3c7   : > { %vm1684_vm7 = vcmp.ge.f32.partialorder %v1652_v49, 0.0  ;;  %2200 = vmatpush.msrb.mxu1 %v2177_v7  ;;  %2578 = vmatpush.msra.mxu2 %v2177_v7 }
 0x3c8   : > { %v2654_v23 = vpop.eup %2653  ;;  %v3779_v20 = vsel %vm1346_vm3, %v1314_v5, %v1378_v10  ;;  %v1818_v54 = vmul.f32 1.442695, %v1778_v50  ;;  %v3794_v5 = vld [vmem:[%s4111_s2] ss:$0 sm:$0xff] }
 0x3c9   : > { %v1561_v9 = vpop.f32.mrf.mxu0  ;;  %v1902_v26 = vmul.f32 %v2654_v23, %v2652_v22  ;;  %v2656_v33 = vpop.eup %2655  ;;  %v1247_v22 = vmul.f32 0.2, %v1183_v31  ;;  %v1441_v23 = vsub.f32 %v1278_v14, %v3772_v28  ;;  %v1317_v50 = vadd.f32 %v3794_v5, %v3306_v21 }
 0x3ca   : > { %2659 = vrcp.f32 %v1561_v9  ;;  %v2658_v29 = vpop.eup %2657  ;;  %v1184_v9 = vadd.f32 %v1139_v30, %v3300_v17 }
 0x3cb   : > { %2517 = vmatmul.msk.f32.gmra.mxu3 %vm1931_vm14, %v1902_v26  ;;  %2661 = vpow2.f32 %v1493_v34  ;;  %v1142_v34 = vpop.f32.mrf.mxu3  ;;  %v1279_v35 = vsel %vm1215_vm2, %v1183_v31, %v1247_v22  ;;  %v1497_v26 = vmul.f32 1.442695, %v1441_v23  ;;  %v1316_v31 = vadd.f32 %v3794_v5, %v3303_v19 }
 0x3cc   : > { %1608 = vmatmul.f32.gmra.mxu0 %v2656_v33  ;;  %2663 = vpow2.f32 %v1814_v46  ;;  %v1315_v33 = vadd.f32 %v3491_v63, %v3300_v17  ;;  %v1248_v30 = vmul.f32 0.2, %v1184_v9  ;;  %v1442_v46 = vsub.f32 %v1279_v35, %v3779_v20 }
 0x3cd   : > { %vm1216_vm5 = vcmp.ge.f32.partialorder %v1184_v9, 0.0  ;;  %v1380_v22 = vmul.f32 0.2, %v1316_v31  ;;  %vm1348_vm9 = vcmp.ge.f32.partialorder %v1316_v31, 0.0  ;;  %vm1349_vm12 = vcmp.ge.f32.partialorder %v1317_v50, 0.0 }
 0x3ce   : > { %v1379_v63 = vmul.f32 0.2, %v1315_v33  ;;  %vm1347_vm6 = vcmp.ge.f32.partialorder %v1315_v33, 0.0  ;;  %v1280_v14 = vsel %vm1216_vm5, %v1184_v9, %v1248_v30  ;;  %v1499_v55 = vmul.f32 1.442695, %v1442_v46 }
 0x3cf   : > { %v1381_v46 = vmul.f32 0.2, %v1317_v50 }
 0x3d0   : > { %v2660_v13 = vpop.eup %2659  ;;  %v3800_v56 = vsel %vm1347_vm6, %v1315_v33, %v1379_v63  ;;  %v3810_v33 = vsel %vm1348_vm9, %v1316_v31, %v1380_v22  ;;  %v4233_v31 = vld [vmem:[#allocation34_spill] sm:$0xff] }
 0x3d1   : > { %v1564_v2 = vpop.f32.mrf.mxu0  ;;  %v1903_v0 = vmul.f32 %v2660_v13, %v2658_v29  ;;  %v2662_v51 = vpop.eup %2661 }
 0x3d2   : > { %2665 = vrcp.f32 %v1564_v2  ;;  %v2664_v37 = vpop.eup %2663 }
 0x3d3   : > { %2518 = vmatmul.msk.f32.gmra.mxu3 %vm1931_vm14, %v1903_v0  ;;  %2667 = vpow2.f32 %v1495_v12  ;;  %v1185_v12 = vadd.f32 %v1142_v34, %v3303_v19  ;;  %v1145_v2 = vpop.f32.mrf.mxu3  ;;  %v1779_v0 = vsub.f32 %v1747_v18, %v3581_v47  ;;  %v4231_v18 = vld [vmem:[#allocation57_spill] sm:$0xff] }
 0x3d4   : > { %1611 = vmatmul.f32.gmra.mxu0 %v2662_v51  ;;  %2669 = vpow2.f32 %v1816_v42  ;;  %v1716_v51 = vmul.f32 0.2, %v1652_v49  ;;  %v1443_v42 = vsub.f32 %v1280_v14, %v3800_v56  ;;  %v1186_v9 = vadd.f32 %v1145_v2, %v3306_v21 }
 0x3d5   : > { %v1249_v23 = vmul.f32 0.2, %v1185_v12  ;;  %vm1217_vm8 = vcmp.ge.f32.partialorder %v1185_v12, 0.0  ;;  %v1820_v47 = vmul.f32 1.442695, %v1779_v0  ;;  %v4234_v0 = vld [vmem:[#allocation59_spill] sm:$0xff] }
 0x3d6   : > { %v1748_v16 = vsel %vm1684_vm7, %v1652_v49, %v1716_v51  ;;  %vm1218_vm11 = vcmp.ge.f32.partialorder %v1186_v9, 0.0 }
 0x3d7   : > { %v1281_v35 = vsel %vm1217_vm8, %v1185_v12, %v1249_v23  ;;  %v1318_v12 = vadd.f32 %v3794_v5, %v4233_v31  ;;  %v2176_v23 = vld [vmem:[%s4117_s8 + $0x18] sm:$0xff] }
 0x3d8   : > { %v2666_v25 = vpop.eup %2665  ;;  %v1444_v30 = vsub.f32 %v1281_v35, %v3810_v33  ;;  %2201 = vmatpush.msrb.mxu1 %v2176_v23  ;;  %2579 = vmatpush.msra.mxu2 %v2176_v23  ;;  %v4235_v35 = vld [vmem:[#allocation38_spill] sm:$0xff] }
 0x3d9   : > { %v1567_v45 = vpop.f32.mrf.mxu0  ;;  %v1904_v62 = vmul.f32 %v2666_v25, %v2664_v37  ;;  %v2668_v8 = vpop.eup %2667  ;;  %v1653_v37 = vadd.f32 %v3363_v60, %v3556_v48  ;;  %v1250_v48 = vmul.f32 0.2, %v1186_v9  ;;  %v1382_v7 = vmul.f32 0.2, %v1318_v12  ;;  %v4240_v23 = vld [vmem:[#allocation62_spill] sm:$0xff] }
 0x3da   : > { %2671 = vrcp.f32 %v1567_v45  ;;  %v2670_v29 = vpop.eup %2669  ;;  %v1780_v45 = vsub.f32 %v1748_v16, %v3592_v53  ;;  %v4232_v53 = vld [vmem:[#allocation37_spill] sm:$0xff]  ;;  %v1503_v2 = vmul.f32 1.442695, %v1444_v30  ;;  %vm1350_vm1 = vcmp.ge.f32.partialorder %v1318_v12, 0.0 }
 0x3db   : > { %2519 = vmatmul.msk.f32.gmra.mxu3 %vm1931_vm14, %v1904_v62  ;;  %2673 = vpow2.f32 %v1497_v26  ;;  %v1501_v26 = vmul.f32 1.442695, %v1443_v42  ;;  %v1717_v52 = vmul.f32 0.2, %v1653_v37  ;;  %v1148_v60 = vpop.f32.mrf.mxu3  ;;  %vm1685_vm10 = vcmp.ge.f32.partialorder %v1653_v37, 0.0 }
 0x3dc   : > { %1614 = vmatmul.f32.gmra.mxu0 %v2668_v8  ;;  %2675 = vpow2.f32 %v1818_v54  ;;  %v1822_v63 = vmul.f32 1.442695, %v1780_v45  ;;  %v1654_v49 = vadd.f32 %v4232_v53, %v4231_v18  ;;  %v1282_v14 = vsel %vm1218_vm11, %v1186_v9, %v1250_v48  ;;  %v4237_v48 = vld [vmem:[#allocation61_spill] sm:$0xff] }
 0x3dd   : > { %v1749_v54 = vsel %vm1685_vm10, %v1653_v37, %v1717_v52  ;;  %v1655_v9 = vadd.f32 %v4235_v35, %v3587_v44 }
 0x3de   : > { %v1718_v22 = vmul.f32 0.2, %v1654_v49  ;;  %vm1686_vm13 = vcmp.ge.f32.partialorder %v1654_v49, 0.0 }
 0x3df   : > { %vm1687_vm2 = vcmp.ge.f32.partialorder %v1655_v9, 0.0 }
 0x3e0   : > { %v2672_v13 = vpop.eup %2671 }
 0x3e1   : > { %v1570_v59 = vpop.f32.mrf.mxu0  ;;  %v1905_v43 = vmul.f32 %v2672_v13, %v2670_v29  ;;  %v2674_v10 = vpop.eup %2673 }
 0x3e2   : > { %2677 = vrcp.f32 %v1570_v59  ;;  %v2676_v34 = vpop.eup %2675  ;;  %v1781_v59 = vsub.f32 %v1749_v54, %v4234_v0  ;;  %v1719_v54 = vmul.f32 0.2, %v1655_v9 }
 0x3e3   : > { %2520 = vmatmul.msk.f32.gmra.mxu3 %vm1931_vm14, %v1905_v43  ;;  %2679 = vpow2.f32 %v1499_v55  ;;  %v1187_v55 = vadd.f32 %v1148_v60, %v4233_v31  ;;  %v3823_v43 = vsel %vm1349_vm12, %v1317_v50, %v1381_v46  ;;  %v1151_v37 = vpop.f32.mrf.mxu3 }
 0x3e4   : > { %1617 = vmatmul.f32.gmra.mxu0 %v2674_v10  ;;  %2681 = vpow2.f32 %v1820_v47  ;;  %v1445_v16 = vsub.f32 %v1282_v14, %v3823_v43  ;;  %v1751_v14 = vsel %vm1687_vm2, %v1655_v9, %v1719_v54  ;;  %v4244_v54 = vld [vmem:[#allocation63_spill] sm:$0xff] }
 0x3e5   : > { %v1251_v47 = vmul.f32 0.2, %v1187_v55  ;;  %vm1219_vm15 = vcmp.ge.f32.partialorder %v1187_v55, 0.0 }
 0x3e6   : > { %v1505_v52 = vmul.f32 1.442695, %v1445_v16 }
 0x3e7   : > { %v1283_v45 = vsel %vm1219_vm15, %v1187_v55, %v1251_v47  ;;  %v4239_v55 = vld [vmem:[#allocation39_spill] sm:$0xff] }
 0x3e8   : > { %v2678_v25 = vpop.eup %2677 }
 0x3e9   : > { %v1573_v62 = vpop.f32.mrf.mxu0  ;;  %v1906_v39 = vmul.f32 %v2678_v25, %v2676_v34  ;;  %v2680_v8 = vpop.eup %2679  ;;  %v1824_v34 = vmul.f32 1.442695, %v1781_v59  ;;  %v1750_v25 = vsel %vm1686_vm13, %v1654_v49, %v1718_v22  ;;  %v2175_v49 = vld [vmem:[%s4117_s8 + $0x10] sm:$0xff] }
 0x3ea   : > { %2683 = vrcp.f32 %v1573_v62  ;;  %v2682_v29 = vpop.eup %2681  ;;  %v4236_v62 = vld [vmem:[#allocation35_spill] sm:$0xff]  ;;  %v1782_v30 = vsub.f32 %v1750_v25, %v4237_v48  ;;  %2202 = vmatpush.msrb.mxu1 %v2175_v49  ;;  %2580 = vmatpush.msra.mxu2 %v2175_v49  ;;  %v4243_v48 = vld [vmem:[#allocation40_spill] sm:$0xff] }
 0x3eb   : > { %2521 = vmatmul.msk.f32.gmra.mxu3 %vm1931_vm14, %v1906_v39  ;;  %2685 = vpow2.f32 %v1501_v26  ;;  %v1188_v39 = vadd.f32 %v1151_v37, %v4236_v62  ;;  %v1319_v60 = vadd.f32 %v3794_v5, %v4236_v62  ;;  %v1154_v59 = vpop.f32.mrf.mxu3  ;;  %v4241_v37 = vld [vmem:[#allocation36_spill] sm:$0xff] }
 0x3ec   : > { %1620 = vmatmul.f32.gmra.mxu0 %v2680_v8  ;;  %2687 = vpow2.f32 %v1822_v63  ;;  %v3833_v8 = vsel %vm1350_vm1, %v1318_v12, %v1382_v7  ;;  %v4238_v12 = vld [vmem:[#allocation58_spill] sm:$0xff]  ;;  %v1189_v25 = vadd.f32 %v1154_v59, %v4241_v37  ;;  %v4245_v59 = vld [vmem:[#allocation41_spill] sm:$0xff] }
 0x3ed   : > { %v1252_v44 = vmul.f32 0.2, %v1188_v39  ;;  %v1446_v53 = vsub.f32 %v1283_v45, %v3833_v8  ;;  %vm1220_vm3 = vcmp.ge.f32.partialorder %v1188_v39, 0.0  ;;  %vm1351_vm4 = vcmp.ge.f32.partialorder %v1319_v60, 0.0 }
 0x3ee   : > { %vm1221_vm6 = vcmp.ge.f32.partialorder %v1189_v25, 0.0 }
 0x3ef   : > { %v1507_v22 = vmul.f32 1.442695, %v1446_v53 }
 0x3f0   : > { %v2684_v13 = vpop.eup %2683 }
 0x3f1   : > { %v1576_v51 = vpop.f32.mrf.mxu0  ;;  %v1907_v10 = vmul.f32 %v2684_v13, %v2682_v29  ;;  %v2686_v42 = vpop.eup %2685  ;;  %v1383_v29 = vmul.f32 0.2, %v1319_v60  ;;  %v1826_v13 = vmul.f32 1.442695, %v1782_v30 }
 0x3f2   : > { %2689 = vrcp.f32 %v1576_v51  ;;  %v2688_v26 = vpop.eup %2687 }
 0x3f3   : > { %2522 = vmatmul.msk.f32.gmra.mxu3 %vm1931_vm14, %v1907_v10  ;;  %2691 = vpow2.f32 %v1503_v2  ;;  %v1656_v2 = vadd.f32 %v4239_v55, %v4238_v12  ;;  %v1284_v10 = vsel %vm1220_vm3, %v1188_v39, %v1252_v44  ;;  %v3846_v7 = vsel %vm1351_vm4, %v1319_v60, %v1383_v29  ;;  %v4242_v60 = vld [vmem:[#allocation60_spill] sm:$0xff] }
 0x3f4   : > { %1623 = vmatmul.f32.gmra.mxu0 %v2686_v42  ;;  %2693 = vpow2.f32 %v1824_v34  ;;  %v1783_v42 = vsub.f32 %v1751_v14, %v4240_v23  ;;  %v1320_v34 = vadd.f32 %v3794_v5, %v4241_v37  ;;  %v1447_v45 = vsub.f32 %v1284_v10, %v3846_v7 }
 0x3f5   : > { %v1720_v35 = vmul.f32 0.2, %v1656_v2  ;;  %vm1688_vm5 = vcmp.ge.f32.partialorder %v1656_v2, 0.0  ;;  %v1253_v39 = vmul.f32 0.2, %v1189_v25  ;;  %v1657_v30 = vadd.f32 %v4243_v48, %v4242_v60  ;;  %v4249_v60 = vld [vmem:[#allocation66_spill] sm:$0xff] }
 0x3f6   : > { %v1384_v5 = vmul.f32 0.2, %v1320_v34  ;;  %vm1352_vm7 = vcmp.ge.f32.partialorder %v1320_v34, 0.0  ;;  %v1509_v44 = vmul.f32 1.442695, %v1447_v45  ;;  %v4248_v45 = vld [vmem:[#allocation42_spill] sm:$0xff] }
 0x3f7   : > { %v1285_v29 = vsel %vm1221_vm6, %v1189_v25, %v1253_v39  ;;  %vm1689_vm8 = vcmp.ge.f32.partialorder %v1657_v30, 0.0 }
 0x3f8   : > { %v2690_v50 = vpop.eup %2689  ;;  %v3859_v14 = vsel %vm1352_vm7, %v1320_v34, %v1384_v5 }
 0x3f9   : > { %v1579_v46 = vpop.f32.mrf.mxu0  ;;  %v1908_v63 = vmul.f32 %v2690_v50, %v2688_v26  ;;  %v2692_v18 = vpop.eup %2691  ;;  %v2174_v26 = vld [vmem:[%s4117_s8 + $0x8] sm:$0xff]  ;;  %v1828_v50 = vmul.f32 1.442695, %v1783_v42  ;;  %v4246_v42 = vld [vmem:[#allocation65_spill] sm:$0xff] }
 0x3fa   : > { %2695 = vrcp.f32 %v1579_v46  ;;  %v2694_v0 = vpop.eup %2693  ;;  %2203 = vmatpush.msrb.mxu1 %v2174_v26  ;;  %2581 = vmatpush.msra.mxu2 %v2174_v26 }
 0x3fb   : > { %2523 = vmatmul.msk.f32.gmra.mxu3 %vm1931_vm14, %v1908_v63  ;;  %2697 = vpow2.f32 %v1505_v52  ;;  %v1752_v52 = vsel %vm1688_vm5, %v1656_v2, %v1720_v35  ;;  %v1448_v2 = vsub.f32 %v1285_v29, %v3859_v14 }
 0x3fc   : > { %1626 = vmatmul.f32.gmra.mxu0 %v2692_v18  ;;  %2699 = vpow2.f32 %v1826_v13  ;;  %v1784_v18 = vsub.f32 %v1752_v52, %v4244_v54  ;;  %v1721_v13 = vmul.f32 0.2, %v1657_v30 }
 0x3fe   : > { %v1830_v55 = vmul.f32 1.442695, %v1784_v18 }
 0x400   : > { %v2696_v51 = vpop.eup %2695 }
 0x401   : > { %v1582_v47 = vpop.f32.mrf.mxu0  ;;  %v1909_v16 = vmul.f32 %v2696_v51, %v2694_v0  ;;  %v2698_v9 = vpop.eup %2697  ;;  %v1753_v0 = vsel %vm1689_vm8, %v1657_v30, %v1721_v13  ;;  %v1658_v51 = vadd.f32 %v4245_v59, %v3623_v6 }
 0x402   : > { %2701 = vrcp.f32 %v1582_v47  ;;  %v2700_v46 = vpop.eup %2699  ;;  %v1785_v47 = vsub.f32 %v1753_v0, %v4246_v42 }
 0x403   : > { %2524 = vmatmul.msk.f32.gmra.mxu3 %vm1931_vm14, %v1909_v16  ;;  %2703 = vpow2.f32 %v1507_v22  ;;  %v2173_v22 = vld [vmem:[%s4117_s8] sm:$0xff]  ;;  %v1511_v16 = vmul.f32 1.442695, %v1448_v2  ;;  %v1722_v35 = vmul.f32 0.2, %v1658_v51  ;;  %vm1690_vm9 = vcmp.ge.f32.partialorder %v1658_v51, 0.0 }
 0x404   : > { %1629 = vmatmul.f32.gmra.mxu0 %v2698_v9  ;;  %2705 = vpow2.f32 %v1828_v50  ;;  %2204 = vmatpush.msrb.mxu1 %v2173_v22  ;;  %v1832_v6 = vmul.f32 1.442695, %v1785_v47  ;;  %v4247_v50 = vld [vmem:[#allocation64_spill] sm:$0xff] }
 0x405   : > { %2582 = vmatpush.msra.mxu2 %v2173_v22  ;;  %v1754_v26 = vsel %vm1690_vm9, %v1658_v51, %v1722_v35  ;;  %v1659_v5 = vadd.f32 %v4248_v45, %v4247_v50  ;;  %v4252_v35 = vld [vmem:[#allocation45_spill] sm:$0xff] }
 0x406   : > { %v1786_v48 = vsub.f32 %v1754_v26, %v4249_v60 }
 0x407   : > { %vm1691_vm10 = vcmp.ge.f32.partialorder %v1659_v5, 0.0 }
 0x408   : > { %v2702_v63 = vpop.eup %2701  ;;  %v1834_v18 = vmul.f32 1.442695, %v1786_v48 }
 0x409   : > { %v1585_v53 = vpop.f32.mrf.mxu0  ;;  %v1910_v49 = vmul.f32 %v2702_v63, %v2700_v46  ;;  %v2704_v12 = vpop.eup %2703  ;;  %v1723_v63 = vmul.f32 0.2, %v1659_v5 }
 0x40a   : > { %2707 = vrcp.f32 %v1585_v53  ;;  %v2706_v10 = vpop.eup %2705  ;;  %v4250_v53 = vld [vmem:[#allocation43_spill] sm:$0xff] }
 0x40b   : > { %2525 = vmatmul.msk.f32.gmra.mxu3 %vm1931_vm14, %v1910_v49  ;;  %2709 = vpow2.f32 %v1509_v44  ;;  %v1755_v44 = vsel %vm1691_vm10, %v1659_v5, %v1723_v63  ;;  %v1660_v49 = vadd.f32 %v4250_v53, %v3653_v11 }
 0x40c   : > { %1632 = vmatmul.f32.gmra.mxu0 %v2704_v12  ;;  %2711 = vpow2.f32 %v1830_v55  ;;  %v1787_v12 = vsub.f32 %v1755_v44, %v3676_v61 }
 0x40d   : > { %v1724_v0 = vmul.f32 0.2, %v1660_v49  ;;  %vm1692_vm11 = vcmp.ge.f32.partialorder %v1660_v49, 0.0 }
 0x40e   : > { %v1836_v59 = vmul.f32 1.442695, %v1787_v12 }
 0x40f   : > { %v1756_v51 = vsel %vm1692_vm11, %v1660_v49, %v1724_v0 }
 0x410   : > { %v2708_v23 = vpop.eup %2707  ;;  %v1788_v11 = vsub.f32 %v1756_v51, %v3686_v58 }
 0x411   : > { %v1588_v34 = vpop.f32.mrf.mxu0  ;;  %v1911_v25 = vmul.f32 %v2708_v23, %v2706_v10  ;;  %v2710_v9 = vpop.eup %2709  ;;  %v4251_v10 = vld [vmem:[#allocation44_spill] sm:$0xff] }
 0x412   : > { %2713 = vrcp.f32 %v1588_v34  ;;  %v2712_v39 = vpop.eup %2711  ;;  %v1661_v22 = vadd.f32 %v4251_v10, %v3670_v57  ;;  %v1838_v34 = vmul.f32 1.442695, %v1788_v11  ;;  %v4253_v57 = vld [vmem:[#allocation2_spill] sm:$0xff] }
 0x413   : > { %2526 = vmatmul.msk.f32.gmra.mxu3 %vm1931_vm14, %v1911_v25  ;;  %2715 = vpow2.f32 %v1511_v16 }
 0x414   : > { %1635 = vmatmul.f32.gmra.mxu0 %v2710_v9  ;;  %2717 = vpow2.f32 %v1832_v6  ;;  %v1725_v61 = vmul.f32 0.2, %v1661_v22  ;;  %vm1693_vm12 = vcmp.ge.f32.partialorder %v1661_v22, 0.0  ;;  %v1662_v9 = vadd.f32 %v4252_v35, %v3688_v4  ;;  %v4254_v4 = vld [vmem:[#allocation46_spill] sm:$0xff] }
 0x416   : > { %v1757_v25 = vsel %vm1693_vm12, %v1661_v22, %v1725_v61  ;;  %vm1694_vm13 = vcmp.ge.f32.partialorder %v1662_v9, 0.0 }
 0x417   : > { %v1789_v58 = vsub.f32 %v1757_v25, %v3701_v27  ;;  %v4259_v25 = vld [vmem:[#allocation5_spill] sm:$0xff] }
 0x418   : > { %v2714_v52 = vpop.eup %2713 }
 0x419   : > { %v1591_v30 = vpop.f32.mrf.mxu0  ;;  %v1912_v46 = vmul.f32 %v2714_v52, %v2712_v39  ;;  %v2716_v54 = vpop.eup %2715  ;;  %v1726_v52 = vmul.f32 0.2, %v1662_v9  ;;  %v1840_v60 = vmul.f32 1.442695, %v1789_v58 }
 0x41a   : > { %2719 = vrcp.f32 %v1591_v30  ;;  %v2718_v29 = vpop.eup %2717  ;;  %v1663_v30 = vadd.f32 %v4254_v4, %v3706_v32  ;;  %v4256_v32 = vld [vmem:[#allocation47_spill] sm:$0xff] }
 0x41b   : > { %2527 = vmatmul.msk.f32.gmra.mxu3 %vm1931_vm14, %v1912_v46  ;;  %2721 = vpow2.f32 %v1834_v18  ;;  %v1758_v48 = vsel %vm1694_vm13, %v1662_v9, %v1726_v52  ;;  %v4261_v52 = vld [vmem:[#allocation6_spill] sm:$0xff] }
 0x41c   : > { %1638 = vmatmul.f32.gmra.mxu0 %v2716_v54  ;;  %v4255_v54 = vld [vmem:[#allocation3_spill] sm:$0xff]  ;;  %v1790_v27 = vsub.f32 %v1758_v48, %v3719_v40  ;;  %vm1695_vm15 = vcmp.ge.f32.partialorder %v1663_v30, 0.0 }
 0x420   : > { %v2720_v13 = vpop.eup %2719 }
 0x421   : > { %v1594_v55 = vpop.f32.mrf.mxu0  ;;  %v1913_v2 = vmul.f32 %v2720_v13, %v2718_v29  ;;  %v2722_v23 = vpop.eup %2721  ;;  %v1727_v29 = vmul.f32 0.2, %v1663_v30  ;;  %v1842_v13 = vmul.f32 1.442695, %v1790_v27 }
 0x422   : > { %2723 = vrcp.f32 %v1594_v55  ;;  %v1664_v55 = vadd.f32 %v4256_v32, %v3727_v3  ;;  %v4258_v3 = vld [vmem:[#allocation48_spill] sm:$0xff] }
 0x423   : > { %2528 = vmatmul.msk.f32.gmra.mxu3 %vm1931_vm14, %v1913_v2  ;;  %2725 = vpow2.f32 %v1836_v59  ;;  %v1759_v12 = vsel %vm1695_vm15, %v1663_v30, %v1727_v29  ;;  %v4257_v59 = vld [vmem:[#allocation4_spill] sm:$0xff] }
 0x424   : > { %v1791_v40 = vsub.f32 %v1759_v12, %v3733_v36  ;;  %vm1696_vm1 = vcmp.ge.f32.partialorder %v1664_v55, 0.0 }
 0x426   : > { %v1844_v11 = vmul.f32 1.442695, %v1791_v40 }
 0x428   : > { %v2724_v42 = vpop.eup %2723 }
 0x429   : > { %v1597_v47 = vpop.f32.mrf.mxu0  ;;  %v1914_v16 = vmul.f32 %v2724_v42, %v2722_v23  ;;  %v2726_v26 = vpop.eup %2725  ;;  %v1728_v42 = vmul.f32 0.2, %v1664_v55 }
 0x42a   : > { %2727 = vrcp.f32 %v1597_v47 }
 0x42b   : > { %2529 = vmatmul.msk.f32.gmra.mxu3 %vm1931_vm14, %v1914_v16  ;;  %2729 = vpow2.f32 %v1838_v34  ;;  %v1760_v47 = vsel %vm1696_vm1, %v1664_v55, %v1728_v42  ;;  %v1665_v16 = vadd.f32 %v4258_v3, %v3291_v38  ;;  %v4260_v38 = vld [vmem:[#allocation49_spill] sm:$0xff] }
 0x42c   : > { %v1792_v36 = vsub.f32 %v1760_v47, %v3745_v24  ;;  %v1666_v58 = vadd.f32 %v4260_v38, %v3294_v41  ;;  %v4262_v41 = vld [vmem:[#allocation50_spill] sm:$0xff] }
 0x42d   : > { %vm1697_vm2 = vcmp.ge.f32.partialorder %v1665_v16, 0.0 }
 0x42e   : > { %v2045_v6 = vpop.f32.mrf.mxu3  ;;  %vm1698_vm3 = vcmp.ge.f32.partialorder %v1666_v58, 0.0 }
 0x42f   : > { %v2141_v50 = vmul.f32 %v2045_v6, %v4253_v57  ;;  %v1729_v57 = vmul.f32 0.2, %v1665_v16 }
 0x430   : > { %v2728_v45 = vpop.eup %2727 }
 0x431   : > { %v1600_v5 = vpop.f32.mrf.mxu0  ;;  %2205 = vmatmul.f32.vlgmr.msrb.gmra.mxu1 %v2141_v50  ;;  %v1915_v39 = vmul.f32 %v2728_v45, %v2726_v26  ;;  %v2730_v63 = vpop.eup %2729  ;;  %v1846_v50 = vmul.f32 1.442695, %v1792_v36  ;;  %v1761_v45 = vsel %vm1697_vm2, %v1665_v16, %v1729_v57 }
 0x432   : > { %2731 = vrcp.f32 %v1600_v5  ;;  %v1793_v24 = vsub.f32 %v1761_v45, %v3756_v1 }
 0x433   : > { %2530 = vmatmul.msk.f32.gmra.mxu3 %vm1931_vm14, %v1915_v39  ;;  %2733 = vpow2.f32 %v1840_v60 }
 0x436   : > { %v2048_v46 = vpop.f32.mrf.mxu3 }
 0x437   : > { %v2142_v18 = vmul.f32 %v2048_v46, %v4255_v54  ;;  %v1730_v46 = vmul.f32 0.2, %v1666_v58 }
 0x438   : > { %v2732_v44 = vpop.eup %2731 }
 0x439   : > { %v1603_v53 = vpop.f32.mrf.mxu0  ;;  %2208 = vmatmul.f32.gmra.mxu1 %v2142_v18  ;;  %v1916_v49 = vmul.f32 %v2732_v44, %v2730_v63  ;;  %v2734_v0 = vpop.eup %2733  ;;  %v1848_v63 = vmul.f32 1.442695, %v1793_v24  ;;  %v1762_v54 = vsel %vm1698_vm3, %v1666_v58, %v1730_v46  ;;  %v1667_v18 = vadd.f32 %v4262_v41, %v3297_v15  ;;  %v4264_v15 = vld [vmem:[#allocation51_spill] sm:$0xff] }
 0x43a   : > { %2735 = vrcp.f32 %v1603_v53  ;;  %v4263_v53 = vld [vmem:[#allocation7_spill] sm:$0xff]  ;;  %v1794_v1 = vsub.f32 %v1762_v54, %v3772_v28 }
 0x43b   : > { %2531 = vmatmul.msk.f32.gmra.mxu3 %vm1931_vm14, %v1916_v49  ;;  %2737 = vpow2.f32 %v1842_v13  ;;  %v1731_v32 = vmul.f32 0.2, %v1667_v18  ;;  %vm1699_vm4 = vcmp.ge.f32.partialorder %v1667_v18, 0.0  ;;  %v4271_v41 = vld [vmem:[#allocation11_spill] sm:$0xff] }
 0x43c   : > { %v1850_v55 = vmul.f32 1.442695, %v1794_v1 }
 0x43e   : > { %v2051_v2 = vpop.f32.mrf.mxu3 }
 0x43f   : > { %v2143_v51 = vmul.f32 %v2051_v2, %v4257_v59  ;;  %v1763_v2 = vsel %vm1699_vm4, %v1667_v18, %v1731_v32 }
 0x440   : > { %v2736_v10 = vpop.eup %2735  ;;  %v1795_v28 = vsub.f32 %v1763_v2, %v3779_v20 }
 0x441   : > { %v1606_v22 = vpop.f32.mrf.mxu0  ;;  %2211 = vmatmul.f32.gmra.mxu1 %v2143_v51  ;;  %v1917_v23 = vmul.f32 %v2736_v10, %v2734_v0  ;;  %v2738_v34 = vpop.eup %2737  ;;  %v1668_v0 = vadd.f32 %v4264_v15, %v3300_v17  ;;  %v4265_v10 = vld [vmem:[#allocation8_spill] sm:$0xff] }
 0x442   : > { %2739 = vrcp.f32 %v1606_v22  ;;  %v1852_v47 = vmul.f32 1.442695, %v1795_v28  ;;  %v4266_v17 = vld [vmem:[#allocation52_spill] sm:$0xff] }
 0x443   : > { %2532 = vmatmul.msk.f32.gmra.mxu3 %vm1931_vm14, %v1917_v23  ;;  %2741 = vpow2.f32 %v1844_v11  ;;  %v1732_v11 = vmul.f32 0.2, %v1668_v0  ;;  %vm1700_vm5 = vcmp.ge.f32.partialorder %v1668_v0, 0.0  ;;  %v1669_v16 = vadd.f32 %v4266_v17, %v3303_v19  ;;  %v4268_v19 = vld [vmem:[#allocation53_spill] sm:$0xff] }
 0x444   : > { %v1670_v45 = vadd.f32 %v4268_v19, %v3306_v21  ;;  %v4270_v21 = vld [vmem:[#allocation54_spill] sm:$0xff]  ;;  %v4277_v19 = vld [vmem:[#allocation15_spill] sm:$0xff] }
 0x445   : > { %v1764_v3 = vsel %vm1700_vm5, %v1668_v0, %v1732_v11  ;;  %vm1701_vm6 = vcmp.ge.f32.partialorder %v1669_v16, 0.0  ;;  %v1671_v46 = vadd.f32 %v4270_v21, %v4233_v31  ;;  %v4272_v31 = vld [vmem:[#allocation55_spill] sm:$0xff]  ;;  %v3953_v21 = vld [vmem:[%s4119_s10] ss:$0 sm:$0xff] }
 0x446   : > { %v2054_v61 = vpop.f32.mrf.mxu3  ;;  %v1796_v20 = vsub.f32 %v1764_v3, %v3800_v56  ;;  %v1734_v24 = vmul.f32 0.2, %v1670_v45  ;;  %vm1702_vm7 = vcmp.ge.f32.partialorder %v1670_v45, 0.0 }
 0x447   : > { %v2144_v35 = vmul.f32 %v2054_v61, %v4259_v25  ;;  %v4267_v25 = vld [vmem:[#allocation9_spill] sm:$0xff]  ;;  %vm1703_vm8 = vcmp.ge.f32.partialorder %v1671_v46, 0.0 }
 0x448   : > { %v2740_v9 = vpop.eup %2739  ;;  %v1854_v57 = vmul.f32 1.442695, %v1796_v20 }
 0x449   : > { %v1609_v6 = vpop.f32.mrf.mxu0  ;;  %2214 = vmatmul.f32.gmra.mxu1 %v2144_v35  ;;  %v1918_v26 = vmul.f32 %v2740_v9, %v2738_v34  ;;  %v2742_v39 = vpop.eup %2741 }
 0x44a   : > { %2743 = vrcp.f32 %v1609_v6 }
 0x44b   : > { %2533 = vmatmul.msk.f32.gmra.mxu3 %vm1931_vm14, %v1918_v26  ;;  %2745 = vpow2.f32 %v1846_v50  ;;  %v1733_v26 = vmul.f32 0.2, %v1669_v16 }
 0x44d   : > { %v1765_v50 = vsel %vm1701_vm6, %v1669_v16, %v1733_v26 }
 0x44e   : > { %v2057_v5 = vpop.f32.mrf.mxu3  ;;  %v1797_v56 = vsub.f32 %v1765_v50, %v3810_v33 }
 0x44f   : > { %v2145_v60 = vmul.f32 %v2057_v5, %v4261_v52  ;;  %v4269_v5 = vld [vmem:[#allocation10_spill] sm:$0xff] }
 0x450   : > { %v2744_v48 = vpop.eup %2743 }
 0x451   : > { %v1612_v4 = vpop.f32.mrf.mxu0  ;;  %2217 = vmatmul.f32.gmra.mxu1 %v2145_v60  ;;  %v1919_v30 = vmul.f32 %v2744_v48, %v2742_v39  ;;  %v2746_v27 = vpop.eup %2745 }
 0x452   : > { %2747 = vrcp.f32 %v1612_v4  ;;  %v1856_v4 = vmul.f32 1.442695, %v1797_v56 }
 0x453   : > { %2534 = vmatmul.msk.f32.gmra.mxu3 %vm1931_vm14, %v1919_v30  ;;  %2749 = vpow2.f32 %v1848_v63  ;;  %v1766_v30 = vsel %vm1702_vm7, %v1670_v45, %v1734_v24 }
 0x454   : > { %v1798_v33 = vsub.f32 %v1766_v30, %v3823_v43 }
 0x456   : > { %v2060_v44 = vpop.f32.mrf.mxu3 }
 0x457   : > { %v2146_v49 = vmul.f32 %v2060_v44, %v4263_v53 }
 0x458   : > { %v2748_v29 = vpop.eup %2747 }
 0x459   : > { %v1615_v13 = vpop.f32.mrf.mxu0  ;;  %2220 = vmatmul.f32.gmra.mxu1 %v2146_v49  ;;  %v1920_v12 = vmul.f32 %v2748_v29, %v2746_v27  ;;  %v2750_v51 = vpop.eup %2749  ;;  %v1735_v49 = vmul.f32 0.2, %v1671_v46  ;;  %v1858_v29 = vmul.f32 1.442695, %v1798_v33 }
 0x45a   : > { %2751 = vrcp.f32 %v1615_v13  ;;  %v1672_v13 = vadd.f32 %v4272_v31, %v4236_v62  ;;  %v4274_v62 = vld [vmem:[#allocation56_spill] sm:$0xff] }
 0x45b   : > { %2535 = vmatmul.msk.f32.gmra.mxu3 %vm1931_vm14, %v1920_v12  ;;  %2753 = vpow2.f32 %v1850_v55  ;;  %v1767_v1 = vsel %vm1703_vm8, %v1671_v46, %v1735_v49  ;;  %v4273_v55 = vld [vmem:[#allocation12_spill] sm:$0xff]  ;;  %v4281_v49 = vld [vmem:[#allocation19_spill] sm:$0xff] }
 0x45c   : > { %v1799_v43 = vsub.f32 %v1767_v1, %v3833_v8  ;;  %vm1704_vm9 = vcmp.ge.f32.partialorder %v1672_v13, 0.0  ;;  %v2787_v1 = vld [vmem:[%s2910_s27 + $0x8] sm:$0xff] }
 0x45e   : > { %v2063_v59 = vpop.f32.mrf.mxu3 }
 0x45f   : > { %v2147_v40 = vmul.f32 %v2063_v59, %v4265_v10  ;;  %v1860_v10 = vmul.f32 1.442695, %v1799_v43 }
 0x460   : > { %v2752_v22 = vpop.eup %2751 }
 0x461   : > { %v1618_v23 = vpop.f32.mrf.mxu0  ;;  %2223 = vmatmul.f32.gmra.mxu1 %v2147_v40  ;;  %v1921_v42 = vmul.f32 %v2752_v22, %v2750_v51  ;;  %v2754_v34 = vpop.eup %2753  ;;  %v1736_v51 = vmul.f32 0.2, %v1672_v13  ;;  %v1673_v22 = vadd.f32 %v4274_v62, %v4241_v37  ;;  %v2789_v62 = vld [vmem:[%s2910_s27 + $0x18] sm:$0xff] }
 0x462   : > { %2755 = vrcp.f32 %v1618_v23 }
 0x463   : > { %2536 = vmatmul.msk.f32.gmra.mxu3 %vm1931_vm14, %v1921_v42  ;;  %2757 = vpow2.f32 %v1852_v47  ;;  %v1768_v40 = vsel %vm1704_vm9, %v1672_v13, %v1736_v51  ;;  %v4275_v42 = vld [vmem:[#allocation13_spill] sm:$0xff]  ;;  %v1737_v16 = vmul.f32 0.2, %v1673_v22  ;;  %vm1705_vm10 = vcmp.ge.f32.partialorder %v1673_v22, 0.0 }
 0x464   : > { %v1800_v8 = vsub.f32 %v1768_v40, %v3846_v7 }
 0x466   : > { %v2066_v61 = vpop.f32.mrf.mxu3 }
 0x467   : > { %v2148_v35 = vmul.f32 %v2066_v61, %v4267_v25  ;;  %v1862_v61 = vmul.f32 1.442695, %v1800_v8  ;;  %v2790_v8 = vld [vmem:[%s2910_s27 + $0x20] sm:$0xff] }
 0x468   : > { %v2756_v9 = vpop.eup %2755 }
 0x469   : > { %v1621_v36 = vpop.f32.mrf.mxu0  ;;  %2226 = vmatmul.f32.gmra.mxu1 %v2148_v35  ;;  %v1922_v6 = vmul.f32 %v2756_v9, %v2754_v34  ;;  %v2758_v58 = vpop.eup %2757  ;;  %v1769_v34 = vsel %vm1705_vm10, %v1673_v22, %v1737_v16  ;;  %v4276_v35 = vld [vmem:[#allocation14_spill] sm:$0xff] }
 0x46a   : > { %2759 = vrcp.f32 %v1621_v36  ;;  %v1801_v36 = vsub.f32 %v1769_v34, %v3859_v14  ;;  %v4285_v34 = vld [vmem:[#allocation23_spill] sm:$0xff] }
 0x46b   : > { %2537 = vmatmul.msk.f32.gmra.mxu3 %vm1931_vm14, %v1922_v6  ;;  %2761 = vpow2.f32 %v1854_v57 }
 0x46c   : > { %v1864_v26 = vmul.f32 1.442695, %v1801_v36 }
 0x46e   : > { %v2069_v38 = vpop.f32.mrf.mxu3 }
 0x46f   : > { %v2149_v39 = vmul.f32 %v2069_v38, %v4269_v5 }
 0x470   : > { %v2760_v52 = vpop.eup %2759 }
 0x471   : > { %v1624_v60 = vpop.f32.mrf.mxu0  ;;  %2229 = vmatmul.f32.gmra.mxu1 %v2149_v39  ;;  %v1923_v48 = vmul.f32 %v2760_v52, %v2758_v58  ;;  %v2762_v54 = vpop.eup %2761  ;;  %v4278_v52 = vld [vmem:[#allocation16_spill] sm:$0xff] }
 0x472   : > { %2763 = vrcp.f32 %v1624_v60 }
 0x473   : > { %2538 = vmatmul.msk.f32.gmra.mxu3 %vm1931_vm14, %v1923_v48  ;;  %2765 = vpow2.f32 %v1856_v4  ;;  %v4279_v4 = vld [vmem:[#allocation17_spill] sm:$0xff] }
 0x476   : > { %v2072_v63 = vpop.f32.mrf.mxu3 }
 0x477   : > { %v2150_v18 = vmul.f32 %v2072_v63, %v4271_v41 }
 0x478   : > { %v2764_v44 = vpop.eup %2763 }
 0x479   : > { %v1627_v27 = vpop.f32.mrf.mxu0  ;;  %2232 = vmatmul.f32.gmra.mxu1 %v2150_v18  ;;  %v1924_v53 = vmul.f32 %v2764_v44, %v2762_v54  ;;  %v2766_v32 = vpop.eup %2765  ;;  %v4280_v54 = vld [vmem:[#allocation18_spill] sm:$0xff] }
 0x47a   : > { %2767 = vrcp.f32 %v1627_v27  ;;  %v2786_v18 = vld [vmem:[%s2910_s27] sm:$0xff] }
 0x47b   : > { %2539 = vmatmul.msk.f32.gmra.mxu3 %vm1931_vm14, %v1924_v53  ;;  %2769 = vpow2.f32 %v1858_v29 }
 0x47e   : > { %v2075_v12 = vpop.f32.mrf.mxu3 }
 0x47f   : > { %v2151_v2 = vmul.f32 %v2075_v12, %v4273_v55  ;;  %v4282_v55 = vld [vmem:[#allocation20_spill] sm:$0xff] }
 0x480   : > { %v2768_v15 = vpop.eup %2767 }
 0x481   : > { %v1630_v0 = vpop.f32.mrf.mxu0  ;;  %2235 = vmatmul.f32.gmra.mxu1 %v2151_v2  ;;  %v1925_v59 = vmul.f32 %v2768_v15, %v2766_v32  ;;  %v2770_v23 = vpop.eup %2769  ;;  %v2788_v15 = vld [vmem:[%s2910_s27 + $0x10] sm:$0xff] }
 0x482   : > { %2771 = vrcp.f32 %v1630_v0 }
 0x483   : > { %2540 = vmatmul.msk.f32.gmra.mxu3 %vm1931_vm14, %v1925_v59  ;;  %2773 = vpow2.f32 %v1860_v10  ;;  %v4283_v10 = vld [vmem:[#allocation21_spill] sm:$0xff] }
 0x486   : > { %v2078_v28 = vpop.f32.mrf.mxu3 }
 0x487   : > { %v2152_v11 = vmul.f32 %v2078_v28, %v4275_v42 }
 0x488   : > { %v2772_v47 = vpop.eup %2771 }
 0x489   : > { %v1633_v3 = vpop.f32.mrf.mxu0  ;;  %2238 = vmatmul.f32.gmra.mxu1 %v2152_v11  ;;  %v1926_v17 = vmul.f32 %v2772_v47, %v2770_v23  ;;  %v2774_v37 = vpop.eup %2773  ;;  %v4284_v11 = vld [vmem:[#allocation22_spill] sm:$0xff] }
 0x48a   : > { %2775 = vrcp.f32 %v1633_v3 }
 0x48b   : > { %2541 = vmatmul.msk.f32.gmra.mxu3 %vm1931_vm14, %v1926_v17  ;;  %2777 = vpow2.f32 %v1862_v61 }
 0x48e   : > { %v2081_v25 = vpop.f32.mrf.mxu3 }
 0x48f   : > { %v2153_v9 = vmul.f32 %v2081_v25, %v4276_v35 }
 0x490   : > { %v2776_v20 = vpop.eup %2775 }
 0x491   : > { %v1636_v6 = vpop.f32.mrf.mxu0  ;;  %2241 = vmatmul.f32.gmra.mxu1 %v2153_v9  ;;  %v1927_v7 = vmul.f32 %v2776_v20, %v2774_v37  ;;  %v2778_v50 = vpop.eup %2777  ;;  %v2791_v37 = vld [vmem:[%s2910_s27 + $0x28] sm:$0xff] }
 0x492   : > { %2779 = vrcp.f32 %v1636_v6  ;;  %v4286_v6 = vld [vmem:[#allocation24_spill] sm:$0xff] }
 0x493   : > { %2542 = vmatmul.msk.f32.gmra.mxu3 %vm1931_vm14, %v1927_v7  ;;  %2781 = vpow2.f32 %v1864_v26  ;;  %v2792_v26 = vld [vmem:[%s2910_s27 + $0x30] sm:$0xff] }
 0x496   : > { %v2084_v57 = vpop.f32.mrf.mxu3 }
 0x497   : > { %v2154_v45 = vmul.f32 %v2084_v57, %v4277_v19 }
 0x498   : > { %v2780_v38 = vpop.eup %2779 }
 0x499   : > { %v1639_v58 = vpop.f32.mrf.mxu0  ;;  %2244 = vmatmul.f32.gmra.mxu1 %v2154_v45  ;;  %v1928_v5 = vmul.f32 %v2780_v38, %v2778_v50  ;;  %v2782_v39 = vpop.eup %2781  ;;  %v4287_v38 = vld [vmem:[#allocation25_spill] sm:$0xff] }
 0x49a   : > { %2783 = vrcp.f32 %v1639_v58 }
 0x49b   : > { %2543 = vmatmul.msk.f32.gmra.mxu3 %vm1931_vm14, %v1928_v5  ;;  %v2793_v5 = vld [vmem:[%s2910_s27 + $0x38] sm:$0xff] }
 0x49e   : > { %v2087_v14 = vpop.f32.mrf.mxu3 }
 0x49f   : > { %v2155_v56 = vmul.f32 %v2087_v14, %v4278_v52 }
 0x4a0   : > { %v2784_v60 = vpop.eup %2783 }
 0x4a1   : > { %v1929_v48 = vmul.f32 %v2784_v60, %v2782_v39  ;;  %2247 = vmatmul.f32.gmra.mxu1 %v2155_v56  ;;  %v4288_v60 = vld [vmem:[#allocation27_spill] sm:$0xff] }
 0x4a3   : > { %2544 = vmatmul.msk.f32.gmra.mxu3 %vm1931_vm14, %v1929_v48 }
 0x4a6   : > { %v2090_v24 = vpop.f32.mrf.mxu3 }
 0x4a7   : > { %v2156_v30 = vmul.f32 %v2090_v24, %v4279_v4  ;;  %v2794_v24 = vld [vmem:[%s2910_s27 + $0x40] sm:$0xff] }
 0x4a9   : > { %2250 = vmatmul.f32.gmra.mxu1 %v2156_v30 }
 0x4ae   : > { %v2093_v46 = vpop.f32.mrf.mxu3  ;;  %v2206_v63 = vpop.f32.mrf.mxu1 }
 0x4af   : > { %v2157_v41 = vmul.f32 %v2093_v46, %v4280_v54  ;;  %v2207_v44 = vadd.f32 %v2786_v18, %v2206_v63  ;;  %v4289_v54 = vld [vmem:[#allocation26_spill] sm:$0xff]  ;;  %v2795_v18 = vld [vmem:[%s2910_s27 + $0x48] sm:$0xff] }
 0x4b1   : > { %v2306_v33 = vadd.f32 %v3953_v21, %v2207_v44  ;;  %2253 = vmatmul.f32.gmra.mxu1 %v2157_v41 }
 0x4b3   : > { %2338 = vst.msk [vmem:[%s3962_s26] sm:$0xff] %vm446_vm0, %v2306_v33 }
 0x4b6   : > { %v2096_v27 = vpop.f32.mrf.mxu3  ;;  %v2209_v53 = vpop.f32.mrf.mxu1 }
 0x4b7   : > { %v2158_v29 = vmul.f32 %v2096_v27, %v4281_v49  ;;  %v2210_v31 = vadd.f32 %v2787_v1, %v2209_v53  ;;  %v4290_v49 = vld [vmem:[#allocation28_spill] sm:$0xff] }
 0x4b8   : > { %v2796_v1 = vld [vmem:[%s2910_s27 + $0x50] sm:$0xff] }
 0x4b9   : > { %v2307_v13 = vadd.f32 %v3953_v21, %v2210_v31  ;;  %2256 = vmatmul.f32.gmra.mxu1 %v2158_v29 }
 0x4bb   : > { %2339 = vst.msk [vmem:[%s3962_s26 + $0x8] sm:$0xff] %vm446_vm0, %v2307_v13 }
 0x4be   : > { %v2099_v12 = vpop.f32.mrf.mxu3  ;;  %v2212_v32 = vpop.f32.mrf.mxu1 }
 0x4bf   : > { %v2159_v2 = vmul.f32 %v2099_v12, %v4282_v55  ;;  %v2213_v43 = vadd.f32 %v2788_v15, %v2212_v32  ;;  %v4291_v55 = vld [vmem:[#allocation29_spill] sm:$0xff] }
 0x4c0   : > { %v2797_v15 = vld [vmem:[%s2910_s27 + $0x58] sm:$0xff] }
 0x4c1   : > { %v2308_v0 = vadd.f32 %v3953_v21, %v2213_v43  ;;  %2259 = vmatmul.f32.gmra.mxu1 %v2159_v2 }
 0x4c3   : > { %2340 = vst.msk [vmem:[%s3962_s26 + $0x10] sm:$0xff] %vm446_vm0, %v2308_v0 }
 0x4c6   : > { %v2102_v59 = vpop.f32.mrf.mxu3  ;;  %v2215_v51 = vpop.f32.mrf.mxu1 }
 0x4c7   : > { %v2160_v40 = vmul.f32 %v2102_v59, %v4283_v10  ;;  %v2216_v22 = vadd.f32 %v2789_v62, %v2215_v51  ;;  %v4292_v10 = vld [vmem:[#allocation30_spill] sm:$0xff] }
 0x4c8   : > { %v2798_v62 = vld [vmem:[%s2910_s27 + $0x60] sm:$0xff] }
 0x4c9   : > { %v2309_v28 = vadd.f32 %v3953_v21, %v2216_v22  ;;  %2262 = vmatmul.f32.gmra.mxu1 %v2160_v40 }
 0x4cb   : > { %2341 = vst.msk [vmem:[%s3962_s26 + $0x18] sm:$0xff] %vm446_vm0, %v2309_v28 }
 0x4ce   : > { %v2105_v23 = vpop.f32.mrf.mxu3  ;;  %v2218_v42 = vpop.f32.mrf.mxu1 }
 0x4cf   : > { %v2161_v47 = vmul.f32 %v2105_v23, %v4284_v11  ;;  %v2219_v3 = vadd.f32 %v2790_v8, %v2218_v42  ;;  %v4293_v11 = vld [vmem:[#allocation31_spill] sm:$0xff] }
 0x4d0   : > { %v2799_v8 = vld [vmem:[%s2910_s27 + $0x68] sm:$0xff] }
 0x4d1   : > { %v2310_v17 = vadd.f32 %v3953_v21, %v2219_v3  ;;  %2265 = vmatmul.f32.gmra.mxu1 %v2161_v47 }
 0x4d3   : > { %2342 = vst.msk [vmem:[%s3962_s26 + $0x20] sm:$0xff] %vm446_vm0, %v2310_v17 }
 0x4d6   : > { %v2108_v16 = vpop.f32.mrf.mxu3  ;;  %v2221_v61 = vpop.f32.mrf.mxu1 }
 0x4d7   : > { %v2162_v25 = vmul.f32 %v2108_v16, %v4285_v34  ;;  %v2222_v35 = vadd.f32 %v2791_v37, %v2221_v61  ;;  %v4294_v34 = vld [vmem:[#allocation32_spill] sm:$0xff] }
 0x4d8   : > { %v2800_v37 = vld [vmem:[%s2910_s27 + $0x70] sm:$0xff] }
 0x4d9   : > { %v2311_v9 = vadd.f32 %v3953_v21, %v2222_v35  ;;  %2268 = vmatmul.f32.gmra.mxu1 %v2162_v25 }
 0x4db   : > { %2343 = vst.msk [vmem:[%s3962_s26 + $0x28] sm:$0xff] %vm446_vm0, %v2311_v9 }
 0x4de   : > { %v2111_v20 = vpop.f32.mrf.mxu3  ;;  %v2224_v36 = vpop.f32.mrf.mxu1 }
 0x4df   : > { %v2163_v7 = vmul.f32 %v2111_v20, %v4286_v6  ;;  %v2225_v57 = vadd.f32 %v2792_v26, %v2224_v36  ;;  %v4295_v6 = vld [vmem:[#allocation33_spill] sm:$0xff] }
 0x4e0   : > { %v2801_v26 = vld [vmem:[%s2910_s27 + $0x78] sm:$0xff] }
 0x4e1   : > { %v2312_v50 = vadd.f32 %v3953_v21, %v2225_v57  ;;  %2271 = vmatmul.f32.gmra.mxu1 %v2163_v7 }
 0x4e3   : > { %2344 = vst.msk [vmem:[%s3962_s26 + $0x30] sm:$0xff] %vm446_vm0, %v2312_v50 }
 0x4e6   : > { %v2114_v19 = vpop.f32.mrf.mxu3  ;;  %v2227_v45 = vpop.f32.mrf.mxu1 }
 0x4e7   : > { %v2164_v58 = vmul.f32 %v2114_v19, %v4287_v38  ;;  %v2228_v14 = vadd.f32 %v2793_v5, %v2227_v45  ;;  %v2802_v45 = vld [vmem:[%s2910_s27 + $0x80] sm:$0xff] }
 0x4e9   : > { %v2313_v39 = vadd.f32 %v3953_v21, %v2228_v14  ;;  %2274 = vmatmul.f32.gmra.mxu1 %v2164_v58  ;;  %v2803_v14 = vld [vmem:[%s2910_s27 + $0x88] sm:$0xff] }
 0x4eb   : > { %2345 = vst.msk [vmem:[%s3962_s26 + $0x38] sm:$0xff] %vm446_vm0, %v2313_v39 }
 0x4ee   : > { %v2117_v52 = vpop.f32.mrf.mxu3  ;;  %v2230_v56 = vpop.f32.mrf.mxu1 }
 0x4ef   : > { %v2165_v48 = vmul.f32 %v2117_v52, %v4288_v60  ;;  %v2231_v4 = vadd.f32 %v2794_v24, %v2230_v56  ;;  %v2804_v60 = vld [vmem:[%s2910_s27 + $0x90] sm:$0xff] }
 0x4f1   : > { %v2314_v30 = vadd.f32 %v3953_v21, %v2231_v4  ;;  %2277 = vmatmul.f32.gmra.mxu1 %v2165_v48 }
 0x4f3   : > { %2346 = vst.msk [vmem:[%s3962_s26 + $0x40] sm:$0xff] %vm446_vm0, %v2314_v30  ;;  %v2805_v30 = vld [vmem:[%s2910_s27 + $0x98] sm:$0xff] }
 0x4f6   : > { %v2120_v46 = vpop.f32.mrf.mxu3  ;;  %v2233_v63 = vpop.f32.mrf.mxu1 }
 0x4f7   : > { %v2166_v41 = vmul.f32 %v2120_v46, %v4289_v54  ;;  %v2234_v44 = vadd.f32 %v2795_v18, %v2233_v63 }
 0x4f9   : > { %v2315_v33 = vadd.f32 %v3953_v21, %v2234_v44  ;;  %2280 = vmatmul.f32.gmra.mxu1 %v2166_v41  ;;  %v2806_v41 = vld [vmem:[%s2910_s27 + $0xa0] sm:$0xff] }
 0x4fb   : > { %2347 = vst.msk [vmem:[%s3962_s26 + $0x48] sm:$0xff] %vm446_vm0, %v2315_v33 }
 0x4fe   : > { %v2123_v27 = vpop.f32.mrf.mxu3  ;;  %v2236_v53 = vpop.f32.mrf.mxu1 }
 0x4ff   : > { %v2167_v29 = vmul.f32 %v2123_v27, %v4290_v49  ;;  %v2237_v31 = vadd.f32 %v2796_v1, %v2236_v53  ;;  %v2807_v27 = vld [vmem:[%s2910_s27 + $0xa8] sm:$0xff]  ;;  %v2808_v1 = vld [vmem:[%s2910_s27 + $0xb0] sm:$0xff] }
 0x501   : > { %v2316_v13 = vadd.f32 %v3953_v21, %v2237_v31  ;;  %2283 = vmatmul.f32.gmra.mxu1 %v2167_v29 }
 0x503   : > { %2348 = vst.msk [vmem:[%s3962_s26 + $0x50] sm:$0xff] %vm446_vm0, %v2316_v13 }
 0x506   : > { %v2126_v12 = vpop.f32.mrf.mxu3  ;;  %v2239_v32 = vpop.f32.mrf.mxu1 }
 0x507   : > { %v2168_v2 = vmul.f32 %v2126_v12, %v4291_v55  ;;  %v2240_v43 = vadd.f32 %v2797_v15, %v2239_v32  ;;  %v2809_v32 = vld [vmem:[%s2910_s27 + $0xb8] sm:$0xff] }
 0x509   : > { %v2317_v0 = vadd.f32 %v3953_v21, %v2240_v43  ;;  %2286 = vmatmul.f32.gmra.mxu1 %v2168_v2  ;;  %v2810_v43 = vld [vmem:[%s2910_s27 + $0xc0] sm:$0xff] }
 0x50b   : > { %2349 = vst.msk [vmem:[%s3962_s26 + $0x58] sm:$0xff] %vm446_vm0, %v2317_v0 }
 0x50e   : > { %v2129_v59 = vpop.f32.mrf.mxu3  ;;  %v2242_v51 = vpop.f32.mrf.mxu1 }
 0x50f   : > { %v2169_v40 = vmul.f32 %v2129_v59, %v4292_v10  ;;  %v2243_v22 = vadd.f32 %v2798_v62, %v2242_v51  ;;  %v2811_v10 = vld [vmem:[%s2910_s27 + $0xc8] sm:$0xff] }
 0x511   : > { %v2318_v28 = vadd.f32 %v3953_v21, %v2243_v22  ;;  %2289 = vmatmul.f32.gmra.mxu1 %v2169_v40 }
 0x513   : > { %2350 = vst.msk [vmem:[%s3962_s26 + $0x60] sm:$0xff] %vm446_vm0, %v2318_v28  ;;  %v2812_v28 = vld [vmem:[%s2910_s27 + $0xd0] sm:$0xff] }
 0x516   : > { %v2132_v23 = vpop.f32.mrf.mxu3  ;;  %v2245_v42 = vpop.f32.mrf.mxu1 }
 0x517   : > { %v2170_v47 = vmul.f32 %v2132_v23, %v4293_v11  ;;  %v2246_v3 = vadd.f32 %v2799_v8, %v2245_v42 }
 0x519   : > { %v2319_v17 = vadd.f32 %v3953_v21, %v2246_v3  ;;  %2292 = vmatmul.f32.gmra.mxu1 %v2170_v47  ;;  %v2813_v47 = vld [vmem:[%s2910_s27 + $0xd8] sm:$0xff] }
 0x51b   : > { %2351 = vst.msk [vmem:[%s3962_s26 + $0x68] sm:$0xff] %vm446_vm0, %v2319_v17 }
 0x51e   : > { %v2135_v16 = vpop.f32.mrf.mxu3  ;;  %v2248_v61 = vpop.f32.mrf.mxu1 }
 0x51f   : > { %v2171_v25 = vmul.f32 %v2135_v16, %v4294_v34  ;;  %v2249_v35 = vadd.f32 %v2800_v37, %v2248_v61  ;;  %v2814_v16 = vld [vmem:[%s2910_s27 + $0xe0] sm:$0xff]  ;;  %v2815_v37 = vld [vmem:[%s2910_s27 + $0xe8] sm:$0xff] }
 0x521   : > { %v2320_v9 = vadd.f32 %v3953_v21, %v2249_v35  ;;  %2295 = vmatmul.f32.gmra.mxu1 %v2171_v25 }
 0x523   : > { %2352 = vst.msk [vmem:[%s3962_s26 + $0x70] sm:$0xff] %vm446_vm0, %v2320_v9 }
 0x526   : > { %v2138_v20 = vpop.f32.mrf.mxu3  ;;  %v2251_v36 = vpop.f32.mrf.mxu1 }
 0x527   : > { %v2172_v7 = vmul.f32 %v2138_v20, %v4295_v6  ;;  %v2252_v57 = vadd.f32 %v2801_v26, %v2251_v36  ;;  %v2816_v36 = vld [vmem:[%s2910_s27 + $0xf0] sm:$0xff] }
 0x529   : > { %v2321_v50 = vadd.f32 %v3953_v21, %v2252_v57  ;;  %2298 = vmatmul.f32.vlgmr.msra.gmra.mxu2 %v2172_v7  ;;  %v2817_v57 = vld [vmem:[%s2910_s27 + $0xf8] sm:$0xff] }
 0x52b   : > { %2353 = vst.msk [vmem:[%s3962_s26 + $0x78] sm:$0xff] %vm446_vm0, %v2321_v50 }
 0x52e   : > { %v2254_v19 = vpop.f32.mrf.mxu1 }
 0x52f   : > { %v2255_v38 = vadd.f32 %v2802_v45, %v2254_v19 }
 0x531   : > { %v2322_v58 = vadd.f32 %v3953_v21, %v2255_v38 }
 0x533   : > { %2354 = vst.msk [vmem:[%s3962_s26 + $0x80] sm:$0xff] %vm446_vm0, %v2322_v58 }
 0x536   : > { %v2257_v5 = vpop.f32.mrf.mxu1 }
 0x537   : > { %v2258_v39 = vadd.f32 %v2803_v14, %v2257_v5 }
 0x539   : > { %v2323_v52 = vadd.f32 %v3953_v21, %v2258_v39 }
 0x53b   : > { %2355 = vst.msk [vmem:[%s3962_s26 + $0x88] sm:$0xff] %vm446_vm0, %v2323_v52 }
 0x53e   : > { %v2260_v56 = vpop.f32.mrf.mxu1 }
 0x53f   : > { %v2261_v48 = vadd.f32 %v2804_v60, %v2260_v56 }
 0x541   : > { %v2324_v24 = vadd.f32 %v3953_v21, %v2261_v48 }
 0x543   : > { %2356 = vst.msk [vmem:[%s3962_s26 + $0x90] sm:$0xff] %vm446_vm0, %v2324_v24 }
 0x546   : > { %v2263_v4 = vpop.f32.mrf.mxu1 }
 0x547   : > { %v2264_v46 = vadd.f32 %v2805_v30, %v2263_v4 }
 0x549   : > { %v2325_v63 = vadd.f32 %v3953_v21, %v2264_v46 }
 0x54b   : > { %2357 = vst.msk [vmem:[%s3962_s26 + $0x98] sm:$0xff] %vm446_vm0, %v2325_v63 }
 0x54e   : > { %v2266_v54 = vpop.f32.mrf.mxu1 }
 0x54f   : > { %v2267_v18 = vadd.f32 %v2806_v41, %v2266_v54 }
 0x551   : > { %v2326_v44 = vadd.f32 %v3953_v21, %v2267_v18 }
 0x553   : > { %2358 = vst.msk [vmem:[%s3962_s26 + $0xa0] sm:$0xff] %vm446_vm0, %v2326_v44 }
 0x556   : > { %v2269_v33 = vpop.f32.mrf.mxu1 }
 0x557   : > { %v2270_v53 = vadd.f32 %v2807_v27, %v2269_v33 }
 0x559   : > { %v2327_v49 = vadd.f32 %v3953_v21, %v2270_v53 }
 0x55b   : > { %2359 = vst.msk [vmem:[%s3962_s26 + $0xa8] sm:$0xff] %vm446_vm0, %v2327_v49 }
 0x55e   : > { %v2272_v29 = vpop.f32.mrf.mxu1 }
 0x55f   : > { %v2273_v31 = vadd.f32 %v2808_v1, %v2272_v29 }
 0x561   : > { %v2328_v13 = vadd.f32 %v3953_v21, %v2273_v31 }
 0x563   : > { %2360 = vst.msk [vmem:[%s3962_s26 + $0xb0] sm:$0xff] %vm446_vm0, %v2328_v13 }
 0x566   : > { %v2275_v12 = vpop.f32.mrf.mxu1 }
 0x567   : > { %v2276_v55 = vadd.f32 %v2809_v32, %v2275_v12 }
 0x569   : > { %v2329_v2 = vadd.f32 %v3953_v21, %v2276_v55 }
 0x56b   : > { %2361 = vst.msk [vmem:[%s3962_s26 + $0xb8] sm:$0xff] %vm446_vm0, %v2329_v2 }
 0x56e   : > { %v2278_v15 = vpop.f32.mrf.mxu1 }
 0x56f   : > { %v2279_v0 = vadd.f32 %v2810_v43, %v2278_v15 }
 0x571   : > { %v2330_v59 = vadd.f32 %v3953_v21, %v2279_v0 }
 0x573   : > { %2362 = vst.msk [vmem:[%s3962_s26 + $0xc0] sm:$0xff] %vm446_vm0, %v2330_v59 }
 0x576   : > { %v2281_v51 = vpop.f32.mrf.mxu1 }
 0x577   : > { %v2282_v40 = vadd.f32 %v2811_v10, %v2281_v51 }
 0x579   : > { %v2331_v62 = vadd.f32 %v3953_v21, %v2282_v40 }
 0x57b   : > { %2363 = vst.msk [vmem:[%s3962_s26 + $0xc8] sm:$0xff] %vm446_vm0, %v2331_v62 }
 0x57e   : > { %v2284_v22 = vpop.f32.mrf.mxu1 }
 0x57f   : > { %v2285_v23 = vadd.f32 %v2812_v28, %v2284_v22 }
 0x581   : > { %v2332_v42 = vadd.f32 %v3953_v21, %v2285_v23 }
 0x583   : > { %2364 = vst.msk [vmem:[%s3962_s26 + $0xd0] sm:$0xff] %vm446_vm0, %v2332_v42 }
 0x586   : > { %v2287_v11 = vpop.f32.mrf.mxu1 }
 0x587   : > { %v2288_v8 = vadd.f32 %v2813_v47, %v2287_v11 }
 0x589   : > { %v2333_v3 = vadd.f32 %v3953_v21, %v2288_v8 }
 0x58b   : > { %2365 = vst.msk [vmem:[%s3962_s26 + $0xd8] sm:$0xff] %vm446_vm0, %v2333_v3 }
 0x58e   : > { %v2290_v17 = vpop.f32.mrf.mxu1 }
 0x58f   : > { %v2291_v61 = vadd.f32 %v2814_v16, %v2290_v17 }
 0x591   : > { %v2334_v34 = vadd.f32 %v3953_v21, %v2291_v61 }
 0x593   : > { %2366 = vst.msk [vmem:[%s3962_s26 + $0xe0] sm:$0xff] %vm446_vm0, %v2334_v34 }
 0x596   : > { %v2293_v25 = vpop.f32.mrf.mxu1 }
 0x597   : > { %v2294_v35 = vadd.f32 %v2815_v37, %v2293_v25 }
 0x599   : > { %v2335_v9 = vadd.f32 %v3953_v21, %v2294_v35 }
 0x59b   : > { %2367 = vst.msk [vmem:[%s3962_s26 + $0xe8] sm:$0xff] %vm446_vm0, %v2335_v9 }
 0x59e   : > { %v2296_v20 = vpop.f32.mrf.mxu1 }
 0x59f   : > { %v2297_v6 = vadd.f32 %v2816_v36, %v2296_v20 }
 0x5a1   : > { %v2336_v7 = vadd.f32 %v3953_v21, %v2297_v6 }
 0x5a3   : > { %2368 = vst.msk [vmem:[%s3962_s26 + $0xf0] sm:$0xff] %vm446_vm0, %v2336_v7 }
 0x5ac   : > { %v2299_v26 = vpop.f32.mrf.mxu2 }
 0x5ad   : > { %v2300_v50 = vadd.f32 %v2817_v57, %v2299_v26 }
 0x5af   : > { %v2337_v19 = vadd.f32 %v3953_v21, %v2300_v50 }
 0x5b1   : > { %2369 = vst.msk [vmem:[%s3962_s26 + $0xf8] sm:$0xff] %vm446_vm0, %v2337_v19 }
 0x5b2 PF: > { %s21_s17 = sadd.s32 1, %s2824_s17  }
 0x5b3   : > { %p18_p5 = scmp.ge.s32.totalorder %s21_s17, 4  }
 0x5b5   :  { %20 = sbr.rel (!%p18_p5) target bundleno = 1 (0x1), region = 97 }

</bundles_post_ra>
